<compile_context>
chip_gen: v5e
topology: v5e:2x2
jax: 0.10.0
libtpu: 0.0.40
codegen_flags: <defaults>
</compile_context>

<pallas_src>
import functools

import jax
import jax.numpy as jnp
from jax.experimental import pallas as pl
from jax.experimental.pallas import tpu as pltpu


# ----------------------------------------------------------------------------
# helpers
# ----------------------------------------------------------------------------
def _round_up(x, m):
    return (x + m - 1) // m * m


def _cdiv(a, b):
    return -(-a // b)


_VMEM_LIMIT = None


def _vmem_limit_bytes():
    """~60% of physical VMEM (76 MiB on v5e/v6e, 38 MiB on v7x); 32 MiB fallback."""
    global _VMEM_LIMIT
    if _VMEM_LIMIT is None:
        try:
            cap = int(pltpu.get_tpu_info().vmem_capacity_bytes)
            _VMEM_LIMIT = min(96 * 1024 * 1024,
                              max(32 * 1024 * 1024, (cap * 3) // 5))
        except Exception:
            _VMEM_LIMIT = 32 * 1024 * 1024
    return _VMEM_LIMIT


# ----------------------------------------------------------------------------
# Kernel 1: fused 3x3 conv + bias + ReLU over flattened padded-grid rows,
# with optional fused channel-concat of multiple input feature maps.
# ----------------------------------------------------------------------------
def _conv3x3_kernel(*args, n_in, wp):
    # args: xa_0, xh_0, ..., xa_{n-1}, xh_{n-1}, w_0..w_{n-1}, bias, out,
    #       scratch_0..scratch_{n-1}
    x_main = [args[2 * k] for k in range(n_in)]
    x_halo = [args[2 * k + 1] for k in range(n_in)]
    w_refs = [args[2 * n_in + k] for k in range(n_in)]
    b_ref = args[3 * n_in]
    o_ref = args[3 * n_in + 1]
    xs_refs = [args[3 * n_in + 2 + k] for k in range(n_in)]

    tm, tn = o_ref.shape
    hb = x_halo[0].shape[0]

    # Fill the halo-extended scratch once per M tile (Cout is the minor grid
    # axis and revisits the same input block; axis 1 is marked "arbitrary").
    @pl.when(pl.program_id(1) == 0)
    def _():
        for k in range(n_in):
            xs_refs[k][pl.ds(0, tm), :] = x_main[k][...]
            xs_refs[k][pl.ds(tm, hb), :] = x_halo[k][...]

    acc = jnp.zeros((tm, tn), jnp.float32)
    for k in range(n_in):                           # fused skip-concat inputs
        w_k = w_refs[k]
        xs_k = xs_refs[k]
        for kh in range(3):
            # kh*wp is a multiple of 8 (wp padded) -> sublane-aligned load.
            xk = xs_k[pl.ds(kh * wp, tm + 8), :]
            for kw in range(3):
                xv = xk[kw:kw + tm, :] if kw else xk[0:tm, :]
                acc = acc + jnp.dot(xv, w_k[kh * 3 + kw],
                                    preferred_element_type=jnp.float32)
    y = jnp.maximum(acc + b_ref[...], 0.0)          # bias + ReLU in f32
    o_ref[...] = y.astype(o_ref.dtype)


def conv3x3_relu(xs, w, b):
    """ConvRelu: 3x3 conv (padding=1) + ReLU.  The channel-concat of the input
    list is fused into the kernel (no concatenated tensor in HBM).

    xs: list of (B,H,W,Ci) bf16 NHWC arrays sharing (B,H,W);
    w: (3,3,sum(Ci),Cout) f32; b: (Cout,) f32.  Returns (B,H,W,Cout) bf16.
    """
    B, H, W, _ = xs[0].shape
    cins = [int(x.shape[-1]) for x in xs]
    cin_total = sum(cins)
    cout = int(w.shape[-1])
    assert w.shape == (3, 3, cin_total, cout)

    # Cout tiling: lane-dense output blocks; 128-wide Cout grid blocks only
    # when padding waste is small (320 -> 384), otherwise one full block.
    if cout <= 256:
        coutp = max(128, _round_up(cout, 8))
        tn = coutp
    else:
        coutp = _round_up(cout, 128)
        tn = 128
    n_cout = coutp // tn

    # Flattened padded-grid geometry; row width padded to a multiple of 8 so
    # the kh*Wp components of the tap shifts are sublane-aligned.
    Wp = _round_up(W + 2, 8)
    hb = 2 * Wp + 8                     # halo rows (covers max tap shift 2*Wp+2)
    lead = Wp + 1
    m = B * (H + 2) * Wp                # one output row per padded-grid cell

    # Adaptive M tile: multiple of hb (so the halo block index is exact),
    # ~256 rows, balanced so mp does not overshoot m.
    blocks = _cdiv(m, hb)
    r_max = max(1, _cdiv(256, hb))
    n_m = _cdiv(blocks, r_max)
    ratio = _cdiv(blocks, n_m)
    tm = ratio * hb
    n_m = _cdiv(m, tm)
    mp = n_m * tm

    # Prep: zero-pad spatially to (H+2, Wp), flatten, add lead/tail zero rows.
    xi_list = []
    for x, ci in zip(xs, cins):
        xp = jnp.pad(x.astype(jnp.bfloat16),
                     ((0, 0), (1, 1), (1, Wp - W - 1), (0, 0)))
        xf = xp.reshape(B * (H + 2) * Wp, ci)
        xi_list.append(jnp.pad(xf, ((lead, mp + hb - lead - m), (0, 0))))

    # Weights: (3,3,Cin,Cout) -> (9,Cin,Coutp) bf16, split along Cin per input.
    w9 = w.reshape(9, cin_total, cout).astype(jnp.bfloat16)
    bq = b.astype(jnp.float32)
    if coutp != cout:
        w9 = jnp.pad(w9, ((0, 0), (0, 0), (0, coutp - cout)))
        bq = jnp.pad(bq, (0, coutp - cout))
    bq = bq.reshape(1, coutp)
    w_list, off = [], 0
    for ci in cins:
        w_list.append(w9[:, off:off + ci, :])
        off += ci

    in_specs = []
    for ci in cins:
        in_specs.append(pl.BlockSpec((tm, ci), lambda i, j: (i, 0)))
        in_specs.append(
            pl.BlockSpec((hb, ci), lambda i, j: ((i + 1) * ratio, 0)))
    for ci in cins:
        in_specs.append(pl.BlockSpec((9, ci, tn), lambda i, j: (0, 0, j)))
    in_specs.append(pl.BlockSpec((1, tn), lambda i, j: (0, j)))

    scratch = [pltpu.VMEM((tm + hb, ci), jnp.bfloat16) for ci in cins]

    flops = 2 * mp * 9 * cin_total * coutp
    bytes_accessed = int(
        sum((mp + hb) * ci * 2 for ci in cins)      # inputs read ~1.0-1.1x
        + n_m * 9 * cin_total * coutp * 2           # weights re-read per M tile
        + mp * coutp * 2)                           # output write

    operands = []
    for xi in xi_list:
        operands += [xi, xi]                        # main tile + small halo tile
    operands += w_list + [bq]

    y = pl.pallas_call(
        functools.partial(_conv3x3_kernel, n_in=len(xs), wp=Wp),
        out_shape=jax.ShapeDtypeStruct((mp, coutp), jnp.bfloat16),
        grid=(n_m, n_cout),
        in_specs=in_specs,
        out_specs=pl.BlockSpec((tm, tn), lambda i, j: (i, j)),
        scratch_shapes=scratch,
        compiler_params=pltpu.CompilerParams(
            dimension_semantics=("parallel", "arbitrary"),
            vmem_limit_bytes=_vmem_limit_bytes()),
        cost_estimate=pl.CostEstimate(flops=flops, transcendentals=0,
                                      bytes_accessed=bytes_accessed),
    )(*operands)

    # keep valid rows, crop padded-grid border and the extra Wp columns,
    # drop lane padding
    y = y[:m].reshape(B, H + 2, Wp, coutp)[:, 1:H + 1, 1:W + 1, :cout]
    return y


# ----------------------------------------------------------------------------
# Kernel 2: tiled 1x1 conv (matmul + bias + activation), M-tiled grid.
# ----------------------------------------------------------------------------
def _matmul_bias_act_kernel(x_ref, w_ref, b_ref, o_ref, *, activation):
    y = jnp.dot(x_ref[...], w_ref[...], preferred_element_type=jnp.float32)
    y = y + b_ref[...]
    if activation == "relu":
        y = jnp.maximum(y, 0.0)
    elif activation == "swish":
        y = y * jax.nn.sigmoid(y)
    o_ref[...] = y.astype(o_ref.dtype)


def conv1x1(x, w, b, activation="none", out_dtype=jnp.bfloat16):
    """1x1 conv.  x: (B,H,W,Cin) NHWC, w: (Cin,Cout) f32, b: (Cout,) f32."""
    B, H, W, cin = x.shape
    cout = int(w.shape[-1])
    coutp = max(128, _round_up(cout, 8))
    m = B * H * W
    tm = max(8, min(512, _round_up(m, 8)))
    n_m = _cdiv(m, tm)
    mp = n_m * tm

    xi = jnp.pad(x.astype(jnp.bfloat16).reshape(m, cin), ((0, mp - m), (0, 0)))
    wq = w.astype(jnp.bfloat16)
    bq = b.astype(jnp.float32)
    if coutp != cout:
        wq = jnp.pad(wq, ((0, 0), (0, coutp - cout)))
        bq = jnp.pad(bq, (0, coutp - cout))
    bq = bq.reshape(1, coutp)

    flops = 2 * mp * cin * coutp
    transcendentals = mp * coutp if activation == "swish" else 0
    bytes_accessed = int(mp * cin * 2 + cin * coutp * 2
                         + mp * coutp * jnp.dtype(out_dtype).itemsize)

    y = pl.pallas_call(
        functools.partial(_matmul_bias_act_kernel, activation=activation),
        out_shape=jax.ShapeDtypeStruct((mp, coutp), out_dtype),
        grid=(n_m,),
        in_specs=[
            pl.BlockSpec((tm, cin), lambda i: (i, 0)),
            pl.BlockSpec((cin, coutp), lambda i: (0, 0)),
            pl.BlockSpec((1, coutp), lambda i: (0, 0)),
        ],
        out_specs=pl.BlockSpec((tm, coutp), lambda i: (i, 0)),
        compiler_params=pltpu.CompilerParams(
            dimension_semantics=("parallel",),
            vmem_limit_bytes=_vmem_limit_bytes()),
        cost_estimate=pl.CostEstimate(flops=flops,
                                      transcendentals=transcendentals,
                                      bytes_accessed=bytes_accessed),
    )(xi, wq, bq)

    return y[:m, :cout].reshape(B, H, W, cout)


# ----------------------------------------------------------------------------
# Cheap XLA glue (fuses with the conv prep pad/reshape copies)
# ----------------------------------------------------------------------------
def upsample2_nearest(x):
    # F.interpolate(scale_factor=2), default mode='nearest'
    return jnp.repeat(jnp.repeat(x, 2, axis=1), 2, axis=2)


def avgpool2(x):
    B, H, W, C = x.shape
    return x.reshape(B, H // 2, 2, W // 2, 2, C).mean(axis=(2, 4))


# ----------------------------------------------------------------------------
# Parameters (deterministic kaiming-normal init, zero bias — matches the
# PyTorch module's _initialize_weights).
# ----------------------------------------------------------------------------
ENC_FILTERS = [16, 24, 40, 112, 1280]      # efficientnet-b0
DEC_FILTERS = [48, 64, 128, 160, 320]
NUM_CLASSES = 5


def _kaiming(key, shape, fan_in):
    return jnp.sqrt(2.0 / fan_in) * jax.random.normal(key, shape, jnp.float32)


def init_params(key):
    keys = iter(jax.random.split(key, 32))

    def conv3(cin, cout):
        return (_kaiming(next(keys), (3, 3, cin, cout), 9 * cin),
                jnp.zeros((cout,), jnp.float32))

    def conv1(cin, cout):
        return (_kaiming(next(keys), (cin, cout), cin),
                jnp.zeros((cout,), jnp.float32))

    p = {}
    enc_chain = [3] + ENC_FILTERS
    for i in range(5):
        p[f"enc{i + 1}"] = conv1(enc_chain[i], enc_chain[i + 1])
    enc, dec = ENC_FILTERS, DEC_FILTERS
    p["conv6"] = conv3(enc[4], dec[4])
    p["conv6_2"] = conv3(dec[4] + enc[3], dec[4])
    p["conv7"] = conv3(dec[4], dec[3])
    p["conv7_2"] = conv3(dec[3] + enc[2], dec[3])
    p["conv8"] = conv3(dec[3], dec[2])
    p["conv8_2"] = conv3(dec[2] + enc[1], dec[2])
    p["conv9"] = conv3(dec[2], dec[1])
    p["conv9_2"] = conv3(dec[1] + enc[0], dec[1])
    p["conv10"] = conv3(dec[1], dec[0])
    p["res"] = conv1(dec[0] * 2, NUM_CLASSES)
    return p


# ----------------------------------------------------------------------------
# Forward pass (mirrors EfficientNet_Unet_Double.forward)
# ----------------------------------------------------------------------------
def extract_features(params, x_nhwc):
    # stub encoder (see TODO at top): same skip-feature shapes as EfficientNet-B0
    feats = []
    y = x_nhwc
    for i in range(5):
        y = avgpool2(y)
        y = conv1x1(y, *params[f"enc{i + 1}"], activation="swish")
        feats.append(y)
    return feats


def forward1(params, x_nchw):
    x = jnp.transpose(x_nchw, (0, 2, 3, 1)).astype(jnp.bfloat16)  # NCHW -> NHWC
    enc1, enc2, enc3, enc4, enc5 = extract_features(params, x)
    dec6 = conv3x3_relu([upsample2_nearest(enc5)], *params["conv6"])
    dec6 = conv3x3_relu([dec6, enc4], *params["conv6_2"])        # fused concat
    dec7 = conv3x3_relu([upsample2_nearest(dec6)], *params["conv7"])
    dec7 = conv3x3_relu([dec7, enc3], *params["conv7_2"])
    dec8 = conv3x3_relu([upsample2_nearest(dec7)], *params["conv8"])
    dec8 = conv3x3_relu([dec8, enc2], *params["conv8_2"])
    dec9 = conv3x3_relu([upsample2_nearest(dec8)], *params["conv9"])
    dec9 = conv3x3_relu([dec9, enc1], *params["conv9_2"])
    dec10 = conv3x3_relu([upsample2_nearest(dec9)], *params["conv10"])
    return dec10  # NHWC, (B, H, W, 48), bf16


def efficientnet_unet_double_forward(params, preimg, postimg, foundation=None):
    d0 = forward1(params, preimg)
    d1 = forward1(params, postimg)
    if foundation is not None:
        # NOTE: like the PyTorch module, the 'res' head is sized for 2*48 input
        # channels; passing foundation requires a correspondingly sized head.
        f = jnp.transpose(foundation, (0, 2, 3, 1)).astype(jnp.bfloat16)
        dec = jnp.concatenate([d0, d1, f], axis=-1)
    else:
        dec = jnp.concatenate([d0, d1], axis=-1)
    out = conv1x1(dec, *params["res"], activation="none", out_dtype=jnp.float32)
    return jnp.transpose(out, (0, 3, 1, 2))  # back to NCHW, f32


# ----------------------------------------------------------------------------
if __name__ == "__main__":
    key = jax.random.PRNGKey(0)
    pk, k1, k2, k3, k4, k5 = jax.random.split(key, 6)

    # --- numerical self-check of the fused conv3x3 kernel (2 inputs, Cout=320
    #     so the Cout grid axis and the scratch-fill guard are exercised) ---
    xa = jax.random.normal(k3, (1, 8, 8, 40), jnp.float32).astype(jnp.bfloat16)
    xb = jax.random.normal(k4, (1, 8, 8, 24), jnp.float32).astype(jnp.bfloat16)
    wt = jax.random.normal(k5, (3, 3, 64, 320), jnp.float32) * 0.05
    bt = jnp.linspace(-0.1, 0.1, 320, dtype=jnp.float32)
    got = conv3x3_relu([xa, xb], wt, bt).astype(jnp.float32)
    xcat = jnp.concatenate([xa, xb], axis=-1).astype(jnp.float32)
    ref = jax.lax.conv_general_dilated(
        xcat, wt.astype(jnp.bfloat16).astype(jnp.float32), (1, 1),
        ((1, 1), (1, 1)), dimension_numbers=("NHWC", "HWIO", "NHWC"))
    ref = jnp.maximum(ref + bt, 0.0)
    assert jnp.allclose(got, ref, rtol=5e-2, atol=5e-2), (
        "conv3x3 mismatch, max abs err = %f" %
        float(jnp.max(jnp.abs(got - ref))))

    # --- full forward ---
    params = init_params(pk)
    B, C, H, W = 2, 3, 32, 32          # H, W divisible by 32 (5 downsamples)
    preimg = jax.random.normal(k1, (B, C, H, W), jnp.float32)
    postimg = jax.random.normal(k2, (B, C, H, W), jnp.float32)

    fwd = jax.jit(efficientnet_unet_double_forward)
    out = fwd(params, preimg, postimg)
    jax.block_until_ready(out)

    assert out.shape == (B, NUM_CLASSES, H, W), out.shape
    assert out.dtype == jnp.float32
    print("KERNEL_OK")
</pallas_src>

<mosaic_0001>
module attributes {stable_mosaic.version = 11 : i64} {
  func.func @_conv3x3_kernel(%arg0: i32, %arg1: i32, %arg2: memref<160x40xbf16, #tpu.memory_space<vmem>>, %arg3: memref<40x40xbf16, #tpu.memory_space<vmem>>, %arg4: memref<160x24xbf16, #tpu.memory_space<vmem>>, %arg5: memref<40x24xbf16, #tpu.memory_space<vmem>>, %arg6: memref<9x40x128xbf16, #tpu.memory_space<vmem>>, %arg7: memref<9x24x128xbf16, #tpu.memory_space<vmem>>, %arg8: memref<1x128xf32, #tpu.memory_space<vmem>>, %arg9: memref<160x128xbf16, #tpu.memory_space<vmem>>, %arg10: memref<200x40xbf16, #tpu.memory_space<vmem>>, %arg11: memref<200x24xbf16, #tpu.memory_space<vmem>>) attributes {dimension_semantics = [#tpu.dimension_semantics<parallel>, #tpu.dimension_semantics<arbitrary>], iteration_bounds = array<i64: 1, 3>, scalar_prefetch = 0 : i64, scratch_operands = 2 : i64, tpu.core_type = #tpu.core_type<tc>, window_params = [{transform_indices = @transform_0, window_bounds = array<i64: 160, 40>}, {transform_indices = @transform_1, window_bounds = array<i64: 40, 40>}, {transform_indices = @transform_2, window_bounds = array<i64: 160, 24>}, {transform_indices = @transform_3, window_bounds = array<i64: 40, 24>}, {transform_indices = @transform_4, window_bounds = array<i64: 9, 40, 128>}, {transform_indices = @transform_5, window_bounds = array<i64: 9, 24, 128>}, {transform_indices = @transform_6, window_bounds = array<i64: 1, 128>}, {transform_indices = @transform_7, window_bounds = array<i64: 160, 128>}]} {
    %c0_i32 = arith.constant 0 : i32
    %0 = arith.cmpi eq, %arg1, %c0_i32 : i32
    %1 = arith.extui %0 : i1 to i32
    %c0_i32_0 = arith.constant 0 : i32
    %2 = arith.cmpi ne, %1, %c0_i32_0 : i32
    scf.if %2 {
      %c0_79 = arith.constant 0 : index
      %c0_80 = arith.constant 0 : index
      %107 = vector.load %arg2[%c0_79, %c0_80] : memref<160x40xbf16, #tpu.memory_space<vmem>>, vector<160x40xbf16>
      %c0_81 = arith.constant 0 : index
      %c0_82 = arith.constant 0 : index
      %108 = vector.load %arg10[%c0_81, %c0_82] : memref<200x40xbf16, #tpu.memory_space<vmem>>, vector<160x40xbf16>
      tpu.vector_store %arg10[%c0_81, %c0_82], %107 {strides = array<i32>} : memref<200x40xbf16, #tpu.memory_space<vmem>>, vector<160x40xbf16>,
      %c0_83 = arith.constant 0 : index
      %c0_84 = arith.constant 0 : index
      %109 = vector.load %arg3[%c0_83, %c0_84] : memref<40x40xbf16, #tpu.memory_space<vmem>>, vector<40x40xbf16>
      %c160 = arith.constant 160 : index
      %c0_85 = arith.constant 0 : index
      %110 = vector.load %arg10[%c160, %c0_85] : memref<200x40xbf16, #tpu.memory_space<vmem>>, vector<40x40xbf16>
      tpu.vector_store %arg10[%c160, %c0_85], %109 {strides = array<i32>} : memref<200x40xbf16, #tpu.memory_space<vmem>>, vector<40x40xbf16>,
      %c0_86 = arith.constant 0 : index
      %c0_87 = arith.constant 0 : index
      %111 = vector.load %arg4[%c0_86, %c0_87] : memref<160x24xbf16, #tpu.memory_space<vmem>>, vector<160x24xbf16>
      %c0_88 = arith.constant 0 : index
      %c0_89 = arith.constant 0 : index
      %112 = vector.load %arg11[%c0_88, %c0_89] : memref<200x24xbf16, #tpu.memory_space<vmem>>, vector<160x24xbf16>
      tpu.vector_store %arg11[%c0_88, %c0_89], %111 {strides = array<i32>} : memref<200x24xbf16, #tpu.memory_space<vmem>>, vector<160x24xbf16>,
      %c0_90 = arith.constant 0 : index
      %c0_91 = arith.constant 0 : index
      %113 = vector.load %arg5[%c0_90, %c0_91] : memref<40x24xbf16, #tpu.memory_space<vmem>>, vector<40x24xbf16>
      %c160_92 = arith.constant 160 : index
      %c0_93 = arith.constant 0 : index
      %114 = vector.load %arg11[%c160_92, %c0_93] : memref<200x24xbf16, #tpu.memory_space<vmem>>, vector<40x24xbf16>
      tpu.vector_store %arg11[%c160_92, %c0_93], %113 {strides = array<i32>} : memref<200x24xbf16, #tpu.memory_space<vmem>>, vector<40x24xbf16>,
    } else {
    }
    %cst = arith.constant 0.000000e+00 : f32
    %3 = vector.broadcast %cst : f32 to vector<160x128xf32>
    %c0 = arith.constant 0 : index
    %c0_1 = arith.constant 0 : index
    %4 = vector.load %arg10[%c0, %c0_1] : memref<200x40xbf16, #tpu.memory_space<vmem>>, vector<168x40xbf16>
    %5 = vector.extract_strided_slice %4 {offsets = [0, 0], sizes = [160, 40], strides = [1, 1]} : vector<168x40xbf16> to vector<160x40xbf16>
    %c0_2 = arith.constant 0 : index
    %c0_3 = arith.constant 0 : index
    %c0_4 = arith.constant 0 : index
    %6 = vector.load %arg6[%c0_2, %c0_3, %c0_4] : memref<9x40x128xbf16, #tpu.memory_space<vmem>>, vector<1x40x128xbf16>
    %7 = vector.shape_cast %6 : vector<1x40x128xbf16> to vector<40x128xbf16>
    %cst_5 = arith.constant dense<0.000000e+00> : vector<160x128xf32>
    %8 = tpu.matmul %5, %7, %cst_5 {dimension_numbers = #tpu.dot_dimension_numbers<[1], [0], [0], [1], [0, 0, 1, 1], [], []>} : vector<160x40xbf16>, vector<40x128xbf16>, vector<160x128xf32> -> vector<160x128xf32>
    %9 = arith.addf %3, %8 : vector<160x128xf32>
    %10 = vector.extract_strided_slice %4 {offsets = [1, 0], sizes = [160, 40], strides = [1, 1]} : vector<168x40xbf16> to vector<160x40xbf16>
    %c1 = arith.constant 1 : index
    %c0_6 = arith.constant 0 : index
    %c0_7 = arith.constant 0 : index
    %11 = vector.load %arg6[%c1, %c0_6, %c0_7] : memref<9x40x128xbf16, #tpu.memory_space<vmem>>, vector<1x40x128xbf16>
    %12 = vector.shape_cast %11 : vector<1x40x128xbf16> to vector<40x128xbf16>
    %cst_8 = arith.constant dense<0.000000e+00> : vector<160x128xf32>
    %13 = tpu.matmul %10, %12, %cst_8 {dimension_numbers = #tpu.dot_dimension_numbers<[1], [0], [0], [1], [0, 0, 1, 1], [], []>} : vector<160x40xbf16>, vector<40x128xbf16>, vector<160x128xf32> -> vector<160x128xf32>
    %14 = arith.addf %9, %13 : vector<160x128xf32>
    %15 = vector.extract_strided_slice %4 {offsets = [2, 0], sizes = [160, 40], strides = [1, 1]} : vector<168x40xbf16> to vector<160x40xbf16>
    %c2 = arith.constant 2 : index
    %c0_9 = arith.constant 0 : index
    %c0_10 = arith.constant 0 : index
    %16 = vector.load %arg6[%c2, %c0_9, %c0_10] : memref<9x40x128xbf16, #tpu.memory_space<vmem>>, vector<1x40x128xbf16>
    %17 = vector.shape_cast %16 : vector<1x40x128xbf16> to vector<40x128xbf16>
    %cst_11 = arith.constant dense<0.000000e+00> : vector<160x128xf32>
    %18 = tpu.matmul %15, %17, %cst_11 {dimension_numbers = #tpu.dot_dimension_numbers<[1], [0], [0], [1], [0, 0, 1, 1], [], []>} : vector<160x40xbf16>, vector<40x128xbf16>, vector<160x128xf32> -> vector<160x128xf32>
    %19 = arith.addf %14, %18 : vector<160x128xf32>
    %c16 = arith.constant 16 : index
    %c0_12 = arith.constant 0 : index
    %20 = vector.load %arg10[%c16, %c0_12] : memref<200x40xbf16, #tpu.memory_space<vmem>>, vector<168x40xbf16>
    %21 = vector.extract_strided_slice %20 {offsets = [0, 0], sizes = [160, 40], strides = [1, 1]} : vector<168x40xbf16> to vector<160x40xbf16>
    %c3 = arith.constant 3 : index
    %c0_13 = arith.constant 0 : index
    %c0_14 = arith.constant 0 : index
    %22 = vector.load %arg6[%c3, %c0_13, %c0_14] : memref<9x40x128xbf16, #tpu.memory_space<vmem>>, vector<1x40x128xbf16>
    %23 = vector.shape_cast %22 : vector<1x40x128xbf16> to vector<40x128xbf16>
    %cst_15 = arith.constant dense<0.000000e+00> : vector<160x128xf32>
    %24 = tpu.matmul %21, %23, %cst_15 {dimension_numbers = #tpu.dot_dimension_numbers<[1], [0], [0], [1], [0, 0, 1, 1], [], []>} : vector<160x40xbf16>, vector<40x128xbf16>, vector<160x128xf32> -> vector<160x128xf32>
    %25 = arith.addf %19, %24 : vector<160x128xf32>
    %26 = vector.extract_strided_slice %20 {offsets = [1, 0], sizes = [160, 40], strides = [1, 1]} : vector<168x40xbf16> to vector<160x40xbf16>
    %c4 = arith.constant 4 : index
    %c0_16 = arith.constant 0 : index
    %c0_17 = arith.constant 0 : index
    %27 = vector.load %arg6[%c4, %c0_16, %c0_17] : memref<9x40x128xbf16, #tpu.memory_space<vmem>>, vector<1x40x128xbf16>
    %28 = vector.shape_cast %27 : vector<1x40x128xbf16> to vector<40x128xbf16>
    %cst_18 = arith.constant dense<0.000000e+00> : vector<160x128xf32>
    %29 = tpu.matmul %26, %28, %cst_18 {dimension_numbers = #tpu.dot_dimension_numbers<[1], [0], [0], [1], [0, 0, 1, 1], [], []>} : vector<160x40xbf16>, vector<40x128xbf16>, vector<160x128xf32> -> vector<160x128xf32>
    %30 = arith.addf %25, %29 : vector<160x128xf32>
    %31 = vector.extract_strided_slice %20 {offsets = [2, 0], sizes = [160, 40], strides = [1, 1]} : vector<168x40xbf16> to vector<160x40xbf16>
    %c5 = arith.constant 5 : index
    %c0_19 = arith.constant 0 : index
    %c0_20 = arith.constant 0 : index
    %32 = vector.load %arg6[%c5, %c0_19, %c0_20] : memref<9x40x128xbf16, #tpu.memory_space<vmem>>, vector<1x40x128xbf16>
    %33 = vector.shape_cast %32 : vector<1x40x128xbf16> to vector<40x128xbf16>
    %cst_21 = arith.constant dense<0.000000e+00> : vector<160x128xf32>
    %34 = tpu.matmul %31, %33, %cst_21 {dimension_numbers = #tpu.dot_dimension_numbers<[1], [0], [0], [1], [0, 0, 1, 1], [], []>} : vector<160x40xbf16>, vector<40x128xbf16>, vector<160x128xf32> -> vector<160x128xf32>
    %35 = arith.addf %30, %34 : vector<160x128xf32>
    %c32 = arith.constant 32 : index
    %c0_22 = arith.constant 0 : index
    %36 = vector.load %arg10[%c32, %c0_22] : memref<200x40xbf16, #tpu.memory_space<vmem>>, vector<168x40xbf16>
    %37 = vector.extract_strided_slice %36 {offsets = [0, 0], sizes = [160, 40], strides = [1, 1]} : vector<168x40xbf16> to vector<160x40xbf16>
    %c6 = arith.constant 6 : index
    %c0_23 = arith.constant 0 : index
    %c0_24 = arith.constant 0 : index
    %38 = vector.load %arg6[%c6, %c0_23, %c0_24] : memref<9x40x128xbf16, #tpu.memory_space<vmem>>, vector<1x40x128xbf16>
    %39 = vector.shape_cast %38 : vector<1x40x128xbf16> to vector<40x128xbf16>
    %cst_25 = arith.constant dense<0.000000e+00> : vector<160x128xf32>
    %40 = tpu.matmul %37, %39, %cst_25 {dimension_numbers = #tpu.dot_dimension_numbers<[1], [0], [0], [1], [0, 0, 1, 1], [], []>} : vector<160x40xbf16>, vector<40x128xbf16>, vector<160x128xf32> -> vector<160x128xf32>
    %41 = arith.addf %35, %40 : vector<160x128xf32>
    %42 = vector.extract_strided_slice %36 {offsets = [1, 0], sizes = [160, 40], strides = [1, 1]} : vector<168x40xbf16> to vector<160x40xbf16>
    %c7 = arith.constant 7 : index
    %c0_26 = arith.constant 0 : index
    %c0_27 = arith.constant 0 : index
    %43 = vector.load %arg6[%c7, %c0_26, %c0_27] : memref<9x40x128xbf16, #tpu.memory_space<vmem>>, vector<1x40x128xbf16>
    %44 = vector.shape_cast %43 : vector<1x40x128xbf16> to vector<40x128xbf16>
    %cst_28 = arith.constant dense<0.000000e+00> : vector<160x128xf32>
    %45 = tpu.matmul %42, %44, %cst_28 {dimension_numbers = #tpu.dot_dimension_numbers<[1], [0], [0], [1], [0, 0, 1, 1], [], []>} : vector<160x40xbf16>, vector<40x128xbf16>, vector<160x128xf32> -> vector<160x128xf32>
    %46 = arith.addf %41, %45 : vector<160x128xf32>
    %47 = vector.extract_strided_slice %36 {offsets = [2, 0], sizes = [160, 40], strides = [1, 1]} : vector<168x40xbf16> to vector<160x40xbf16>
    %c8 = arith.constant 8 : index
    %c0_29 = arith.constant 0 : index
    %c0_30 = arith.constant 0 : index
    %48 = vector.load %arg6[%c8, %c0_29, %c0_30] : memref<9x40x128xbf16, #tpu.memory_space<vmem>>, vector<1x40x128xbf16>
    %49 = vector.shape_cast %48 : vector<1x40x128xbf16> to vector<40x128xbf16>
    %cst_31 = arith.constant dense<0.000000e+00> : vector<160x128xf32>
    %50 = tpu.matmul %47, %49, %cst_31 {dimension_numbers = #tpu.dot_dimension_numbers<[1], [0], [0], [1], [0, 0, 1, 1], [], []>} : vector<160x40xbf16>, vector<40x128xbf16>, vector<160x128xf32> -> vector<160x128xf32>
    %51 = arith.addf %46, %50 : vector<160x128xf32>
    %c0_32 = arith.constant 0 : index
    %c0_33 = arith.constant 0 : index
    %52 = vector.load %arg11[%c0_32, %c0_33] : memref<200x24xbf16, #tpu.memory_space<vmem>>, vector<168x24xbf16>
    %53 = vector.extract_strided_slice %52 {offsets = [0, 0], sizes = [160, 24], strides = [1, 1]} : vector<168x24xbf16> to vector<160x24xbf16>
    %c0_34 = arith.constant 0 : index
    %c0_35 = arith.constant 0 : index
    %c0_36 = arith.constant 0 : index
    %54 = vector.load %arg7[%c0_34, %c0_35, %c0_36] : memref<9x24x128xbf16, #tpu.memory_space<vmem>>, vector<1x24x128xbf16>
    %55 = vector.shape_cast %54 : vector<1x24x128xbf16> to vector<24x128xbf16>
    %cst_37 = arith.constant dense<0.000000e+00> : vector<160x128xf32>
    %56 = tpu.matmul %53, %55, %cst_37 {dimension_numbers = #tpu.dot_dimension_numbers<[1], [0], [0], [1], [0, 0, 1, 1], [], []>} : vector<160x24xbf16>, vector<24x128xbf16>, vector<160x128xf32> -> vector<160x128xf32>
    %57 = arith.addf %51, %56 : vector<160x128xf32>
    %58 = vector.extract_strided_slice %52 {offsets = [1, 0], sizes = [160, 24], strides = [1, 1]} : vector<168x24xbf16> to vector<160x24xbf16>
    %c1_38 = arith.constant 1 : index
    %c0_39 = arith.constant 0 : index
    %c0_40 = arith.constant 0 : index
    %59 = vector.load %arg7[%c1_38, %c0_39, %c0_40] : memref<9x24x128xbf16, #tpu.memory_space<vmem>>, vector<1x24x128xbf16>
    %60 = vector.shape_cast %59 : vector<1x24x128xbf16> to vector<24x128xbf16>
    %cst_41 = arith.constant dense<0.000000e+00> : vector<160x128xf32>
    %61 = tpu.matmul %58, %60, %cst_41 {dimension_numbers = #tpu.dot_dimension_numbers<[1], [0], [0], [1], [0, 0, 1, 1], [], []>} : vector<160x24xbf16>, vector<24x128xbf16>, vector<160x128xf32> -> vector<160x128xf32>
    %62 = arith.addf %57, %61 : vector<160x128xf32>
    %63 = vector.extract_strided_slice %52 {offsets = [2, 0], sizes = [160, 24], strides = [1, 1]} : vector<168x24xbf16> to vector<160x24xbf16>
    %c2_42 = arith.constant 2 : index
    %c0_43 = arith.constant 0 : index
    %c0_44 = arith.constant 0 : index
    %64 = vector.load %arg7[%c2_42, %c0_43, %c0_44] : memref<9x24x128xbf16, #tpu.memory_space<vmem>>, vector<1x24x128xbf16>
    %65 = vector.shape_cast %64 : vector<1x24x128xbf16> to vector<24x128xbf16>
    %cst_45 = arith.constant dense<0.000000e+00> : vector<160x128xf32>
    %66 = tpu.matmul %63, %65, %cst_45 {dimension_numbers = #tpu.dot_dimension_numbers<[1], [0], [0], [1], [0, 0, 1, 1], [], []>} : vector<160x24xbf16>, vector<24x128xbf16>, vector<160x128xf32> -> vector<160x128xf32>
    %67 = arith.addf %62, %66 : vector<160x128xf32>
    %c16_46 = arith.constant 16 : index
    %c0_47 = arith.constant 0 : index
    %68 = vector.load %arg11[%c16_46, %c0_47] : memref<200x24xbf16, #tpu.memory_space<vmem>>, vector<168x24xbf16>
    %69 = vector.extract_strided_slice %68 {offsets = [0, 0], sizes = [160, 24], strides = [1, 1]} : vector<168x24xbf16> to vector<160x24xbf16>
    %c3_48 = arith.constant 3 : index
    %c0_49 = arith.constant 0 : index
    %c0_50 = arith.constant 0 : index
    %70 = vector.load %arg7[%c3_48, %c0_49, %c0_50] : memref<9x24x128xbf16, #tpu.memory_space<vmem>>, vector<1x24x128xbf16>
    %71 = vector.shape_cast %70 : vector<1x24x128xbf16> to vector<24x128xbf16>
    %cst_51 = arith.constant dense<0.000000e+00> : vector<160x128xf32>
    %72 = tpu.matmul %69, %71, %cst_51 {dimension_numbers = #tpu.dot_dimension_numbers<[1], [0], [0], [1], [0, 0, 1, 1], [], []>} : vector<160x24xbf16>, vector<24x128xbf16>, vector<160x128xf32> -> vector<160x128xf32>
    %73 = arith.addf %67, %72 : vector<160x128xf32>
    %74 = vector.extract_strided_slice %68 {offsets = [1, 0], sizes = [160, 24], strides = [1, 1]} : vector<168x24xbf16> to vector<160x24xbf16>
    %c4_52 = arith.constant 4 : index
    %c0_53 = arith.constant 0 : index
    %c0_54 = arith.constant 0 : index
    %75 = vector.load %arg7[%c4_52, %c0_53, %c0_54] : memref<9x24x128xbf16, #tpu.memory_space<vmem>>, vector<1x24x128xbf16>
    %76 = vector.shape_cast %75 : vector<1x24x128xbf16> to vector<24x128xbf16>
    %cst_55 = arith.constant dense<0.000000e+00> : vector<160x128xf32>
    %77 = tpu.matmul %74, %76, %cst_55 {dimension_numbers = #tpu.dot_dimension_numbers<[1], [0], [0], [1], [0, 0, 1, 1], [], []>} : vector<160x24xbf16>, vector<24x128xbf16>, vector<160x128xf32> -> vector<160x128xf32>
    %78 = arith.addf %73, %77 : vector<160x128xf32>
    %79 = vector.extract_strided_slice %68 {offsets = [2, 0], sizes = [160, 24], strides = [1, 1]} : vector<168x24xbf16> to vector<160x24xbf16>
    %c5_56 = arith.constant 5 : index
    %c0_57 = arith.constant 0 : index
    %c0_58 = arith.constant 0 : index
    %80 = vector.load %arg7[%c5_56, %c0_57, %c0_58] : memref<9x24x128xbf16, #tpu.memory_space<vmem>>, vector<1x24x128xbf16>
    %81 = vector.shape_cast %80 : vector<1x24x128xbf16> to vector<24x128xbf16>
    %cst_59 = arith.constant dense<0.000000e+00> : vector<160x128xf32>
    %82 = tpu.matmul %79, %81, %cst_59 {dimension_numbers = #tpu.dot_dimension_numbers<[1], [0], [0], [1], [0, 0, 1, 1], [], []>} : vector<160x24xbf16>, vector<24x128xbf16>, vector<160x128xf32> -> vector<160x128xf32>
    %83 = arith.addf %78, %82 : vector<160x128xf32>
    %c32_60 = arith.constant 32 : index
    %c0_61 = arith.constant 0 : index
    %84 = vector.load %arg11[%c32_60, %c0_61] : memref<200x24xbf16, #tpu.memory_space<vmem>>, vector<168x24xbf16>
    %85 = vector.extract_strided_slice %84 {offsets = [0, 0], sizes = [160, 24], strides = [1, 1]} : vector<168x24xbf16> to vector<160x24xbf16>
    %c6_62 = arith.constant 6 : index
    %c0_63 = arith.constant 0 : index
    %c0_64 = arith.constant 0 : index
    %86 = vector.load %arg7[%c6_62, %c0_63, %c0_64] : memref<9x24x128xbf16, #tpu.memory_space<vmem>>, vector<1x24x128xbf16>
    %87 = vector.shape_cast %86 : vector<1x24x128xbf16> to vector<24x128xbf16>
    %cst_65 = arith.constant dense<0.000000e+00> : vector<160x128xf32>
    %88 = tpu.matmul %85, %87, %cst_65 {dimension_numbers = #tpu.dot_dimension_numbers<[1], [0], [0], [1], [0, 0, 1, 1], [], []>} : vector<160x24xbf16>, vector<24x128xbf16>, vector<160x128xf32> -> vector<160x128xf32>
    %89 = arith.addf %83, %88 : vector<160x128xf32>
    %90 = vector.extract_strided_slice %84 {offsets = [1, 0], sizes = [160, 24], strides = [1, 1]} : vector<168x24xbf16> to vector<160x24xbf16>
    %c7_66 = arith.constant 7 : index
    %c0_67 = arith.constant 0 : index
    %c0_68 = arith.constant 0 : index
    %91 = vector.load %arg7[%c7_66, %c0_67, %c0_68] : memref<9x24x128xbf16, #tpu.memory_space<vmem>>, vector<1x24x128xbf16>
    %92 = vector.shape_cast %91 : vector<1x24x128xbf16> to vector<24x128xbf16>
    %cst_69 = arith.constant dense<0.000000e+00> : vector<160x128xf32>
    %93 = tpu.matmul %90, %92, %cst_69 {dimension_numbers = #tpu.dot_dimension_numbers<[1], [0], [0], [1], [0, 0, 1, 1], [], []>} : vector<160x24xbf16>, vector<24x128xbf16>, vector<160x128xf32> -> vector<160x128xf32>
    %94 = arith.addf %89, %93 : vector<160x128xf32>
    %95 = vector.extract_strided_slice %84 {offsets = [2, 0], sizes = [160, 24], strides = [1, 1]} : vector<168x24xbf16> to vector<160x24xbf16>
    %c8_70 = arith.constant 8 : index
    %c0_71 = arith.constant 0 : index
    %c0_72 = arith.constant 0 : index
    %96 = vector.load %arg7[%c8_70, %c0_71, %c0_72] : memref<9x24x128xbf16, #tpu.memory_space<vmem>>, vector<1x24x128xbf16>
    %97 = vector.shape_cast %96 : vector<1x24x128xbf16> to vector<24x128xbf16>
    %cst_73 = arith.constant dense<0.000000e+00> : vector<160x128xf32>
    %98 = tpu.matmul %95, %97, %cst_73 {dimension_numbers = #tpu.dot_dimension_numbers<[1], [0], [0], [1], [0, 0, 1, 1], [], []>} : vector<160x24xbf16>, vector<24x128xbf16>, vector<160x128xf32> -> vector<160x128xf32>
    %99 = arith.addf %94, %98 : vector<160x128xf32>
    %c0_74 = arith.constant 0 : index
    %c0_75 = arith.constant 0 : index
    %100 = vector.load %arg8[%c0_74, %c0_75] : memref<1x128xf32, #tpu.memory_space<vmem>>, vector<1x128xf32>
    %101 = vector.broadcast %100 : vector<1x128xf32> to vector<160x128xf32>
    %102 = arith.addf %99, %101 : vector<160x128xf32>
    %cst_76 = arith.constant 0.000000e+00 : f32
    %103 = vector.broadcast %cst_76 : f32 to vector<160x128xf32>
    %104 = arith.maximumf %102, %103 : vector<160x128xf32>
    %105 = arith.truncf %104 : vector<160x128xf32> to vector<160x128xbf16>
    %c0_77 = arith.constant 0 : index
    %c0_78 = arith.constant 0 : index
    %106 = vector.load %arg9[%c0_77, %c0_78] : memref<160x128xbf16, #tpu.memory_space<vmem>>, vector<160x128xbf16>
    tpu.vector_store %arg9[%c0_77, %c0_78], %105 {strides = array<i32>} : memref<160x128xbf16, #tpu.memory_space<vmem>>, vector<160x128xbf16>,
    return
  }
  func.func @transform_0(%arg0: i32, %arg1: i32) -> (i32, i32) {
    %c0_i32 = arith.constant 0 : i32
    %c0_i32_0 = arith.constant 0 : i32
    return %arg0, %c0_i32 : i32, i32
  }
  func.func @transform_1(%arg0: i32, %arg1: i32) -> (i32, i32) {
    %c1_i32 = arith.constant 1 : i32
    %0 = arith.addi %arg0, %c1_i32 : i32
    %c4_i32 = arith.constant 4 : i32
    %1 = arith.muli %0, %c4_i32 : i32
    %c0_i32 = arith.constant 0 : i32
    %c0_i32_0 = arith.constant 0 : i32
    return %1, %c0_i32 : i32, i32
  }
  func.func @transform_2(%arg0: i32, %arg1: i32) -> (i32, i32) {
    %c0_i32 = arith.constant 0 : i32
    %c0_i32_0 = arith.constant 0 : i32
    return %arg0, %c0_i32 : i32, i32
  }
  func.func @transform_3(%arg0: i32, %arg1: i32) -> (i32, i32) {
    %c1_i32 = arith.constant 1 : i32
    %0 = arith.addi %arg0, %c1_i32 : i32
    %c4_i32 = arith.constant 4 : i32
    %1 = arith.muli %0, %c4_i32 : i32
    %c0_i32 = arith.constant 0 : i32
    %c0_i32_0 = arith.constant 0 : i32
    return %1, %c0_i32 : i32, i32
  }
  func.func @transform_4(%arg0: i32, %arg1: i32) -> (i32, i32, i32) {
    %c0_i32 = arith.constant 0 : i32
    %c0_i32_0 = arith.constant 0 : i32
    %c0_i32_1 = arith.constant 0 : i32
    return %c0_i32, %c0_i32_0, %arg1 : i32, i32, i32
  }
  func.func @transform_5(%arg0: i32, %arg1: i32) -> (i32, i32, i32) {
    %c0_i32 = arith.constant 0 : i32
    %c0_i32_0 = arith.constant 0 : i32
    %c0_i32_1 = arith.constant 0 : i32
    return %c0_i32, %c0_i32_0, %arg1 : i32, i32, i32
  }
  func.func @transform_6(%arg0: i32, %arg1: i32) -> (i32, i32) {
    %c0_i32 = arith.constant 0 : i32
    %c0_i32_0 = arith.constant 0 : i32
    return %c0_i32, %arg1 : i32, i32
  }
  func.func @transform_7(%arg0: i32, %arg1: i32) -> (i32, i32) {
    %c0_i32 = arith.constant 0 : i32
    return %arg0, %arg1 : i32, i32
  }
}

</mosaic_0001>

<bundles_post_ra>
// kernel: tpu_custom_call.1
= control target key start
LH: loop header
LB: loop body
LE: loop exit
PB: predicated region body
PF: predicated region fallthrough
CT: control target
= control target key end

     0   :  { %12 = vsyncpa [#allocation5], 0  ;;  %s6574_s0 = inlined_call_operand.vmem [shape: bf16[200,40], index: 0, kind: input, shape index: {}]   ;;  %s6575_s1 = inlined_call_operand.vmem [shape: bf16[200,40], index: 1, kind: input, shape index: {}]   ;;  %s6576_s2 = inlined_call_operand.vmem [shape: bf16[200,24], index: 2, kind: input, shape index: {}]   ;;  %s6577_s3 = inlined_call_operand.vmem [shape: bf16[200,24], index: 3, kind: input, shape index: {}]   ;;  %s6578_s4 = inlined_call_operand.hbm [shape: bf16[9,40,384], index: 4, kind: input, shape index: {}]   ;;  %s6579_s5 = inlined_call_operand.vmem [shape: bf16[9,24,384], index: 5, kind: input, shape index: {}]   ;;  %s6580_s6 = inlined_call_operand.vmem [shape: f32[1,384], index: 6, kind: input, shape index: {}]   ;;  %s6581_s7 = inlined_call_operand.hbm [shape: bf16[160,384], index: 7, kind: output, shape index: {}]  }
   0x1   :  { %14 = vsyncpa [#allocation5 + $0x1], 0 }
   0x2   :  { %15 = vsyncpa [#allocation6], 0 }
   0x3   :  { %17 = vsyncpa [#allocation6 + $0x1], 0  ;;  %s5324_s24 = smov 0   ;;  %s5326_s25 = smov 0  }
   0x4   :  { %s5328_s26 = smov 0   ;;  %s5330_s27 = smov 0  }
   0x5   :  { %s5332_s28 = smov 0   ;;  %s5334_s29 = smov 0  }
   0x6 LB: > { %6586 = sst [smem:[#allocation11_spill]] %s5264_s26  ;;  %s4328_s30 = sadd.s32 4294967295, %s5276_s29   ;;  %s5276_s29 = sphi %s5334_s29, %s23_s29   ;;  %s5272_s28 = sphi %s5332_s28, %s6599_s28   ;;  %s5268_s27 = sphi %s5330_s27, %s6598_s27   ;;  %s5264_s26 = sphi %s5328_s26, %s6597_s26   ;;  %s5260_s25 = sphi %s5326_s25, %s6601_s25   ;;  %s5256_s24 = sphi %s5324_s24, %s6600_s24  }
   0x7   : > { %6587 = sst [smem:[#allocation12_spill]] %s5272_s28  ;;  %s4329_s8 = sadd.s32 4294967294, %s5276_s29  }
   0x8   : > { %s32_s9 = sadd.s32 1, %s5272_s28  ;;  %s154_s10 = sadd.s32 1, %s5264_s26 }
   0x9   : > { %p33_p0 = scmp.ge.s32.totalorder %s32_s9, 3  ;;  %p161_p1 = scmp.ne.s32.totalorder %s5264_s26, %s5260_s25 }
   0xa   : > { %p162_p2 = scmp.eq.s32.totalorder %s5276_s29, 0  ;;  %p167_p3 = scmp.ne.s32.totalorder %s5260_s25, %s5256_s24 }
   0xb   : > { %s6603_s9 = smov (%p33_p0, %s32_s9), 0  ;;  %p168_p5 = scmp.eq.s32.totalorder %s4328_s30, 0 }
   0xc   : > { %6588 = sst [smem:[#allocation13_spill]] %s6603_s9  ;;  %p5365_p4 = por %p162_p2, %p161_p1 }
   0xd   : > { %s151_s12 = ssub.s32 %s5272_s28, %s6603_s9  ;;  %p245_p6 = scmp.eq.s32.totalorder %s4328_s30, 2 }
   0xe   : > { %p152_p7 = scmp.eq.s32.totalorder %s151_s12, 0  ;;  %p5371_p8 = por %p168_p5, %p167_p3 }
   0xf   : > { %p5375_p9 = por %p245_p6, %p161_p1  ;;  %p251_p10 = scmp.eq.s32.totalorder %s4329_s8, 2 }
  0x10   : > { %s5380_s15 = scalar_select %p152_p7, %s5264_s26, %s154_s10  }
  0x11   : > { %p5382_p11 = por %p251_p10, %p167_p3  ;;  %p4335_p12 = scmp.ge.s32.totalorder %s5276_s29, 3 }
  0x12   : > { %6592 = sst [smem:[#allocation14_spill]] %s5380_s15  ;;  %s331_s17 = sand.u32 (!%p4335_p12), 1, %s5264_s26  }
  0x13   : > { %s6593_s16 = scalar_select %p5382_p11, 1, 0 }
  0x14   : > { %327 = sbr.rel (%p4335_p12) target bundleno = 58 (0x3a), region = 32  ;;  %s4336_s18 = sshll.u32 (!%p4335_p12), %s5272_s28, 2 }
  0x15   : > { %6594 = sst [smem:[#allocation15_spill]] %s6593_s16  ;;  %s5097_s19 = smul.u32 (!%p4335_p12), 180, %s331_s17 }
  0x16   : > { %s339_s22 = scalar_lea.hbm (!%p4335_p12), %s6578_s4, %s4336_s18  ;;  %s332_s10 = scalar_lea.sflag (!%p4335_p12), [#allocation5], %s331_s17 }
  0x17   : > { %s340_s23 = sshll.u32 (!%p4335_p12), %s339_s22, 4  ;;  %s335_s30 = scalar_lea.vmem (!%p4335_p12), [#allocation4], %s5097_s19  ;;  %s341_s23 = int_to_ptr.hbm [resolvable:$true] %s340_s23 }
  0x18   : > { %s342_s8 = sshll.u32 (!%p4335_p12), %s335_s30, 4  ;;  %s5278_s12 = smov (!%p4335_p12), 192   ;;  %s343_s8 = int_to_ptr.vmem [resolvable:$true] %s342_s8 }
  0x19   : > { %s5279_s9 = smov 64   ;;  %s5280_s15 = smov 4  }
  0x1a   : > { %5102 = dma.hbm_to_vmem [thread:$0]  (%p5365_p4), %s341_s23, 2880, %s343_s8, %s332_s10, %s5278_s12, %s5279_s9, %s5280_s15  }
  0x1b   : > { %351 = sbr.rel (!%p5365_p4) target bundleno = 58 (0x3a), region = 40  ;;  %s5399_s20 = scalar_lea.vmem (%p5365_p4), %s6579_s5, %s4336_s18 }
  0x1c   : > { %s5098_s28 = smul.u32 (%p5365_p4), 108, %s331_s17  ;;  %v374_v0 = vld [vmem:[%s5399_s20] sm:$0xf] (%p5365_p4)  ;;  %v376_v1 = vld [vmem:[%s5399_s20 + $0xc] sm:$0xf] (%p5365_p4) }
  0x1d   : > { %v378_v2 = vld [vmem:[%s5399_s20 + $0x18] sm:$0xf] (%p5365_p4)  ;;  %v380_v3 = vld [vmem:[%s5399_s20 + $0x24] sm:$0xf] (%p5365_p4)  ;;  %v382_v4 = vld [vmem:[%s5399_s20 + $0x30] sm:$0xf] (%p5365_p4) }
  0x1e   : > { %s5404_s9 = scalar_lea.vmem (%p5365_p4), [#allocation7], %s5098_s28  ;;  %v384_v5 = vld [vmem:[%s5399_s20 + $0x3c] sm:$0xf] (%p5365_p4)  ;;  %v386_v6 = vld [vmem:[%s5399_s20 + $0x48] sm:$0xf] (%p5365_p4) }
  0x1f   : > { %375 = vst [vmem:[%s5404_s9] sm:$0xf] (%p5365_p4), %v374_v0  ;;  %v388_v7 = vld [vmem:[%s5399_s20 + $0x54] sm:$0xf] (%p5365_p4)  ;;  %v390_v8 = vld [vmem:[%s5399_s20 + $0x60] sm:$0xf] (%p5365_p4) }
  0x20   : > { %377 = vst [vmem:[%s5404_s9 + $0x4] sm:$0xf] %v376_v1  ;;  %v392_v9 = vld [vmem:[%s5399_s20 + $0x6c] sm:$0xf]  ;;  %v394_v10 = vld [vmem:[%s5399_s20 + $0x78] sm:$0xf] }
  0x21   : > { %379 = vst [vmem:[%s5404_s9 + $0x8] sm:$0xf] %v378_v2  ;;  %v396_v11 = vld [vmem:[%s5399_s20 + $0x84] sm:$0xf]  ;;  %v398_v12 = vld [vmem:[%s5399_s20 + $0x90] sm:$0xf] }
  0x22   : > { %381 = vst [vmem:[%s5404_s9 + $0xc] sm:$0xf] %v380_v3  ;;  %v400_v13 = vld [vmem:[%s5399_s20 + $0x9c] sm:$0xf]  ;;  %v402_v14 = vld [vmem:[%s5399_s20 + $0xa8] sm:$0xf] }
  0x23   : > { %383 = vst [vmem:[%s5404_s9 + $0x10] sm:$0xf] %v382_v4  ;;  %v404_v15 = vld [vmem:[%s5399_s20 + $0xb4] sm:$0xf]  ;;  %v406_v16 = vld [vmem:[%s5399_s20 + $0xc0] sm:$0xf] }
  0x24   : > { %385 = vst [vmem:[%s5404_s9 + $0x14] sm:$0xf] %v384_v5  ;;  %v408_v17 = vld [vmem:[%s5399_s20 + $0xcc] sm:$0xf]  ;;  %v410_v18 = vld [vmem:[%s5399_s20 + $0xd8] sm:$0xf] }
  0x25   : > { %387 = vst [vmem:[%s5404_s9 + $0x18] sm:$0xf] %v386_v6  ;;  %v412_v19 = vld [vmem:[%s5399_s20 + $0xe4] sm:$0xf]  ;;  %v414_v20 = vld [vmem:[%s5399_s20 + $0xf0] sm:$0xf] }
  0x26   : > { %389 = vst [vmem:[%s5404_s9 + $0x1c] sm:$0xf] %v388_v7  ;;  %v416_v21 = vld [vmem:[%s5399_s20 + $0xfc] sm:$0xf]  ;;  %v418_v22 = vld [vmem:[%s5399_s20 + $0x108] sm:$0xf] }
  0x27   : > { %391 = vst [vmem:[%s5404_s9 + $0x20] sm:$0xf] %v390_v8  ;;  %v420_v23 = vld [vmem:[%s5399_s20 + $0x114] sm:$0xf]  ;;  %v422_v24 = vld [vmem:[%s5399_s20 + $0x120] sm:$0xf] }
  0x28   : > { %393 = vst [vmem:[%s5404_s9 + $0x24] sm:$0xf] %v392_v9  ;;  %v424_v25 = vld [vmem:[%s5399_s20 + $0x12c] sm:$0xf]  ;;  %v426_v26 = vld [vmem:[%s5399_s20 + $0x138] sm:$0xf] }
  0x29   : > { %395 = vst [vmem:[%s5404_s9 + $0x28] sm:$0xf] %v394_v10 }
  0x2a   : > { %397 = vst [vmem:[%s5404_s9 + $0x2c] sm:$0xf] %v396_v11 }
  0x2b   : > { %399 = vst [vmem:[%s5404_s9 + $0x30] sm:$0xf] %v398_v12 }
  0x2c   : > { %401 = vst [vmem:[%s5404_s9 + $0x34] sm:$0xf] %v400_v13 }
  0x2d   : > { %403 = vst [vmem:[%s5404_s9 + $0x38] sm:$0xf] %v402_v14 }
  0x2e   : > { %405 = vst [vmem:[%s5404_s9 + $0x3c] sm:$0xf] %v404_v15 }
  0x2f   : > { %407 = vst [vmem:[%s5404_s9 + $0x40] sm:$0xf] %v406_v16 }
  0x30   : > { %409 = vst [vmem:[%s5404_s9 + $0x44] sm:$0xf] %v408_v17 }
  0x31   : > { %411 = vst [vmem:[%s5404_s9 + $0x48] sm:$0xf] %v410_v18 }
  0x32   : > { %413 = vst [vmem:[%s5404_s9 + $0x4c] sm:$0xf] %v412_v19 }
  0x33   : > { %415 = vst [vmem:[%s5404_s9 + $0x50] sm:$0xf] %v414_v20 }
  0x34   : > { %417 = vst [vmem:[%s5404_s9 + $0x54] sm:$0xf] %v416_v21 }
  0x35   : > { %419 = vst [vmem:[%s5404_s9 + $0x58] sm:$0xf] %v418_v22 }
  0x36   : > { %421 = vst [vmem:[%s5404_s9 + $0x5c] sm:$0xf] %v420_v23 }
  0x37   : > { %423 = vst [vmem:[%s5404_s9 + $0x60] sm:$0xf] %v422_v24 }
  0x38   : > { %425 = vst [vmem:[%s5404_s9 + $0x64] sm:$0xf] %v424_v25 }
  0x39   : > { %427 = vst [vmem:[%s5404_s9 + $0x68] sm:$0xf] %v426_v26 }
  0x3a PF: > { %p4338_p13 = scmp.ge.s32.totalorder %s5276_s29, 1  ;;  %p510_p0 = scmp.lt.s32.totalorder %s5276_s29, 4 }
  0x3c   : > { %p511_p1 = pnand %p4338_p13, %p510_p0 }
  0x3d   : > { %s5460_s26 = sand.u32 (!%p511_p1), 1, %s5260_s25  }
  0x3e   : > { %514 = sbr.rel (%p511_p1) target bundleno = 1008 (0x3f0), region = 85  ;;  %s517_s11 = scalar_lea.sflag (!%p511_p1), [#allocation5], %s5460_s26 }
  0x3f   : > { %s5099_s28 = smul.u32 (!%p511_p1), 180, %s5460_s26 }
  0x41   : > { %s5464_s15 = scalar_lea.vmem (!%p511_p1), [#allocation4], %s5099_s28 }
  0x43   : > { %5247 = dma.done.wait (%p5371_p8), %s517_s11, 2880  }
  0x44   : > { %5249 = vsyncadd (%p5371_p8), %s517_s11, 4294964416  ;;  %s5100_s16 = smul.u32 108, %s5460_s26  ;;  %p646_p2 = scmp.lt.s32.totalorder %s5268_s27, 2 }
  0x45   : > { %s5101_s17 = smul.u32 80, %s5460_s26  ;;  %p4339_p3 = scmp.ne.s32.totalorder %s5268_s27, 0 }
  0x46   : > { %s5474_s18 = scalar_select %p646_p2, %s5268_s27, 2 }
  0x47   : > { %s5480_s23 = scalar_lea.vmem [#allocation7], %s5100_s16  ;;  %s5482_s30 = scalar_lea.vmem [#allocation8], %s5101_s17 }
  0x48   : > { %s648_s22 = scalar_lea.vmem %s6580_s6, %s5474_s18  ;;  %654 = sbr.rel (%p4339_p3) target bundleno = 128 (0x80), region = 97 }
  0x4d   : > { %v655_v27 = vld [vmem:[%s6574_s0] sm:$0xf]  ;;  %vm675_vm0 = vcmask 322560   ;;  %v656_v28 = vld [vmem:[%s6574_s0 + $0x4] sm:$0xf]  ;;  %vm726_vm1 = vcmask 191488  }
  0x4e   : > { %676 = vst.msk [vmem:[#allocation2] sm:$0xf] %vm675_vm0, %v655_v27  ;;  %v657_v29 = vld [vmem:[%s6574_s0 + $0x8] sm:$0xf]  ;;  %v658_v30 = vld [vmem:[%s6574_s0 + $0xc] sm:$0xf] }
  0x4f   : > { %677 = vst.msk [vmem:[#allocation2 + $0x4] sm:$0xf] %vm675_vm0, %v656_v28  ;;  %v659_v31 = vld [vmem:[%s6574_s0 + $0x10] sm:$0xf]  ;;  %v660_v32 = vld [vmem:[%s6574_s0 + $0x14] sm:$0xf] }
  0x50   : > { %678 = vst.msk [vmem:[#allocation2 + $0x8] sm:$0xf] %vm675_vm0, %v657_v29  ;;  %v661_v33 = vld [vmem:[%s6574_s0 + $0x18] sm:$0xf]  ;;  %v662_v34 = vld [vmem:[%s6574_s0 + $0x1c] sm:$0xf] }
  0x51   : > { %679 = vst.msk [vmem:[#allocation2 + $0xc] sm:$0xf] %vm675_vm0, %v658_v30  ;;  %v663_v35 = vld [vmem:[%s6574_s0 + $0x20] sm:$0xf]  ;;  %v664_v36 = vld [vmem:[%s6574_s0 + $0x24] sm:$0xf] }
  0x52   : > { %680 = vst.msk [vmem:[#allocation2 + $0x10] sm:$0xf] %vm675_vm0, %v659_v31  ;;  %v665_v37 = vld [vmem:[%s6574_s0 + $0x28] sm:$0xf]  ;;  %v666_v38 = vld [vmem:[%s6574_s0 + $0x2c] sm:$0xf] }
  0x53   : > { %681 = vst.msk [vmem:[#allocation2 + $0x14] sm:$0xf] %vm675_vm0, %v660_v32  ;;  %v667_v39 = vld [vmem:[%s6574_s0 + $0x30] sm:$0xf]  ;;  %v668_v40 = vld [vmem:[%s6574_s0 + $0x34] sm:$0xf] }
  0x54   : > { %682 = vst.msk [vmem:[#allocation2 + $0x18] sm:$0xf] %vm675_vm0, %v661_v33  ;;  %v669_v41 = vld [vmem:[%s6574_s0 + $0x38] sm:$0xf]  ;;  %v670_v42 = vld [vmem:[%s6574_s0 + $0x3c] sm:$0xf] }
  0x55   : > { %683 = vst.msk [vmem:[#allocation2 + $0x1c] sm:$0xf] %vm675_vm0, %v662_v34  ;;  %v671_v43 = vld [vmem:[%s6574_s0 + $0x40] sm:$0xf]  ;;  %v672_v44 = vld [vmem:[%s6574_s0 + $0x44] sm:$0xf] }
  0x56   : > { %684 = vst.msk [vmem:[#allocation2 + $0x20] sm:$0xf] %vm675_vm0, %v663_v35  ;;  %v673_v45 = vld [vmem:[%s6574_s0 + $0x48] sm:$0xf]  ;;  %v674_v46 = vld [vmem:[%s6574_s0 + $0x4c] sm:$0xf] }
  0x57   : > { %685 = vst.msk [vmem:[#allocation2 + $0x24] sm:$0xf] %vm675_vm0, %v664_v36  ;;  %v4340_v47 = vld [vmem:[%s6575_s1 + $0x50] sm:$0xf]  ;;  %v4341_v48 = vld [vmem:[%s6575_s1 + $0x54] sm:$0xf] }
  0x58   : > { %686 = vst.msk [vmem:[#allocation2 + $0x28] sm:$0xf] %vm675_vm0, %v665_v37  ;;  %v4342_v49 = vld [vmem:[%s6575_s1 + $0x58] sm:$0xf]  ;;  %v4343_v50 = vld [vmem:[%s6575_s1 + $0x5c] sm:$0xf] }
  0x59   : > { %687 = vst.msk [vmem:[#allocation2 + $0x2c] sm:$0xf] %vm675_vm0, %v666_v38  ;;  %v4344_v51 = vld [vmem:[%s6575_s1 + $0x60] sm:$0xf]  ;;  %v707_v53 = vld [vmem:[%s6576_s2 + $0x4] sm:$0xf] }
  0x5a   : > { %688 = vst.msk [vmem:[#allocation2 + $0x30] sm:$0xf] %vm675_vm0, %v667_v39  ;;  %v706_v52 = vld [vmem:[%s6576_s2] sm:$0xf]  ;;  %v708_v54 = vld [vmem:[%s6576_s2 + $0x8] sm:$0xf] }
  0x5b   : > { %689 = vst.msk [vmem:[#allocation2 + $0x34] sm:$0xf] %vm675_vm0, %v668_v40  ;;  %v709_v55 = vld [vmem:[%s6576_s2 + $0xc] sm:$0xf]  ;;  %v710_v56 = vld [vmem:[%s6576_s2 + $0x10] sm:$0xf] }
  0x5c   : > { %690 = vst.msk [vmem:[#allocation2 + $0x38] sm:$0xf] %vm675_vm0, %v669_v41  ;;  %v711_v57 = vld [vmem:[%s6576_s2 + $0x14] sm:$0xf]  ;;  %v712_v58 = vld [vmem:[%s6576_s2 + $0x18] sm:$0xf] }
  0x5d   : > { %691 = vst.msk [vmem:[#allocation2 + $0x3c] sm:$0xf] %vm675_vm0, %v670_v42  ;;  %v713_v59 = vld [vmem:[%s6576_s2 + $0x1c] sm:$0xf]  ;;  %v714_v60 = vld [vmem:[%s6576_s2 + $0x20] sm:$0xf] }
  0x5e   : > { %692 = vst.msk [vmem:[#allocation2 + $0x40] sm:$0xf] %vm675_vm0, %v671_v43  ;;  %v715_v61 = vld [vmem:[%s6576_s2 + $0x24] sm:$0xf]  ;;  %v716_v62 = vld [vmem:[%s6576_s2 + $0x28] sm:$0xf] }
  0x5f   : > { %693 = vst.msk [vmem:[#allocation2 + $0x44] sm:$0xf] %vm675_vm0, %v672_v44  ;;  %v717_v63 = vld [vmem:[%s6576_s2 + $0x2c] sm:$0xf]  ;;  %v718_v0 = vld [vmem:[%s6576_s2 + $0x30] sm:$0xf] }
  0x60   : > { %694 = vst.msk [vmem:[#allocation2 + $0x48] sm:$0xf] %vm675_vm0, %v673_v45  ;;  %v719_v1 = vld [vmem:[%s6576_s2 + $0x34] sm:$0xf]  ;;  %v720_v2 = vld [vmem:[%s6576_s2 + $0x38] sm:$0xf] }
  0x61   : > { %695 = vst.msk [vmem:[#allocation2 + $0x4c] sm:$0xf] %vm675_vm0, %v674_v46  ;;  %v721_v3 = vld [vmem:[%s6576_s2 + $0x3c] sm:$0xf]  ;;  %v722_v4 = vld [vmem:[%s6576_s2 + $0x40] sm:$0xf] }
  0x62   : > { %701 = vst.msk [vmem:[#allocation2 + $0x50] sm:$0xf] %vm675_vm0, %v4340_v47  ;;  %v723_v5 = vld [vmem:[%s6576_s2 + $0x44] sm:$0xf]  ;;  %v724_v6 = vld [vmem:[%s6576_s2 + $0x48] sm:$0xf] }
  0x63   : > { %702 = vst.msk [vmem:[#allocation2 + $0x54] sm:$0xf] %vm675_vm0, %v4341_v48  ;;  %v725_v7 = vld [vmem:[%s6576_s2 + $0x4c] sm:$0xf]  ;;  %v4345_v8 = vld [vmem:[%s6577_s3 + $0x50] sm:$0xf] }
  0x64   : > { %703 = vst.msk [vmem:[#allocation2 + $0x58] sm:$0xf] %vm675_vm0, %v4342_v49  ;;  %v4346_v9 = vld [vmem:[%s6577_s3 + $0x54] sm:$0xf]  ;;  %v4347_v10 = vld [vmem:[%s6577_s3 + $0x58] sm:$0xf] }
  0x65   : > { %704 = vst.msk [vmem:[#allocation2 + $0x5c] sm:$0xf] %vm675_vm0, %v4343_v50  ;;  %v4348_v11 = vld [vmem:[%s6577_s3 + $0x5c] sm:$0xf]  ;;  %v4349_v12 = vld [vmem:[%s6577_s3 + $0x60] sm:$0xf] }
  0x66   : > { %705 = vst.msk [vmem:[#allocation2 + $0x60] sm:$0xf] %vm675_vm0, %v4344_v51 }
  0x67   : > { %727 = vst.msk [vmem:[#allocation3] sm:$0xf] %vm726_vm1, %v706_v52 }
  0x68   : > { %728 = vst.msk [vmem:[#allocation3 + $0x4] sm:$0xf] %vm726_vm1, %v707_v53 }
  0x69   : > { %729 = vst.msk [vmem:[#allocation3 + $0x8] sm:$0xf] %vm726_vm1, %v708_v54 }
  0x6a   : > { %730 = vst.msk [vmem:[#allocation3 + $0xc] sm:$0xf] %vm726_vm1, %v709_v55 }
  0x6b   : > { %731 = vst.msk [vmem:[#allocation3 + $0x10] sm:$0xf] %vm726_vm1, %v710_v56 }
  0x6c   : > { %732 = vst.msk [vmem:[#allocation3 + $0x14] sm:$0xf] %vm726_vm1, %v711_v57 }
  0x6d   : > { %733 = vst.msk [vmem:[#allocation3 + $0x18] sm:$0xf] %vm726_vm1, %v712_v58 }
  0x6e   : > { %734 = vst.msk [vmem:[#allocation3 + $0x1c] sm:$0xf] %vm726_vm1, %v713_v59 }
  0x6f   : > { %735 = vst.msk [vmem:[#allocation3 + $0x20] sm:$0xf] %vm726_vm1, %v714_v60 }
  0x70   : > { %736 = vst.msk [vmem:[#allocation3 + $0x24] sm:$0xf] %vm726_vm1, %v715_v61 }
  0x71   : > { %737 = vst.msk [vmem:[#allocation3 + $0x28] sm:$0xf] %vm726_vm1, %v716_v62 }
  0x72   : > { %738 = vst.msk [vmem:[#allocation3 + $0x2c] sm:$0xf] %vm726_vm1, %v717_v63 }
  0x73   : > { %739 = vst.msk [vmem:[#allocation3 + $0x30] sm:$0xf] %vm726_vm1, %v718_v0 }
  0x74   : > { %740 = vst.msk [vmem:[#allocation3 + $0x34] sm:$0xf] %vm726_vm1, %v719_v1 }
  0x75   : > { %741 = vst.msk [vmem:[#allocation3 + $0x38] sm:$0xf] %vm726_vm1, %v720_v2 }
  0x76   : > { %742 = vst.msk [vmem:[#allocation3 + $0x3c] sm:$0xf] %vm726_vm1, %v721_v3 }
  0x77   : > { %743 = vst.msk [vmem:[#allocation3 + $0x40] sm:$0xf] %vm726_vm1, %v722_v4 }
  0x78   : > { %744 = vst.msk [vmem:[#allocation3 + $0x44] sm:$0xf] %vm726_vm1, %v723_v5 }
  0x79   : > { %745 = vst.msk [vmem:[#allocation3 + $0x48] sm:$0xf] %vm726_vm1, %v724_v6 }
  0x7a   : > { %746 = vst.msk [vmem:[#allocation3 + $0x4c] sm:$0xf] %vm726_vm1, %v725_v7 }
  0x7b   : > { %752 = vst.msk [vmem:[#allocation3 + $0x50] sm:$0xf] %vm726_vm1, %v4345_v8 }
  0x7c   : > { %753 = vst.msk [vmem:[#allocation3 + $0x54] sm:$0xf] %vm726_vm1, %v4346_v9 }
  0x7d   : > { %754 = vst.msk [vmem:[#allocation3 + $0x58] sm:$0xf] %vm726_vm1, %v4347_v10 }
  0x7e   : > { %755 = vst.msk [vmem:[#allocation3 + $0x5c] sm:$0xf] %vm726_vm1, %v4348_v11 }
  0x7f   : > { %756 = vst.msk [vmem:[#allocation3 + $0x60] sm:$0xf] %vm726_vm1, %v4349_v12 }
  0x80 PF: > { %v4354_v13 = vld [vmem:[%s5464_s15 + $0x24] sm:$0xf]  ;;  %v782_v14 = vld [vmem:[%s5464_s15 + $0x10] sm:$0xf]  ;;  %vm973_vm2 = vcmask 1043456   ;;  %v5689_v18 = vld [vmem:[#allocation2 + $0x30] sm:$0xff] }
  0x81   : > { %v936_v15 = vunpack.c.l.b16 %v4354_v13  ;;  %v1045_v16 = vunpack.c.l.b16 %v782_v14  ;;  %v5687_v17 = vld [vmem:[#allocation2 + $0x28] sm:$0xff]  ;;  %v4435_v19 = vld [vmem:[%s5464_s15 + $0x38] sm:$0xf]  ;;  %v4544_v31 = vld [vmem:[%s5464_s15 + $0x74] sm:$0xf]  ;;  %v891_v36 = vshll.u32 %v5689_v18, 16 }
  0x82   : > { %v5692_v22 = vld [vmem:[#allocation2] sm:$0xff]  ;;  %v5694_v23 = vld [vmem:[#allocation2 + $0x8] sm:$0xff]  ;;  %v883_v25 = vshll.u32 %v5687_v17, 16  ;;  %v1170_v28 = vunpack.c.l.b16 %v4435_v19  ;;  %v887_v35 = vshrl.u32 %v5687_v17, 16  ;;  %v1738_v42 = vunpack.c.l.b16 %v4544_v31  ;;  %v5728_v61 = vld [vmem:[#allocation2 + $0x38] sm:$0xff]  ;;  %s4942_s18 = sshll.u32 %s5268_s27, 2 }
  0x83   : > { %v939_v20 = vpack.c.b16 %v936_v15, %v936_v15  ;;  %v1048_v21 = vpack.c.b16 %v1045_v16, %v1045_v16  ;;  %v4458_v24 = vld [vmem:[%s5464_s15 + $0x4c] sm:$0xf]  ;;  %v4521_v30 = vld [vmem:[%s5464_s15 + $0x60] sm:$0xf]  ;;  %v846_v37 = vshll.u32 %v5692_v22, 16  ;;  %v844_v38 = vshrl.u32 %v5692_v22, 16  ;;  %s4154_s9 = scalar_lea.hbm %s6581_s7, %s4942_s18 }
  0x84   : > { %v1374_v29 = vunpack.c.l.b16 %v4458_v24  ;;  %v4958_v32 = vld [vmem:[%s5464_s15 + $0x1c] sm:$0xff]  ;;  %v4956_v33 = vld [vmem:[%s5464_s15 + $0x8] sm:$0xff]  ;;  %v5704_v34 = vrot.slane %v883_v25, 1  ;;  %v851_v39 = vshll.u32 %v5694_v23, 16  ;;  %v1584_v41 = vunpack.c.l.b16 %v4521_v30  ;;  %v4957_v45 = vld [vmem:[%s5464_s15 + $0x14] sm:$0xff]  ;;  %s4155_s28 = sshll.u32 %s5482_s30, 4  ;;  %s4156_s28 = int_to_ptr.vmem [resolvable:$true] %s4155_s28 }
  0x85   : > { %v975_v26 = vsel %vm973_vm2, %v939_v20, 0  ;;  %v1072_v27 = vsel %vm973_vm2, %v1048_v21, 0  ;;  %v848_v40 = vrot.slane %v846_v37, 1  ;;  %v1173_v43 = vpack.c.b16 %v1170_v28, %v1170_v28  ;;  %v4955_v46 = vld [vmem:[%s5464_s15] sm:$0xff]  ;;  %v4960_v59 = vld [vmem:[%s5464_s15 + $0x30] sm:$0xff]  ;;  %v4974_v63 = vld [vmem:[%s5464_s15 + $0x58] sm:$0xff] }
  0x86   : > { %5091 = vmatpush.bf16.msra.mxu2 %v975_v26  ;;  %5094 = vmatpush.bf16.msra.mxu3 %v1072_v27  ;;  %v1377_v44 = vpack.c.b16 %v1374_v29, %v1374_v29  ;;  %v889_v47 = vor.u32 %v887_v35, %v5704_v34  ;;  %v893_v48 = vrot.slane %v891_v36, 1  ;;  %vm842_vm3 = vsmask.f32 7424  ;;  %v4972_v60 = vld [vmem:[%s5464_s15 + $0x44] sm:$0xff]  ;;  %v4976_v0 = vld [vmem:[%s5464_s15 + $0x6c] sm:$0xff]  ;;  %v4971_v13 = vld [vmem:[%s5464_s15 + $0x3c] sm:$0xff] }
  0x87   : > { %982 = vmatpush.bf16.msra.mxu0 %v975_v26  ;;  %1079 = vmatpush.bf16.msra.mxu1 %v1072_v27  ;;  %v849_v49 = vor.u32 %v848_v40, %v844_v38  ;;  %v853_v50 = vrot.slane %v851_v39, 1  ;;  %v1587_v51 = vpack.c.b16 %v1584_v41, %v1584_v41  ;;  %v1741_v52 = vpack.c.b16 %v1738_v42, %v1738_v42  ;;  %v5730_v62 = vld [vmem:[#allocation2 + $0x10] sm:$0xff]  ;;  %v5746_v11 = vld [vmem:[#allocation2 + $0x40] sm:$0xff]  ;;  %v5750_v14 = vld [vmem:[#allocation2 + $0x18] sm:$0xff]  ;;  %s4157_s11 = sshll.u32 %s4154_s9, 4  ;;  %s4141_s27 = scalar_lea.sflag [#allocation6], %s5460_s26  ;;  %s4158_s11 = int_to_ptr.hbm [resolvable:$true] %s4157_s11 }
  0x88   : > { %v1207_v53 = vsel %vm973_vm2, %v1173_v43, 0  ;;  %v1411_v54 = vsel %vm973_vm2, %v1377_v44, 0  ;;  %v894_v55 = vsel %vm842_vm3, %v889_v47, %v893_v48  ;;  %vm942_vm4 = vcmask 326656   ;;  %v4959_v12 = vld [vmem:[%s5464_s15 + $0x28] sm:$0xff]  ;;  %v4973_v29 = vld [vmem:[%s5464_s15 + $0x50] sm:$0xff]  ;;  %s5208_s16 = sshra.s32 %s4158_s11, 4  ;;  %s5209_s16 = int_to_ptr.hbm [resolvable:$true] %s5208_s16 }
  0x89   : > { %v854_v56 = vsel %vm842_vm3, %v849_v49, %v853_v50  ;;  %v1621_v57 = vsel %vm973_vm2, %v1587_v51, 0  ;;  %v1775_v58 = vsel %vm973_vm2, %v1741_v52, 0  ;;  %v895_v1 = vshrl.u32 %v5689_v18, 16  ;;  %v5765_v30 = vld [vmem:[#allocation2 + $0x48] sm:$0xff]  ;;  %v5770_v35 = vld [vmem:[#allocation2 + $0x20] sm:$0xff]  ;;  %s5210_s17 = scalar_lea.hbm %s5209_s16, 80  ;;  %p5215_p7 = scmp.lt.s32.totalorder %s5209_s16, %s6581_s7 }
  0x8a   : > { %5092 = vmatpush.bf16.msra.mxu2 %v4958_v32  ;;  %5095 = vmatpush.bf16.msra.mxu3 %v4956_v33  ;;  %v899_v2 = vshll.u32 %v5728_v61, 16  ;;  %v855_v3 = vshrl.u32 %v5694_v23, 16  ;;  %v859_v4 = vshll.u32 %v5730_v62, 16  ;;  %v903_v15 = vshrl.u32 %v5728_v61, 16  ;;  %v4975_v31 = vld [vmem:[%s5464_s15 + $0x64] sm:$0xff]  ;;  %p5211_p4 = scmp.ne.s32.totalorder %s5209_s16, %s5210_s17  ;;  %s5214_s13 = scalar_lea.hbm %s6581_s7, 240 }
  0x8b   : > { %983 = vmatpush.bf16.msra.mxu0 %v4958_v32  ;;  %1080 = vmatpush.bf16.msra.mxu1 %v4956_v33  ;;  %v897_v5 = vor.u32 %v895_v1, %v893_v48  ;;  %v907_v16 = vshll.u32 %v5746_v11, 16  ;;  %v863_v19 = vshrl.u32 %v5730_v62, 16  ;;  %v867_v20 = vshll.u32 %v5750_v14, 16  ;;  %v777_v43 = vld [vmem:[#allocation2 + $0x50] sm:$0xf]  ;;  %p5216_p8 = scmp.lt.s32.totalorder %s5214_s13, %s5210_s17 }
  0x8c   : > { %v901_v6 = vrot.slane %v899_v2, 1  ;;  %v857_v7 = vor.u32 %v855_v3, %v853_v50  ;;  %v861_v8 = vrot.slane %v859_v4, 1  ;;  %vm1139_vm5 = vcmask 1046528   ;;  %v4567_v47 = vld [vmem:[%s5464_s15 + $0x88] sm:$0xf]  ;;  %p5212_p5 = pnand %p5211_p4, %p5375_p9 }
  0x8d   : > { %v909_v24 = vrot.slane %v907_v16, 1  ;;  %v869_v26 = vrot.slane %v867_v20, 1  ;;  %v1140_v32 = vrot.slane %v5692_v22, 1  ;;  %v1141_v33 = vrot.slane %v5694_v23, 1  ;;  %v4630_v50 = vld [vmem:[%s5464_s15 + $0x9c] sm:$0xf]  ;;  %p5217_p10 = por %p5216_p8, %p5215_p7 }
  0x8e   : > { %5093 = vmatpush.bf16.msra.mxu2 %v4957_v45  ;;  %5096 = vmatpush.bf16.msra.mxu3 %v4955_v46  ;;  %v902_v9 = vsel %vm842_vm3, %v897_v5, %v901_v6  ;;  %v862_v10 = vsel %vm842_vm3, %v857_v7, %v861_v8  ;;  %v905_v21 = vor.u32 %v903_v15, %v901_v6  ;;  %v911_v37 = vshrl.u32 %v5746_v11, 16  ;;  %v4653_v51 = vld [vmem:[%s5464_s15 + $0xb0] sm:$0xf]  ;;  %v4962_v15 = vld [vmem:[#allocation2 + $0x10] sm:$0xff]  ;;  %p5213_p6 = pneg %p5212_p5 }
  0x8f   : > { %984 = vmatpush.bf16.msra.mxu0 %v4957_v45  ;;  %1081 = vmatpush.bf16.msra.mxu1 %v4955_v46  ;;  %v865_v25 = vor.u32 %v863_v19, %v861_v8  ;;  %v5773_v36 = vsel %vm1139_vm5, %v1140_v32, %v1141_v33  ;;  %v915_v38 = vshll.u32 %v5765_v30, 16  ;;  %v871_v39 = vshrl.u32 %v5750_v14, 16 }
  0x90   : > { %v910_v27 = vsel %vm842_vm3, %v905_v21, %v909_v24  ;;  %v875_v40 = vshll.u32 %v5770_v35, 16  ;;  %v830_v45 = vunpack.c.l.b16 %v777_v43  ;;  %v1942_v49 = vunpack.c.l.b16 %v4567_v47  ;;  %p5218_p12 = pnand %p5217_p10, %p5213_p6 }
  0x91   : > { %4408 = vmatmul.msk.bf16.vlgmr.msra.gmra.mxu2 %vm942_vm4, %v894_v55  ;;  %4426 = vmatmul.msk.bf16.vlgmr.msra.gmra.mxu3 %vm942_vm4, %v5687_v17  ;;  %v870_v28 = vsel %vm842_vm3, %v865_v25, %v869_v26  ;;  %v873_v41 = vor.u32 %v871_v39, %v869_v26  ;;  %v2152_v52 = vunpack.c.l.b16 %v4630_v50  ;;  %v1143_v55 = vrot.slane %v5730_v62, 1 }
  0x92   : > { %1214 = vmatpush.bf16.msrb.mxu2 %v1207_v53  ;;  %1418 = vmatpush.bf16.msrb.mxu3 %v1411_v54  ;;  %v877_v42 = vrot.slane %v875_v40, 1  ;;  %v5788_v48 = vpack.c.b16 %v830_v45, %v830_v45  ;;  %v2306_v53 = vunpack.c.l.b16 %v4653_v51  ;;  %v2447_v54 = vld [vmem:[%s5480_s23 + $0x8] sm:$0xf]  ;;  %v879_v3 = vshrl.u32 %v5770_v35, 16 }
  0x93   : > { %4403 = vmatmul.msk.bf16.vlgmr.msra.gmra.mxu0 %vm942_vm4, %v854_v56  ;;  %4421 = vmatmul.msk.bf16.vlgmr.msra.gmra.mxu1 %vm942_vm4, %v5692_v22  ;;  %v913_v22 = vor.u32 %v911_v37, %v909_v24  ;;  %v1945_v56 = vpack.c.b16 %v1942_v49, %v1942_v49  ;;  %v1507_v21 = vshll.u32 %v4962_v15, 16  ;;  %v1145_v43 = vrot.slane %v5750_v14, 1  ;;  %v4992_v51 = vld [vmem:[%s5464_s15 + $0xa8] sm:$0xff] }
  0x94   : > { %1628 = vmatpush.bf16.msrb.mxu0 %v1621_v57  ;;  %1782 = vmatpush.bf16.msrb.mxu1 %v1775_v58  ;;  %v878_v46 = vsel %vm842_vm3, %v873_v41, %v877_v42  ;;  %v2503_v57 = vunpack.c.l.b16 %v2447_v54  ;;  %v2155_v58 = vpack.c.b16 %v2152_v52, %v2152_v52  ;;  %vm2507_vm6 = vcmask 195584  }
  0x95   : > { %v1979_v1 = vsel %vm973_vm2, %v1945_v56, 0  ;;  %v1509_v25 = vrot.slane %v1507_v21, 1  ;;  %v1146_v47 = vsel %vm1139_vm5, %v1143_v55, %v1145_v43 }
  0x96   : > { %1215 = vmatpush.bf16.msrb.mxu2 %v4960_v59  ;;  %1419 = vmatpush.bf16.msrb.mxu3 %v4972_v60  ;;  %v2309_v59 = vpack.c.b16 %v2306_v53, %v2306_v53  ;;  %v1144_v60 = vsel %vm1139_vm5, %v1141_v33, %v1143_v55  ;;  %v2505_v2 = vpack.c.b16 %v2503_v57, %v2503_v57  ;;  %v2189_v4 = vsel %vm973_vm2, %v2155_v58, 0 }
  0x98   : > { %1629 = vmatpush.bf16.msrb.mxu0 %v4974_v63  ;;  %1783 = vmatpush.bf16.msrb.mxu1 %v4976_v0  ;;  %v919_v63 = vshrl.u32 %v5765_v30, 16  ;;  %v923_v0 = vshll.u32 %v5788_v48, 16  ;;  %v2343_v5 = vsel %vm973_vm2, %v2309_v59, 0  ;;  %v2539_v6 = vsel %vm973_vm2, %v2505_v2, 0 }
  0x9a   : > { %1216 = vmatpush.bf16.msrb.mxu2 %v4959_v12  ;;  %1420 = vmatpush.bf16.msrb.mxu3 %v4971_v13  ;;  %v925_v8 = vrot.slane %v923_v0, 1  ;;  %v4961_v13 = vld [vmem:[#allocation2 + $0x8] sm:$0xff] }
  0x9b   : > { %v1503_v16 = vshll.u32 %v4961_v13, 16  ;;  %v1501_v19 = vshrl.u32 %v4961_v13, 16  ;;  %v1708_v26 = vrot.slane %v4961_v13, 1 }
  0x9c   : > { %1630 = vmatpush.bf16.msrb.mxu0 %v4973_v29  ;;  %1784 = vmatpush.bf16.msrb.mxu1 %v4975_v31  ;;  %v4963_v29 = vld [vmem:[#allocation2 + $0x18] sm:$0xff]  ;;  %v1511_v31 = vshrl.u32 %v4962_v15, 16 }
  0x9d   : > { %v1505_v20 = vrot.slane %v1503_v16, 1  ;;  %v1514_v32 = vshll.u32 %v4963_v29, 16 }
  0x9e   : > { %1986 = vmatpush.bf16.msra.mxu2 %v1979_v1  ;;  %2196 = vmatpush.bf16.msra.mxu3 %v2189_v4  ;;  %v1513_v33 = vor.u32 %v1511_v31, %v1509_v25 }
  0x9f   : > { %v1506_v24 = vor.u32 %v1505_v20, %v1501_v19  ;;  %v1516_v37 = vrot.slane %v1514_v32, 1  ;;  %v5003_v20 = vld [vmem:[%s5480_s23] sm:$0xff] }
  0xa0   : > { %2350 = vmatpush.bf16.msra.mxu0 %v2343_v5  ;;  %2547 = vmatpush.bf16.msra.mxu1 %v2539_v6 }
  0xa1   : > { %4409 = vmatmul.msk.bf16.gmra.mxu2 %vm942_vm4, %v902_v9  ;;  %4427 = vmatmul.msk.bf16.gmra.mxu3 %vm942_vm4, %v5689_v18  ;;  %v881_v9 = vor.u32 %v879_v3, %v877_v42  ;;  %v1517_v39 = vsel %vm842_vm3, %v1513_v33, %v1516_v37  ;;  %v4990_v42 = vld [vmem:[%s5464_s15 + $0x94] sm:$0xff] }
  0xa2   : > { %2197 = vmatpush.bf16.msra.mxu3 %v4990_v42 }
  0xa3   : > { %4404 = vmatmul.msk.bf16.gmra.mxu0 %vm942_vm4, %v862_v10  ;;  %4422 = vmatmul.msk.bf16.gmra.mxu1 %vm942_vm4, %v5694_v23  ;;  %v917_v23 = vrot.slane %v915_v38, 1  ;;  %v886_v12 = vsel %vm842_vm3, %v881_v9, %v5704_v34  ;;  %v1709_v34 = vrot.slane %v4962_v15, 1  ;;  %v1711_v38 = vrot.slane %v4963_v29, 1 }
  0xa4   : > { %2351 = vmatpush.bf16.msra.mxu0 %v4992_v51  ;;  %v1149_v9 = vrot.slane %v5687_v17, 1  ;;  %2548 = vmatpush.bf16.msra.mxu1 %v5003_v20  ;;  %v4967_v17 = vld [vmem:[#allocation2 + $0x38] sm:$0xff] }
  0xa5   : > { %v918_v44 = vsel %vm842_vm3, %v913_v22, %v917_v23  ;;  %v921_v7 = vor.u32 %v919_v63, %v917_v23  ;;  %v1712_v40 = vsel %vm1139_vm5, %v1709_v34, %v1711_v38  ;;  %v4988_v22 = vld [vmem:[%s5464_s15 + $0x80] sm:$0xff]  ;;  %v1518_v23 = vshrl.u32 %v4963_v29, 16 }
  0xa6   : > { %1987 = vmatpush.bf16.msra.mxu2 %v4988_v22 }
  0xa7   : > { %v926_v10 = vsel %vm842_vm3, %v921_v7, %v925_v8 }
  0xb1   : > { %4410 = vmatmul.msk.bf16.gmra.mxu2 %vm942_vm4, %v910_v27  ;;  %4428 = vmatmul.msk.bf16.gmra.mxu3 %vm942_vm4, %v5728_v61  ;;  %v1510_v27 = vsel %vm842_vm3, %v1506_v24, %v1509_v25 }
  0xb3   : > { %4405 = vmatmul.msk.bf16.gmra.mxu0 %vm942_vm4, %v870_v28  ;;  %4423 = vmatmul.msk.bf16.gmra.mxu1 %vm942_vm4, %v5730_v62  ;;  %v1710_v28 = vsel %vm1139_vm5, %v1708_v26, %v1709_v34  ;;  %v1147_v62 = vrot.slane %v5770_v35, 1 }
  0xb5   : > { %v1148_v57 = vsel %vm1139_vm5, %v1145_v43, %v1147_v62  ;;  %v1150_v21 = vsel %vm1139_vm5, %v1147_v62, %v1149_v9 }
  0xc1   : > { %4411 = vmatmul.msk.bf16.gmra.mxu2 %vm942_vm4, %v918_v44  ;;  %4429 = vmatmul.msk.bf16.gmra.mxu3 %vm942_vm4, %v5746_v11  ;;  %v1520_v44 = vor.u32 %v1518_v23, %v1516_v37  ;;  %v1719_v23 = vrot.slane %v4967_v17, 1 }
  0xc3   : > { %4406 = vmatmul.msk.bf16.gmra.mxu0 %vm942_vm4, %v878_v46  ;;  %4424 = vmatmul.msk.bf16.gmra.mxu1 %vm942_vm4, %v5750_v14  ;;  %v4965_v14 = vld [vmem:[#allocation2 + $0x28] sm:$0xff] }
  0xc4   : > { %v1528_v53 = vshll.u32 %v4965_v14, 16  ;;  %v1715_v56 = vrot.slane %v4965_v14, 1  ;;  %v1532_v6 = vshrl.u32 %v4965_v14, 16 }
  0xc6   : > { %v1530_v55 = vrot.slane %v1528_v53, 1 }
  0xd1   : > { %4412 = vmatmul.msk.bf16.gmra.mxu2 %vm942_vm4, %v926_v10  ;;  %4430 = vmatmul.msk.bf16.gmra.mxu3 %vm942_vm4, %v5765_v30  ;;  %v1534_v10 = vor.u32 %v1532_v6, %v1530_v55 }
  0xd3   : > { %4407 = vmatmul.msk.bf16.gmra.mxu0 %vm942_vm4, %v886_v12  ;;  %4425 = vmatmul.msk.bf16.gmra.mxu1 %vm942_vm4, %v5770_v35  ;;  %v4966_v35 = vld [vmem:[#allocation2 + $0x30] sm:$0xff] }
  0xd4   : > { %v1535_v7 = vshll.u32 %v4966_v35, 16  ;;  %v1539_v37 = vshrl.u32 %v4966_v35, 16 }
  0xd6   : > { %v1537_v12 = vrot.slane %v1535_v7, 1 }
  0xd8   : > { %v1538_v26 = vsel %vm842_vm3, %v1534_v10, %v1537_v12 }
  0xe1   : > { %4444 = vmatmul.msk.bf16.vlgmr.msrb.gmra.mxu2 %vm942_vm4, %v5773_v36  ;;  %4507 = vmatmul.msk.bf16.vlgmr.msrb.gmra.mxu3 %vm942_vm4, %v4961_v13  ;;  %v4964_v36 = vld [vmem:[#allocation2 + $0x20] sm:$0xff]  ;;  %v1717_v13 = vrot.slane %v4966_v35, 1 }
  0xe2   : > { %v1521_v41 = vshll.u32 %v4964_v36, 16  ;;  %v1713_v46 = vrot.slane %v4964_v36, 1  ;;  %v1525_v52 = vshrl.u32 %v4964_v36, 16 }
  0xe3   : > { %4530 = vmatmul.msk.bf16.vlgmr.msrb.gmra.mxu0 %vm942_vm4, %v1510_v27  ;;  %4553 = vmatmul.msk.bf16.vlgmr.msrb.gmra.mxu1 %vm942_vm4, %v1710_v28  ;;  %v1718_v34 = vsel %vm1139_vm5, %v1715_v56, %v1717_v13  ;;  %v1720_v51 = vsel %vm1139_vm5, %v1717_v13, %v1719_v23 }
  0xe4   : > { %v1523_v45 = vrot.slane %v1521_v41, 1  ;;  %v1714_v50 = vsel %vm1139_vm5, %v1711_v38, %v1713_v46  ;;  %v1716_v63 = vsel %vm1139_vm5, %v1713_v46, %v1715_v56  ;;  %v1542_v38 = vshll.u32 %v4967_v17, 16 }
  0xe6   : > { %v1524_v49 = vsel %vm842_vm3, %v1520_v44, %v1523_v45  ;;  %v1527_v54 = vor.u32 %v1525_v52, %v1523_v45  ;;  %v1544_v22 = vrot.slane %v1542_v38, 1  ;;  %v4987_v44 = vld [vmem:[%s5464_s15 + $0x78] sm:$0xff]  ;;  %v4989_v45 = vld [vmem:[%s5464_s15 + $0x8c] sm:$0xff] }
  0xe7   : > { %1988 = vmatpush.bf16.msra.mxu2 %v4987_v44  ;;  %2198 = vmatpush.bf16.msra.mxu3 %v4989_v45 }
  0xf1   : > { %4445 = vmatmul.msk.bf16.gmra.mxu2 %vm942_vm4, %v1144_v60  ;;  %4508 = vmatmul.msk.bf16.gmra.mxu3 %vm942_vm4, %v4962_v15  ;;  %v1531_v60 = vsel %vm842_vm3, %v1527_v54, %v1530_v55  ;;  %v4991_v54 = vld [vmem:[%s5464_s15 + $0xa0] sm:$0xff] }
  0xf2   : > { %2352 = vmatpush.bf16.msra.mxu0 %v4991_v54 }
  0xf3   : > { %4531 = vmatmul.msk.bf16.gmra.mxu0 %vm942_vm4, %v1517_v39  ;;  %4554 = vmatmul.msk.bf16.gmra.mxu1 %vm942_vm4, %v1712_v40  ;;  %v1151_v40 = vrot.slane %v5689_v18, 1 }
  0xf5   : > { %v1152_v46 = vsel %vm1139_vm5, %v1149_v9, %v1151_v40 }
 0x101   : > { %4446 = vmatmul.msk.bf16.gmra.mxu2 %vm942_vm4, %v1146_v47  ;;  %4509 = vmatmul.msk.bf16.gmra.mxu3 %vm942_vm4, %v4963_v29 }
 0x103   : > { %4532 = vmatmul.msk.bf16.gmra.mxu0 %vm942_vm4, %v1524_v49  ;;  %4555 = vmatmul.msk.bf16.gmra.mxu1 %vm942_vm4, %v1714_v50 }
 0x110   : > { %v986_v58 = vpop.f32.mrf.mxu0  ;;  %v1083_v59 = vpop.f32.mrf.mxu1 }
 0x111   : > { %v5843_v0 = vadd.f32 %v1083_v59, %v986_v58  ;;  %4447 = vmatmul.msk.bf16.gmra.mxu2 %vm942_vm4, %v1148_v57  ;;  %4510 = vmatmul.msk.bf16.gmra.mxu3 %vm942_vm4, %v4964_v36  ;;  %v1541_v36 = vor.u32 %v1539_v37, %v1537_v12  ;;  %v1546_v57 = vshrl.u32 %v4967_v17, 16 }
 0x113   : > { %4533 = vmatmul.msk.bf16.gmra.mxu0 %vm942_vm4, %v1531_v60  ;;  %4556 = vmatmul.msk.bf16.gmra.mxu1 %vm942_vm4, %v1716_v63  ;;  %v1545_v50 = vsel %vm842_vm3, %v1541_v36, %v1544_v22  ;;  %v1153_v60 = vrot.slane %v5728_v61, 1  ;;  %v1548_v63 = vor.u32 %v1546_v57, %v1544_v22  ;;  %v4969_v61 = vld [vmem:[#allocation2 + $0x48] sm:$0xff] }
 0x114   : > { %v1011_v1 = vpop.f32.mrf.mxu2  ;;  %v1108_v2 = vpop.f32.mrf.mxu3 }
 0x115   : > { %v5849_v3 = vadd.f32 %v1108_v2, %v1011_v1  ;;  %v1154_v6 = vsel %vm1139_vm5, %v1151_v40, %v1153_v60 }
 0x118   : > { %v988_v4 = vpop.f32.mrf.mxu0  ;;  %v1085_v5 = vpop.f32.mrf.mxu1 }
 0x119   : > { %v5851_v8 = vadd.f32 %v1085_v5, %v988_v4 }
 0x11c   : > { %v1013_v15 = vpop.f32.mrf.mxu2  ;;  %v1110_v16 = vpop.f32.mrf.mxu3 }
 0x11d   : > { %v5854_v19 = vadd.f32 %v1110_v16, %v1013_v15 }
 0x120   : > { %v991_v24 = vpop.f32.mrf.mxu0  ;;  %v1088_v25 = vpop.f32.mrf.mxu1 }
 0x121   : > { %v5860_v27 = vadd.f32 %v1088_v25, %v991_v24  ;;  %4448 = vmatmul.msk.bf16.gmra.mxu2 %vm942_vm4, %v1150_v21  ;;  %4511 = vmatmul.msk.bf16.gmra.mxu3 %vm942_vm4, %v4965_v14  ;;  %v4968_v14 = vld [vmem:[#allocation2 + $0x40] sm:$0xff] }
 0x122   : > { %v1549_v58 = vshll.u32 %v4968_v14, 16  ;;  %v1721_v1 = vrot.slane %v4968_v14, 1  ;;  %v1553_v25 = vshrl.u32 %v4968_v14, 16 }
 0x123   : > { %4534 = vmatmul.msk.bf16.gmra.mxu0 %vm942_vm4, %v1538_v26  ;;  %4557 = vmatmul.msk.bf16.gmra.mxu1 %vm942_vm4, %v1718_v34  ;;  %v1556_v26 = vshll.u32 %v4969_v61, 16 }
 0x124   : > { %v1016_v28 = vpop.f32.mrf.mxu2  ;;  %v1113_v29 = vpop.f32.mrf.mxu3  ;;  %v1722_v12 = vsel %vm1139_vm5, %v1719_v23, %v1721_v1 }
 0x125   : > { %v5866_v31 = vadd.f32 %v1113_v29, %v1016_v28  ;;  %v1155_v28 = vrot.slane %v5746_v11, 1  ;;  %v5917_v11 = vld [vmem:[#allocation2 + $0x50] sm:$0xff] }
 0x127   : > { %v1156_v40 = vsel %vm1139_vm5, %v1153_v60, %v1155_v28 }
 0x128   : > { %v993_v32 = vpop.f32.mrf.mxu0  ;;  %v1090_v33 = vpop.f32.mrf.mxu1 }
 0x129   : > { %v5868_v39 = vadd.f32 %v1090_v33, %v993_v32  ;;  %v1558_v32 = vrot.slane %v1556_v26, 1 }
 0x12c   : > { %v1018_v41 = vpop.f32.mrf.mxu2  ;;  %v1115_v42 = vpop.f32.mrf.mxu3 }
 0x12d   : > { %v5871_v43 = vadd.f32 %v1115_v42, %v1018_v41 }
 0x130   : > { %v996_v47 = vpop.f32.mrf.mxu0  ;;  %v1093_v49 = vpop.f32.mrf.mxu1 }
 0x131   : > { %v5878_v18 = vadd.f32 %v1093_v49, %v996_v47  ;;  %4449 = vmatmul.msk.bf16.gmra.mxu2 %vm942_vm4, %v1152_v46  ;;  %4512 = vmatmul.msk.bf16.gmra.mxu3 %vm942_vm4, %v4966_v35  ;;  %v1551_v35 = vrot.slane %v1549_v58, 1  ;;  %v1308_v58 = vld [vmem:[#allocation2 + $0x58] sm:$0xf] }
 0x133   : > { %4535 = vmatmul.msk.bf16.gmra.mxu0 %vm942_vm4, %v1545_v50  ;;  %4558 = vmatmul.msk.bf16.gmra.mxu1 %vm942_vm4, %v1720_v51  ;;  %v1552_v10 = vsel %vm842_vm3, %v1548_v63, %v1551_v35  ;;  %v1555_v29 = vor.u32 %v1553_v25, %v1551_v35  ;;  %v1560_v50 = vshrl.u32 %v4969_v61, 16  ;;  %v1563_v51 = vshll.u32 %v5917_v11, 16 }
 0x134   : > { %v1021_v52 = vpop.f32.mrf.mxu2  ;;  %v1118_v53 = vpop.f32.mrf.mxu3 }
 0x135   : > { %v5884_v62 = vadd.f32 %v1118_v53, %v1021_v52  ;;  %v1559_v23 = vsel %vm842_vm3, %v1555_v29, %v1558_v32  ;;  %v1157_v53 = vrot.slane %v5765_v30, 1  ;;  %v1565_v54 = vrot.slane %v1563_v51, 1 }
 0x136   : > { %v1499_v30 = vunpack.c.l.b16 %v1308_v58 }
 0x137   : > { %v1158_v63 = vsel %vm1139_vm5, %v1155_v28, %v1157_v53 }
 0x138   : > { %v998_v55 = vpop.f32.mrf.mxu0  ;;  %v1095_v56 = vpop.f32.mrf.mxu1 }
 0x139   : > { %v5887_v59 = vadd.f32 %v1095_v56, %v998_v55  ;;  %v1725_v55 = vrot.slane %v5917_v11, 1 }
 0x13c   : > { %v1023_v2 = vpop.f32.mrf.mxu2  ;;  %v1120_v4 = vpop.f32.mrf.mxu3 }
 0x13d   : > { %v5890_v5 = vadd.f32 %v1120_v4, %v1023_v2 }
 0x140   : > { %v1001_v7 = vpop.f32.mrf.mxu0  ;;  %v1098_v9 = vpop.f32.mrf.mxu1 }
 0x141   : > { %v5895_v13 = vadd.f32 %v1098_v9, %v1001_v7  ;;  %4450 = vmatmul.msk.bf16.gmra.mxu2 %vm942_vm4, %v1154_v6  ;;  %4513 = vmatmul.msk.bf16.gmra.mxu3 %vm942_vm4, %v4967_v17  ;;  %v1723_v17 = vrot.slane %v4969_v61, 1  ;;  %v4728_v6 = vld [vmem:[%s5480_s23 + $0x14] sm:$0xf]  ;;  %v4745_v9 = vld [vmem:[%s5480_s23 + $0x20] sm:$0xf] }
 0x142   : > { %v2706_v7 = vunpack.c.l.b16 %v4728_v6 }
 0x143   : > { %4536 = vmatmul.msk.bf16.gmra.mxu0 %vm942_vm4, %v1552_v10  ;;  %4559 = vmatmul.msk.bf16.gmra.mxu1 %vm942_vm4, %v1722_v12  ;;  %v1724_v41 = vsel %vm1139_vm5, %v1721_v1, %v1723_v17  ;;  %v1726_v4 = vsel %vm1139_vm5, %v1723_v17, %v1725_v55  ;;  %v1500_v10 = vpack.c.b16 %v1499_v30, %v1499_v30  ;;  %v2852_v12 = vunpack.c.l.b16 %v4745_v9 }
 0x144   : > { %v1026_v15 = vpop.f32.mrf.mxu2  ;;  %v1123_v16 = vpop.f32.mrf.mxu3 }
 0x145   : > { %v5901_v20 = vadd.f32 %v1123_v16, %v1026_v15  ;;  %v2854_v25 = vpack.c.b16 %v2852_v12, %v2852_v12  ;;  %v1571_v17 = vshll.u32 %v1500_v10, 16 }
 0x148   : > { %v1003_v21 = vpop.f32.mrf.mxu0  ;;  %v1100_v24 = vpop.f32.mrf.mxu1 }
 0x149   : > { %v5903_v34 = vadd.f32 %v1100_v24, %v1003_v21  ;;  %v2708_v21 = vpack.c.b16 %v2706_v7, %v2706_v7 }
 0x14b   : > { %v2741_v26 = vsel %vm973_vm2, %v2708_v21, 0 }
 0x14c   : > { %v1028_v33 = vpop.f32.mrf.mxu2  ;;  %v1125_v37 = vpop.f32.mrf.mxu3  ;;  %2749 = vmatpush.bf16.msrb.mxu2 %v2741_v26 }
 0x14d   : > { %v5906_v38 = vadd.f32 %v1125_v37, %v1028_v33  ;;  %v2887_v33 = vsel %vm973_vm2, %v2854_v25, 0 }
 0x14e   : > { %2895 = vmatpush.bf16.msrb.mxu3 %v2887_v33 }
 0x150   : > { %v1006_v36 = vpop.f32.mrf.mxu0  ;;  %v1103_v22 = vpop.f32.mrf.mxu1 }
 0x151   : > { %v5911_v42 = vadd.f32 %v1103_v22, %v1006_v36  ;;  %4451 = vmatmul.msk.bf16.gmra.mxu2 %vm942_vm4, %v1156_v40  ;;  %4514 = vmatmul.msk.bf16.gmra.mxu3 %vm942_vm4, %v4968_v14  ;;  %v1562_v14 = vor.u32 %v1560_v50, %v1558_v32  ;;  %v1567_v32 = vshrl.u32 %v5917_v11, 16  ;;  %v4762_v40 = vld [vmem:[%s5480_s23 + $0x2c] sm:$0xf]  ;;  %v1159_v36 = vrot.slane %v5788_v48, 1 }
 0x152   : > { %v3048_v22 = vunpack.c.l.b16 %v4762_v40 }
 0x153   : > { %4537 = vmatmul.msk.bf16.gmra.mxu0 %vm942_vm4, %v1559_v23  ;;  %4560 = vmatmul.msk.bf16.gmra.mxu1 %vm942_vm4, %v1724_v41  ;;  %v1566_v2 = vsel %vm842_vm3, %v1562_v14, %v1565_v54  ;;  %v1569_v23 = vor.u32 %v1567_v32, %v1565_v54  ;;  %v1727_v41 = vrot.slane %v1500_v10, 1  ;;  %v1160_v51 = vsel %vm1139_vm5, %v1157_v53, %v1159_v36  ;;  %v4977_v14 = vld [vmem:[#allocation2 + $0x10] sm:$0xff]  ;;  %v4978_v53 = vld [vmem:[#allocation2 + $0x18] sm:$0xff] }
 0x154   : > { %v1031_v44 = vpop.f32.mrf.mxu2  ;;  %v1128_v45 = vpop.f32.mrf.mxu3  ;;  %v2069_v9 = vshrl.u32 %v4977_v14, 16  ;;  %v2075_v12 = vshll.u32 %v4978_v53, 16 }
 0x155   : > { %v5919_v46 = vadd.f32 %v1128_v45, %v1031_v44 }
 0x156   : > { %v2077_v26 = vrot.slane %v2075_v12, 1 }
 0x158   : > { %v1008_v47 = vpop.f32.mrf.mxu0  ;;  %v1105_v49 = vpop.f32.mrf.mxu1 }
 0x159   : > { %v5922_v52 = vadd.f32 %v1105_v49, %v1008_v47  ;;  %v3050_v49 = vpack.c.b16 %v3048_v22, %v3048_v22 }
 0x15c   : > { %v1033_v56 = vpop.f32.mrf.mxu2  ;;  %v1130_v57 = vpop.f32.mrf.mxu3 }
 0x15d   : > { %v5926_v60 = vadd.f32 %v1130_v57, %v1033_v56  ;;  %v3083_v56 = vsel %vm973_vm2, %v3050_v49, 0 }
 0x15e   : > { %3091 = vmatpush.bf16.msrb.mxu0 %v3083_v56 }
 0x160   : > { %v1632_v35 = vpop.f32.mrf.mxu0  ;;  %v1786_v1 = vpop.f32.mrf.mxu1 }
 0x161   : > { %4452 = vmatmul.msk.bf16.gmra.mxu2 %vm942_vm4, %v1158_v63  ;;  %4515 = vmatmul.msk.bf16.gmra.mxu3 %vm942_vm4, %v4969_v61  ;;  %v1728_v63 = vsel %vm1139_vm5, %v1725_v55, %v1727_v41 }
 0x163   : > { %4538 = vmatmul.msk.bf16.gmra.mxu0 %vm942_vm4, %v1566_v2  ;;  %4561 = vmatmul.msk.bf16.gmra.mxu1 %vm942_vm4, %v1726_v4 }
 0x164   : > { %v1218_v15 = vpop.f32.mrf.mxu2  ;;  %v1422_v16 = vpop.f32.mrf.mxu3 }
 0x165   : > { %v1268_v24 = vadd.f32 %v1218_v15, %v5843_v0  ;;  %v1573_v0 = vrot.slane %v1571_v17, 1 }
 0x167   : > { %v1472_v28 = vadd.f32 %v1422_v16, %v1268_v24  ;;  %v1574_v54 = vsel %vm842_vm3, %v1569_v23, %v1573_v0 }
 0x168   : > { %v1634_v61 = vpop.f32.mrf.mxu0  ;;  %v1788_v29 = vpop.f32.mrf.mxu1 }
 0x169   : > { %v1682_v37 = vadd.f32 %v1632_v35, %v1472_v28  ;;  %v2276_v28 = vrot.slane %v4977_v14, 1 }
 0x16b   : > { %v5943_v44 = vadd.f32 %v1786_v1, %v1682_v37  ;;  %v2071_v1 = vshll.u32 %v4977_v14, 16  ;;  %v5964_v37 = vld [vmem:[#allocation3] sm:$0xff] }
 0x16c   : > { %v1220_v45 = vpop.f32.mrf.mxu2  ;;  %v1424_v47 = vpop.f32.mrf.mxu3 }
 0x16d   : > { %v1269_v50 = vadd.f32 %v1220_v45, %v5851_v8  ;;  %v4819_v8 = vld [vmem:[%s5480_s23 + $0x38] sm:$0xf]  ;;  %v2073_v10 = vrot.slane %v2071_v1, 1 }
 0x16e   : > { %v3250_v2 = vunpack.c.l.b16 %v4819_v8 }
 0x16f   : > { %v1473_v57 = vadd.f32 %v1424_v47, %v1269_v50  ;;  %v2074_v25 = vor.u32 %v2073_v10, %v2069_v9  ;;  %v2079_v50 = vshrl.u32 %v4978_v53, 16 }
 0x170   : > { %v1637_v58 = vpop.f32.mrf.mxu0  ;;  %v1791_v48 = vpop.f32.mrf.mxu1  ;;  %v3252_v55 = vpack.c.b16 %v3250_v2, %v3250_v2 }
 0x171   : > { %v1683_v35 = vadd.f32 %v1634_v61, %v1473_v57  ;;  %4453 = vmatmul.msk.bf16.gmra.mxu2 %vm942_vm4, %v1160_v51  ;;  %4516 = vmatmul.msk.bf16.gmra.mxu3 %vm942_vm4, %v5917_v11  ;;  %v2277_v61 = vrot.slane %v4978_v53, 1  ;;  %v2078_v33 = vsel %vm842_vm3, %v2074_v25, %v2077_v26 }
 0x172   : > { %v3285_v11 = vsel %vm973_vm2, %v3252_v55, 0 }
 0x173   : > { %4539 = vmatmul.msk.bf16.gmra.mxu0 %vm942_vm4, %v1574_v54  ;;  %4562 = vmatmul.msk.bf16.gmra.mxu1 %vm942_vm4, %v1728_v63  ;;  %v5956_v4 = vadd.f32 %v1788_v29, %v1683_v35  ;;  %v2278_v23 = vsel %vm1139_vm5, %v2276_v28, %v2277_v61 }
 0x174   : > { %v1223_v30 = vpop.f32.mrf.mxu2  ;;  %v1427_v6 = vpop.f32.mrf.mxu3  ;;  %3293 = vmatpush.bf16.msrb.mxu1 %v3285_v11 }
 0x175   : > { %v1270_v7 = vadd.f32 %v1223_v30, %v5860_v27 }
 0x177   : > { %v1474_v15 = vadd.f32 %v1427_v6, %v1270_v7  ;;  %v5979_v6 = vld [vmem:[#allocation3 + $0x8] sm:$0xff] }
 0x178   : > { %v1639_v16 = vpop.f32.mrf.mxu0  ;;  %v1793_v21 = vpop.f32.mrf.mxu1 }
 0x179   : > { %v1684_v24 = vadd.f32 %v1637_v58, %v1474_v15 }
 0x17b   : > { %v5960_v29 = vadd.f32 %v1791_v48, %v1684_v24  ;;  %v2081_v48 = vor.u32 %v2079_v50, %v2077_v26 }
 0x17c   : > { %v1225_v32 = vpop.f32.mrf.mxu2  ;;  %v1429_v17 = vpop.f32.mrf.mxu3 }
 0x17d   : > { %v1271_v27 = vadd.f32 %v1225_v32, %v5868_v39  ;;  %v4979_v39 = vld [vmem:[#allocation2 + $0x20] sm:$0xff] }
 0x17e   : > { %v2082_v51 = vshll.u32 %v4979_v39, 16  ;;  %v2279_v63 = vrot.slane %v4979_v39, 1 }
 0x17f   : > { %v1475_v40 = vadd.f32 %v1429_v17, %v1271_v27 }
 0x180   : > { %v1642_v36 = vpop.f32.mrf.mxu0  ;;  %v1796_v22 = vpop.f32.mrf.mxu1  ;;  %v2084_v54 = vrot.slane %v2082_v51, 1  ;;  %v2280_v9 = vsel %vm1139_vm5, %v2277_v61, %v2279_v63 }
 0x181   : > { %v1685_v0 = vadd.f32 %v1639_v16, %v1475_v40  ;;  %4616 = vmatmul.msk.bf16.vlgmr.msra.gmra.mxu2 %vm942_vm4, %v4977_v14  ;;  %4639 = vmatmul.msk.bf16.vlgmr.msra.gmra.mxu3 %vm942_vm4, %v2078_v33 }
 0x182   : > { %v2085_v30 = vsel %vm842_vm3, %v2081_v48, %v2084_v54 }
 0x183   : > { %4662 = vmatmul.msk.bf16.vlgmr.msra.gmra.mxu0 %vm942_vm4, %v2278_v23  ;;  %4716 = vmatmul.msk.bf16.vlgmr.msra.gmra.mxu1 %vm2507_vm6, %v5964_v37  ;;  %v5972_v41 = vadd.f32 %v1793_v21, %v1685_v0  ;;  %v2086_v21 = vshrl.u32 %v4979_v39, 16  ;;  %v5994_v23 = vld [vmem:[#allocation3 + $0x10] sm:$0xff] }
 0x184   : > { %v1228_v45 = vpop.f32.mrf.mxu2  ;;  %v1432_v47 = vpop.f32.mrf.mxu3 }
 0x185   : > { %v1272_v49 = vadd.f32 %v1228_v45, %v5878_v18  ;;  %v2088_v61 = vor.u32 %v2086_v21, %v2084_v54 }
 0x187   : > { %v1476_v56 = vadd.f32 %v1432_v47, %v1272_v49 }
 0x188   : > { %v1644_v57 = vpop.f32.mrf.mxu0  ;;  %v1798_v58 = vpop.f32.mrf.mxu1 }
 0x189   : > { %v1686_v14 = vadd.f32 %v1642_v36, %v1476_v56 }
 0x18b   : > { %v5975_v35 = vadd.f32 %v1796_v22, %v1686_v14 }
 0x18c   : > { %v1230_v8 = vpop.f32.mrf.mxu2  ;;  %v1434_v1 = vpop.f32.mrf.mxu3 }
 0x18d   : > { %v1273_v2 = vadd.f32 %v1230_v8, %v5887_v59  ;;  %v4980_v59 = vld [vmem:[#allocation2 + $0x28] sm:$0xff] }
 0x18e   : > { %v2089_v24 = vshll.u32 %v4980_v59, 16  ;;  %v2281_v17 = vrot.slane %v4980_v59, 1 }
 0x18f   : > { %v1477_v18 = vadd.f32 %v1434_v1, %v1273_v2 }
 0x190   : > { %v1647_v55 = vpop.f32.mrf.mxu0  ;;  %v1801_v7 = vpop.f32.mrf.mxu1  ;;  %v2091_v32 = vrot.slane %v2089_v24, 1  ;;  %v2282_v47 = vsel %vm1139_vm5, %v2279_v63, %v2281_v17  ;;  %v5004_v24 = vld [vmem:[%s5480_s23 + $0xc] sm:$0xff] }
 0x191   : > { %v1687_v10 = vadd.f32 %v1644_v57, %v1477_v18  ;;  %4617 = vmatmul.msk.bf16.gmra.mxu2 %vm942_vm4, %v4978_v53  ;;  %4640 = vmatmul.msk.bf16.gmra.mxu3 %vm942_vm4, %v2085_v30 }
 0x192   : > { %v2092_v22 = vsel %vm842_vm3, %v2088_v61, %v2091_v32  ;;  %2750 = vmatpush.bf16.msrb.mxu2 %v5004_v24 }
 0x193   : > { %4663 = vmatmul.msk.bf16.gmra.mxu0 %vm942_vm4, %v2280_v9  ;;  %4717 = vmatmul.msk.bf16.gmra.mxu1 %vm2507_vm6, %v5979_v6  ;;  %v5987_v12 = vadd.f32 %v1798_v58, %v1687_v10  ;;  %v2093_v58 = vshrl.u32 %v4980_v59, 16 }
 0x194   : > { %v1233_v11 = vpop.f32.mrf.mxu2  ;;  %v1437_v15 = vpop.f32.mrf.mxu3 }
 0x195   : > { %v1274_v16 = vadd.f32 %v1233_v11, %v5895_v13  ;;  %v2095_v8 = vor.u32 %v2093_v58, %v2091_v32 }
 0x197   : > { %v1478_v25 = vadd.f32 %v1437_v15, %v1274_v16 }
 0x198   : > { %v1649_v26 = vpop.f32.mrf.mxu0  ;;  %v1803_v28 = vpop.f32.mrf.mxu1 }
 0x199   : > { %v1688_v53 = vadd.f32 %v1647_v55, %v1478_v25  ;;  %v5005_v25 = vld [vmem:[%s5480_s23 + $0x18] sm:$0xff] }
 0x19a   : > { %2896 = vmatpush.bf16.msrb.mxu3 %v5005_v25 }
 0x19b   : > { %v5990_v27 = vadd.f32 %v1801_v7, %v1688_v53 }
 0x19c   : > { %v1235_v33 = vpop.f32.mrf.mxu2  ;;  %v1439_v40 = vpop.f32.mrf.mxu3 }
 0x19d   : > { %v1275_v36 = vadd.f32 %v1235_v33, %v5903_v34  ;;  %v4981_v34 = vld [vmem:[#allocation2 + $0x30] sm:$0xff] }
 0x19e   : > { %v2096_v14 = vshll.u32 %v4981_v34, 16  ;;  %v2283_v2 = vrot.slane %v4981_v34, 1 }
 0x19f   : > { %v1479_v13 = vadd.f32 %v1439_v40, %v1275_v36 }
 0x1a0   : > { %v1652_v0 = vpop.f32.mrf.mxu0  ;;  %v1806_v45 = vpop.f32.mrf.mxu1  ;;  %v2098_v1 = vrot.slane %v2096_v14, 1  ;;  %v2284_v16 = vsel %vm1139_vm5, %v2281_v17, %v2283_v2 }
 0x1a1   : > { %v1689_v49 = vadd.f32 %v1649_v26, %v1479_v13  ;;  %4618 = vmatmul.msk.bf16.gmra.mxu2 %vm942_vm4, %v4979_v39  ;;  %4641 = vmatmul.msk.bf16.gmra.mxu3 %vm942_vm4, %v2092_v22  ;;  %v5016_v22 = vld [vmem:[%s5480_s23 + $0x24] sm:$0xff] }
 0x1a2   : > { %v2099_v9 = vsel %vm842_vm3, %v2095_v8, %v2098_v1  ;;  %3092 = vmatpush.bf16.msrb.mxu0 %v5016_v22 }
 0x1a3   : > { %4664 = vmatmul.msk.bf16.gmra.mxu0 %vm942_vm4, %v2282_v47  ;;  %4718 = vmatmul.msk.bf16.gmra.mxu1 %vm2507_vm6, %v5994_v23  ;;  %v6002_v50 = vadd.f32 %v1803_v28, %v1689_v49 }
 0x1a4   : > { %v1238_v51 = vpop.f32.mrf.mxu2  ;;  %v1442_v56 = vpop.f32.mrf.mxu3 }
 0x1a5   : > { %v1276_v57 = vadd.f32 %v1238_v51, %v5911_v42  ;;  %v6009_v42 = vld [vmem:[#allocation3 + $0x18] sm:$0xff] }
 0x1a7   : > { %v1480_v48 = vadd.f32 %v1442_v56, %v1276_v57  ;;  %v6027_v57 = vld [vmem:[#allocation3 + $0x20] sm:$0xff] }
 0x1a8   : > { %v1654_v54 = vpop.f32.mrf.mxu0  ;;  %v1808_v63 = vpop.f32.mrf.mxu1 }
 0x1a9   : > { %v1690_v39 = vadd.f32 %v1652_v0, %v1480_v48 }
 0x1ab   : > { %v6005_v30 = vadd.f32 %v1806_v45, %v1690_v39  ;;  %v5017_v39 = vld [vmem:[%s5480_s23 + $0x30] sm:$0xff] }
 0x1ac   : > { %v1240_v18 = vpop.f32.mrf.mxu2  ;;  %v1444_v55 = vpop.f32.mrf.mxu3  ;;  %3294 = vmatpush.bf16.msrb.mxu1 %v5017_v39 }
 0x1ad   : > { %v1277_v7 = vadd.f32 %v1240_v18, %v5922_v52  ;;  %v4982_v52 = vld [vmem:[#allocation2 + $0x38] sm:$0xff] }
 0x1ae   : > { %v2103_v32 = vshll.u32 %v4982_v52, 16  ;;  %v2285_v45 = vrot.slane %v4982_v52, 1 }
 0x1af   : > { %v1481_v10 = vadd.f32 %v1444_v55, %v1277_v7 }
 0x1b0   : > { %v1657_v11 = vpop.f32.mrf.mxu0  ;;  %v1811_v15 = vpop.f32.mrf.mxu1  ;;  %v2105_v0 = vrot.slane %v2103_v32, 1 }
 0x1b1   : > { %v1691_v21 = vadd.f32 %v1654_v54, %v1481_v10  ;;  %4619 = vmatmul.msk.bf16.gmra.mxu2 %vm942_vm4, %v4980_v59  ;;  %4642 = vmatmul.msk.bf16.gmra.mxu3 %vm942_vm4, %v2099_v9  ;;  %v2100_v59 = vshrl.u32 %v4981_v34, 16  ;;  %v2286_v54 = vsel %vm1139_vm5, %v2283_v2, %v2285_v45  ;;  %v2107_v2 = vshrl.u32 %v4982_v52, 16 }
 0x1b3   : > { %4665 = vmatmul.msk.bf16.gmra.mxu0 %vm942_vm4, %v2284_v16  ;;  %4719 = vmatmul.msk.bf16.gmra.mxu1 %vm2507_vm6, %v6009_v42  ;;  %v6019_v26 = vadd.f32 %v1808_v63, %v1691_v21  ;;  %v2102_v13 = vor.u32 %v2100_v59, %v2098_v1  ;;  %v6043_v59 = vld [vmem:[#allocation3 + $0x28] sm:$0xff] }
 0x1b4   : > { %v1243_v28 = vpop.f32.mrf.mxu2  ;;  %v1447_v53 = vpop.f32.mrf.mxu3 }
 0x1b5   : > { %v1278_v61 = vadd.f32 %v1243_v28, %v5849_v3  ;;  %v2106_v3 = vsel %vm842_vm3, %v2102_v13, %v2105_v0 }
 0x1b7   : > { %v1482_v17 = vadd.f32 %v1447_v53, %v1278_v61 }
 0x1b8   : > { %v1659_v33 = vpop.f32.mrf.mxu0  ;;  %v1813_v40 = vpop.f32.mrf.mxu1 }
 0x1b9   : > { %v1692_v36 = vadd.f32 %v1657_v11, %v1482_v17 }
 0x1bb   : > { %v6023_v47 = vadd.f32 %v1811_v15, %v1692_v36  ;;  %v2109_v15 = vor.u32 %v2107_v2, %v2105_v0 }
 0x1bc   : > { %v1245_v49 = vpop.f32.mrf.mxu2  ;;  %v1449_v51 = vpop.f32.mrf.mxu3 }
 0x1bd   : > { %v1279_v56 = vadd.f32 %v1245_v49, %v5854_v19  ;;  %v4983_v19 = vld [vmem:[#allocation2 + $0x40] sm:$0xff] }
 0x1be   : > { %v2110_v7 = vshll.u32 %v4983_v19, 16  ;;  %v2287_v21 = vrot.slane %v4983_v19, 1  ;;  %v2114_v49 = vshrl.u32 %v4983_v19, 16 }
 0x1bf   : > { %v1483_v58 = vadd.f32 %v1449_v51, %v1279_v56 }
 0x1c0   : > { %v1662_v14 = vpop.f32.mrf.mxu0  ;;  %v1816_v48 = vpop.f32.mrf.mxu1  ;;  %v2112_v16 = vrot.slane %v2110_v7, 1 }
 0x1c1   : > { %v1693_v63 = vadd.f32 %v1659_v33, %v1483_v58  ;;  %4620 = vmatmul.msk.bf16.gmra.mxu2 %vm942_vm4, %v4981_v34  ;;  %4643 = vmatmul.msk.bf16.gmra.mxu3 %vm942_vm4, %v2106_v3  ;;  %v2288_v33 = vsel %vm1139_vm5, %v2285_v45, %v2287_v21 }
 0x1c2   : > { %v2113_v61 = vsel %vm842_vm3, %v2109_v15, %v2112_v16  ;;  %v2116_v58 = vor.u32 %v2114_v49, %v2112_v16  ;;  %v6073_v49 = vld [vmem:[#allocation3 + $0x38] sm:$0xff] }
 0x1c3   : > { %4666 = vmatmul.msk.bf16.gmra.mxu0 %vm942_vm4, %v2286_v54  ;;  %4720 = vmatmul.msk.bf16.gmra.mxu1 %vm2507_vm6, %v6027_v57  ;;  %v6036_v8 = vadd.f32 %v1813_v40, %v1693_v63 }
 0x1c4   : > { %v1248_v1 = vpop.f32.mrf.mxu2  ;;  %v1452_v18 = vpop.f32.mrf.mxu3 }
 0x1c5   : > { %v1280_v55 = vadd.f32 %v1248_v1, %v5866_v31 }
 0x1c7   : > { %v1484_v9 = vadd.f32 %v1452_v18, %v1280_v55  ;;  %v6058_v55 = vld [vmem:[#allocation3 + $0x30] sm:$0xff] }
 0x1c8   : > { %v1664_v34 = vpop.f32.mrf.mxu0  ;;  %v1818_v10 = vpop.f32.mrf.mxu1 }
 0x1c9   : > { %v1694_v11 = vadd.f32 %v1662_v14, %v1484_v9 }
 0x1cb   : > { %v6039_v24 = vadd.f32 %v1816_v48, %v1694_v11 }
 0x1cc   : > { %v1250_v25 = vpop.f32.mrf.mxu2  ;;  %v1454_v28 = vpop.f32.mrf.mxu3 }
 0x1cd   : > { %v1281_v53 = vadd.f32 %v1250_v25, %v5871_v43  ;;  %v4984_v43 = vld [vmem:[#allocation2 + $0x48] sm:$0xff] }
 0x1ce   : > { %v2117_v51 = vshll.u32 %v4984_v43, 16  ;;  %v2289_v48 = vrot.slane %v4984_v43, 1  ;;  %v2121_v25 = vshrl.u32 %v4984_v43, 16 }
 0x1cf   : > { %v1485_v31 = vadd.f32 %v1454_v28, %v1281_v53 }
 0x1d0   : > { %v1667_v32 = vpop.f32.mrf.mxu0  ;;  %v1821_v17 = vpop.f32.mrf.mxu1  ;;  %v2119_v14 = vrot.slane %v2117_v51, 1  ;;  %v2290_v9 = vsel %vm1139_vm5, %v2287_v21, %v2289_v48 }
 0x1d1   : > { %v1695_v40 = vadd.f32 %v1664_v34, %v1485_v31  ;;  %4621 = vmatmul.msk.bf16.gmra.mxu2 %vm942_vm4, %v4982_v52  ;;  %4644 = vmatmul.msk.bf16.gmra.mxu3 %vm942_vm4, %v2113_v61 }
 0x1d2   : > { %v2120_v18 = vsel %vm842_vm3, %v2116_v58, %v2119_v14  ;;  %v2123_v31 = vor.u32 %v2121_v25, %v2119_v14 }
 0x1d3   : > { %4667 = vmatmul.msk.bf16.gmra.mxu0 %vm942_vm4, %v2288_v33  ;;  %4721 = vmatmul.msk.bf16.gmra.mxu1 %vm2507_vm6, %v6043_v59  ;;  %v6051_v36 = vadd.f32 %v1818_v10, %v1695_v40 }
 0x1d4   : > { %v1253_v22 = vpop.f32.mrf.mxu2  ;;  %v1457_v13 = vpop.f32.mrf.mxu3 }
 0x1d5   : > { %v1282_v0 = vadd.f32 %v1253_v22, %v5884_v62 }
 0x1d7   : > { %v1486_v45 = vadd.f32 %v1457_v13, %v1282_v0 }
 0x1d8   : > { %v1669_v56 = vpop.f32.mrf.mxu0  ;;  %v1823_v3 = vpop.f32.mrf.mxu1 }
 0x1d9   : > { %v1696_v52 = vadd.f32 %v1667_v32, %v1486_v45 }
 0x1db   : > { %v6054_v54 = vadd.f32 %v1821_v17, %v1696_v52 }
 0x1dc   : > { %v1255_v63 = vpop.f32.mrf.mxu2  ;;  %v1459_v39 = vpop.f32.mrf.mxu3 }
 0x1dd   : > { %v1283_v1 = vadd.f32 %v1255_v63, %v5890_v5  ;;  %v4985_v5 = vld [vmem:[#allocation2 + $0x50] sm:$0xff] }
 0x1de   : > { %v2124_v28 = vshll.u32 %v4985_v5, 16  ;;  %v2291_v17 = vrot.slane %v4985_v5, 1 }
 0x1df   : > { %v1487_v62 = vadd.f32 %v1459_v39, %v1283_v1  ;;  %v2128_v39 = vshrl.u32 %v4985_v5, 16 }
 0x1e0   : > { %v1672_v2 = vpop.f32.mrf.mxu0  ;;  %v1826_v7 = vpop.f32.mrf.mxu1  ;;  %v2126_v32 = vrot.slane %v2124_v28, 1  ;;  %v6092_v28 = vld [vmem:[#allocation3 + $0x40] sm:$0xff] }
 0x1e1   : > { %v1697_v34 = vadd.f32 %v1669_v56, %v1487_v62  ;;  %4622 = vmatmul.msk.bf16.gmra.mxu2 %vm942_vm4, %v4983_v19  ;;  %4645 = vmatmul.msk.bf16.gmra.mxu3 %vm942_vm4, %v2120_v18  ;;  %v2292_v56 = vsel %vm1139_vm5, %v2289_v48, %v2291_v17 }
 0x1e2   : > { %v2127_v0 = vsel %vm842_vm3, %v2123_v31, %v2126_v32 }
 0x1e3   : > { %4668 = vmatmul.msk.bf16.gmra.mxu0 %vm942_vm4, %v2290_v9  ;;  %4722 = vmatmul.msk.bf16.gmra.mxu1 %vm2507_vm6, %v6058_v55  ;;  %v6066_v10 = vadd.f32 %v1823_v3, %v1697_v34  ;;  %v1876_v34 = vld [vmem:[#allocation2 + $0x60] sm:$0xf] }
 0x1e4   : > { %v1258_v11 = vpop.f32.mrf.mxu2  ;;  %v1462_v15 = vpop.f32.mrf.mxu3 }
 0x1e5   : > { %v1284_v16 = vadd.f32 %v1258_v11, %v5901_v20 }
 0x1e7   : > { %v1488_v21 = vadd.f32 %v1462_v15, %v1284_v16 }
 0x1e8   : > { %v1674_v53 = vpop.f32.mrf.mxu0  ;;  %v1828_v61 = vpop.f32.mrf.mxu1 }
 0x1e9   : > { %v1698_v19 = vadd.f32 %v1672_v2, %v1488_v21  ;;  %v2130_v2 = vor.u32 %v2128_v39, %v2126_v32  ;;  %v2067_v21 = vunpack.c.l.b16 %v1876_v34 }
 0x1eb   : > { %v6069_v33 = vadd.f32 %v1826_v7, %v1698_v19 }
 0x1ec   : > { %v1260_v40 = vpop.f32.mrf.mxu2  ;;  %v1464_v22 = vpop.f32.mrf.mxu3 }
 0x1ed   : > { %v1285_v13 = vadd.f32 %v1260_v40, %v5906_v38  ;;  %v6081_v38 = vld [vmem:[#allocation2 + $0x58] sm:$0xff]  ;;  %v4836_v40 = vld [vmem:[%s5480_s23 + $0x44] sm:$0xf] }
 0x1ee   : > { %v2131_v48 = vshll.u32 %v6081_v38, 16  ;;  %v2293_v9 = vrot.slane %v6081_v38, 1 }
 0x1ef   : > { %v1489_v20 = vadd.f32 %v1464_v22, %v1285_v13  ;;  %v3396_v22 = vunpack.c.l.b16 %v4836_v40  ;;  %v4853_v13 = vld [vmem:[%s5480_s23 + $0x50] sm:$0xf] }
 0x1f0   : > { %v1677_v51 = vpop.f32.mrf.mxu0  ;;  %v1831_v45 = vpop.f32.mrf.mxu1  ;;  %v2133_v7 = vrot.slane %v2131_v48, 1  ;;  %v2294_v31 = vsel %vm1139_vm5, %v2291_v17, %v2293_v9 }
 0x1f1   : > { %v1699_v3 = vadd.f32 %v1674_v53, %v1489_v20  ;;  %4623 = vmatmul.msk.bf16.gmra.mxu2 %vm942_vm4, %v4984_v43  ;;  %4646 = vmatmul.msk.bf16.gmra.mxu3 %vm942_vm4, %v2127_v0  ;;  %v3592_v0 = vunpack.c.l.b16 %v4853_v13  ;;  %v2629_v13 = vshll.u32 %v5964_v37, 16 }
 0x1f3   : > { %4669 = vmatmul.msk.bf16.gmra.mxu0 %vm942_vm4, %v2292_v56  ;;  %4723 = vmatmul.msk.bf16.gmra.mxu1 %vm2507_vm6, %v6073_v49  ;;  %v6083_v52 = vadd.f32 %v1828_v61, %v1699_v3  ;;  %v3594_v56 = vpack.c.b16 %v3592_v0, %v3592_v0  ;;  %v2135_v3 = vshrl.u32 %v6081_v38, 16 }
 0x1f4   : > { %v1263_v58 = vpop.f32.mrf.mxu2  ;;  %v1467_v14 = vpop.f32.mrf.mxu3 }
 0x1f5   : > { %v1286_v63 = vadd.f32 %v1263_v58, %v5919_v46  ;;  %v2134_v46 = vsel %vm842_vm3, %v2130_v2, %v2133_v7 }
 0x1f7   : > { %v1490_v1 = vadd.f32 %v1467_v14, %v1286_v63 }
 0x1f8   : > { %v1679_v43 = vpop.f32.mrf.mxu0  ;;  %v1833_v18 = vpop.f32.mrf.mxu1 }
 0x1f9   : > { %v1700_v62 = vadd.f32 %v1677_v51, %v1490_v1  ;;  %v3627_v1 = vsel %vm973_vm2, %v3594_v56, 0 }
 0x1fa   : > { %3635 = vmatpush.bf16.msra.mxu3 %v3627_v1 }
 0x1fb   : > { %v6088_v11 = vadd.f32 %v1831_v45, %v1700_v62  ;;  %v3398_v45 = vpack.c.b16 %v3396_v22, %v3396_v22  ;;  %v2137_v62 = vor.u32 %v2135_v3, %v2133_v7  ;;  %v2627_v3 = vshrl.u32 %v5964_v37, 16 }
 0x1fc   : > { %v1265_v15 = vpop.f32.mrf.mxu2  ;;  %v1469_v16 = vpop.f32.mrf.mxu3 }
 0x1fd   : > { %v1287_v25 = vadd.f32 %v1265_v15, %v5926_v60  ;;  %v2068_v60 = vpack.c.b16 %v2067_v21, %v2067_v21  ;;  %v3431_v14 = vsel %vm973_vm2, %v3398_v45, 0 }
 0x1fe   : > { %3439 = vmatpush.bf16.msra.mxu2 %v3431_v14  ;;  %v2633_v14 = vshll.u32 %v5979_v6, 16 }
 0x1ff   : > { %v1491_v53 = vadd.f32 %v1469_v16, %v1287_v25  ;;  %v2139_v58 = vshll.u32 %v2068_v60, 16  ;;  %v2295_v15 = vrot.slane %v2068_v60, 1  ;;  %v6117_v60 = vld [vmem:[#allocation3 + $0x8] sm:$0xff] }
 0x200   : > { %v2354_v61 = vpop.f32.mrf.mxu0  ;;  %v2550_v19 = vpop.f32.mrf.mxu1 }
 0x201   : > { %v1701_v32 = vadd.f32 %v1679_v43, %v1491_v53  ;;  %4624 = vmatmul.msk.bf16.gmra.mxu2 %vm942_vm4, %v4985_v5  ;;  %4647 = vmatmul.msk.bf16.gmra.mxu3 %vm942_vm4, %v2134_v46  ;;  %v2141_v2 = vrot.slane %v2139_v58, 1  ;;  %v2296_v22 = vsel %vm1139_vm5, %v2293_v9, %v2295_v15  ;;  %v3173_v9 = vshll.u32 %v6117_v60, 16 }
 0x202   : > { %v2631_v58 = vrot.slane %v2629_v13, 1  ;;  %v2635_v15 = vrot.slane %v2633_v14, 1 }
 0x203   : > { %4670 = vmatmul.msk.bf16.gmra.mxu0 %vm942_vm4, %v2294_v31  ;;  %4724 = vmatmul.msk.bf16.gmra.mxu1 %vm2507_vm6, %v6092_v28  ;;  %v6102_v20 = vadd.f32 %v1833_v18, %v1701_v32  ;;  %v4910_v18 = vld [vmem:[%s5480_s23 + $0x5c] sm:$0xf]  ;;  %v2142_v53 = vsel %vm842_vm3, %v2137_v62, %v2141_v2  ;;  %v3175_v62 = vrot.slane %v3173_v9, 1 }
 0x204   : > { %v1990_v51 = vpop.f32.mrf.mxu2  ;;  %v2200_v17 = vpop.f32.mrf.mxu3  ;;  %v3794_v34 = vunpack.c.l.b16 %v4910_v18  ;;  %v6113_v31 = vld [vmem:[#allocation3 + $0x48] sm:$0xff]  ;;  %v3171_v18 = vshrl.u32 %v6117_v60, 16 }
 0x205   : > { %v2040_v5 = vadd.f32 %v1990_v51, %v5943_v44  ;;  %v6127_v51 = vld [vmem:[#allocation3 + $0x10] sm:$0xff] }
 0x206   : > { %v3796_v46 = vpack.c.b16 %v3794_v34, %v3794_v34  ;;  %v2632_v34 = vor.u32 %v2631_v58, %v2627_v3 }
 0x207   : > { %v2250_v63 = vadd.f32 %v2200_v17, %v2040_v5 }
 0x208   : > { %v2356_v39 = vpop.f32.mrf.mxu0  ;;  %v2552_v48 = vpop.f32.mrf.mxu1  ;;  %v3829_v32 = vsel %vm973_vm2, %v3796_v46, 0 }
 0x209   : > { %v2404_v43 = vadd.f32 %v2354_v61, %v2250_v63  ;;  %3837 = vmatpush.bf16.msra.mxu0 %v3829_v32 }
 0x20b   : > { %v6109_v44 = vadd.f32 %v2550_v19, %v2404_v43 }
 0x20c   : > { %v1992_v16 = vpop.f32.mrf.mxu2  ;;  %v2202_v25 = vpop.f32.mrf.mxu3 }
 0x20d   : > { %v2041_v21 = vadd.f32 %v1992_v16, %v5956_v4  ;;  %v4927_v4 = vld [vmem:[%s5480_s23 + $0x68] sm:$0xf]  ;;  %v2827_v16 = vrot.slane %v5979_v6, 1 }
 0x20e   : > { %v3940_v0 = vunpack.c.l.b16 %v4927_v4 }
 0x20f   : > { %v2251_v61 = vadd.f32 %v2202_v25, %v2041_v21  ;;  %v3176_v25 = vor.u32 %v3175_v62, %v3171_v18 }
 0x210   : > { %v2359_v40 = vpop.f32.mrf.mxu0  ;;  %v2555_v7 = vpop.f32.mrf.mxu1 }
 0x211   : > { %v2405_v19 = vadd.f32 %v2356_v39, %v2251_v61  ;;  %4625 = vmatmul.msk.bf16.gmra.mxu2 %vm942_vm4, %v6081_v38  ;;  %4648 = vmatmul.msk.bf16.gmra.mxu3 %vm942_vm4, %v2142_v53  ;;  %v3942_v38 = vpack.c.b16 %v3940_v0, %v3940_v0 }
 0x213   : > { %4671 = vmatmul.msk.bf16.gmra.mxu0 %vm942_vm4, %v2296_v22  ;;  %4725 = vmatmul.msk.bf16.gmra.mxu1 %vm2507_vm6, %v6113_v31  ;;  %v6130_v17 = vadd.f32 %v2552_v48, %v2405_v19  ;;  %v3975_v63 = vsel %vm973_vm2, %v3942_v38, 0  ;;  %v3177_v48 = vshll.u32 %v6127_v51, 16  ;;  %v2636_v22 = vsel %vm842_vm3, %v2632_v34, %v2635_v15 }
 0x214   : > { %v1995_v45 = vpop.f32.mrf.mxu2  ;;  %v2205_v5 = vpop.f32.mrf.mxu3  ;;  %3983 = vmatpush.bf16.msra.mxu1 %v3975_v63  ;;  %v2637_v38 = vshrl.u32 %v5979_v6, 16  ;;  %v3181_v63 = vshrl.u32 %v6127_v51, 16 }
 0x215   : > { %v2042_v56 = vadd.f32 %v1995_v45, %v5960_v29  ;;  %v2826_v29 = vrot.slane %v5964_v37, 1  ;;  %v3179_v46 = vrot.slane %v3177_v48, 1 }
 0x216   : > { %v2639_v18 = vor.u32 %v2637_v38, %v2635_v15 }
 0x217   : > { %v2252_v39 = vadd.f32 %v2205_v5, %v2042_v56  ;;  %v2828_v19 = vsel %vm1139_vm5, %v2826_v29, %v2827_v16  ;;  %v3180_v0 = vsel %vm842_vm3, %v3176_v25, %v3179_v46  ;;  %v2640_v56 = vshll.u32 %v5994_v23, 16 }
 0x218   : > { %v2361_v1 = vpop.f32.mrf.mxu0  ;;  %v2557_v43 = vpop.f32.mrf.mxu1  ;;  %v3183_v48 = vor.u32 %v3181_v63, %v3179_v46 }
 0x219   : > { %v2406_v2 = vadd.f32 %v2359_v40, %v2252_v39  ;;  %v2642_v62 = vrot.slane %v2640_v56, 1 }
 0x21b   : > { %v6140_v21 = vadd.f32 %v2555_v7, %v2406_v2  ;;  %v2643_v25 = vsel %vm842_vm3, %v2639_v18, %v2642_v62 }
 0x21c   : > { %v1997_v53 = vpop.f32.mrf.mxu2  ;;  %v2207_v32 = vpop.f32.mrf.mxu3 }
 0x21d   : > { %v2043_v61 = vadd.f32 %v1997_v53, %v5972_v41  ;;  %v6151_v41 = vld [vmem:[#allocation3 + $0x18] sm:$0xff] }
 0x21e   : > { %v3184_v39 = vshll.u32 %v6151_v41, 16 }
 0x21f   : > { %v2253_v4 = vadd.f32 %v2207_v32, %v2043_v61 }
 0x220   : > { %v2364_v40 = vpop.f32.mrf.mxu0  ;;  %v2560_v13 = vpop.f32.mrf.mxu1  ;;  %v3186_v2 = vrot.slane %v3184_v39, 1 }
 0x221   : > { %v2407_v37 = vadd.f32 %v2361_v1, %v2253_v4  ;;  %4733 = vmatmul.msk.bf16.vlgmr.msrb.gmra.mxu2 %vm2507_vm6, %v2636_v22  ;;  %4750 = vmatmul.msk.bf16.vlgmr.msrb.gmra.mxu3 %vm2507_vm6, %v2828_v19 }
 0x222   : > { %v3187_v15 = vsel %vm842_vm3, %v3183_v48, %v3186_v2 }
 0x223   : > { %4807 = vmatmul.msk.bf16.vlgmr.msrb.gmra.mxu0 %vm2507_vm6, %v6117_v60  ;;  %4824 = vmatmul.msk.bf16.vlgmr.msrb.gmra.mxu1 %vm2507_vm6, %v3180_v0  ;;  %v6153_v7 = vadd.f32 %v2557_v43, %v2407_v37  ;;  %v2829_v43 = vrot.slane %v5994_v23, 1  ;;  %v2647_v0 = vshll.u32 %v6009_v42, 16 }
 0x224   : > { %v2000_v9 = vpop.f32.mrf.mxu2  ;;  %v2210_v45 = vpop.f32.mrf.mxu3 }
 0x225   : > { %v2044_v5 = vadd.f32 %v2000_v9, %v5975_v35  ;;  %v2830_v53 = vsel %vm1139_vm5, %v2827_v16, %v2829_v43 }
 0x227   : > { %v2254_v3 = vadd.f32 %v2210_v45, %v2044_v5  ;;  %v3188_v5 = vshrl.u32 %v6151_v41, 16 }
 0x228   : > { %v2366_v58 = vpop.f32.mrf.mxu0  ;;  %v2562_v14 = vpop.f32.mrf.mxu1 }
 0x229   : > { %v2408_v1 = vadd.f32 %v2364_v40, %v2254_v3  ;;  %v3190_v63 = vor.u32 %v3188_v5, %v3186_v2 }
 0x22b   : > { %v6161_v34 = vadd.f32 %v2560_v13, %v2408_v1  ;;  %v2644_v13 = vshrl.u32 %v5994_v23, 16 }
 0x22c   : > { %v2002_v35 = vpop.f32.mrf.mxu2  ;;  %v2212_v6 = vpop.f32.mrf.mxu3 }
 0x22d   : > { %v2045_v29 = vadd.f32 %v2002_v35, %v5987_v12  ;;  %v6172_v12 = vld [vmem:[#allocation3 + $0x20] sm:$0xff]  ;;  %v2646_v3 = vor.u32 %v2644_v13, %v2642_v62 }
 0x22e   : > { %v3191_v38 = vshll.u32 %v6172_v12, 16 }
 0x22f   : > { %v2255_v32 = vadd.f32 %v2212_v6, %v2045_v29 }
 0x230   : > { %v2369_v61 = vpop.f32.mrf.mxu0  ;;  %v2565_v22 = vpop.f32.mrf.mxu1  ;;  %v3193_v39 = vrot.slane %v3191_v38, 1 }
 0x231   : > { %v2409_v19 = vadd.f32 %v2366_v58, %v2255_v32  ;;  %4734 = vmatmul.msk.bf16.gmra.mxu2 %vm2507_vm6, %v2643_v25  ;;  %4751 = vmatmul.msk.bf16.gmra.mxu3 %vm2507_vm6, %v2830_v53  ;;  %v2649_v58 = vrot.slane %v2647_v0, 1 }
 0x232   : > { %v3194_v62 = vsel %vm842_vm3, %v3190_v63, %v3193_v39 }
 0x233   : > { %4808 = vmatmul.msk.bf16.gmra.mxu0 %vm2507_vm6, %v6127_v51  ;;  %4825 = vmatmul.msk.bf16.gmra.mxu1 %vm2507_vm6, %v3187_v15  ;;  %v6174_v46 = vadd.f32 %v2562_v14, %v2409_v19  ;;  %v2831_v14 = vrot.slane %v6009_v42, 1  ;;  %v2650_v48 = vsel %vm842_vm3, %v2646_v3, %v2649_v58  ;;  %v2654_v15 = vshll.u32 %v6027_v57, 16 }
 0x234   : > { %v2005_v16 = vpop.f32.mrf.mxu2  ;;  %v2215_v4 = vpop.f32.mrf.mxu3 }
 0x235   : > { %v2046_v40 = vadd.f32 %v2005_v16, %v5990_v27  ;;  %v2832_v35 = vsel %vm1139_vm5, %v2829_v43, %v2831_v14 }
 0x237   : > { %v2256_v37 = vadd.f32 %v2215_v4, %v2046_v40  ;;  %v3195_v40 = vshrl.u32 %v6172_v12, 16 }
 0x238   : > { %v2371_v9 = vpop.f32.mrf.mxu0  ;;  %v2567_v45 = vpop.f32.mrf.mxu1 }
 0x239   : > { %v2410_v56 = vadd.f32 %v2369_v61, %v2256_v37  ;;  %v3197_v5 = vor.u32 %v3195_v40, %v3193_v39  ;;  %v5018_v39 = vld [vmem:[%s5480_s23 + $0x3c] sm:$0xff]  ;;  %v5030_v40 = vld [vmem:[%s5480_s23 + $0x54] sm:$0xff] }
 0x23a   : > { %3440 = vmatpush.bf16.msra.mxu2 %v5018_v39  ;;  %3838 = vmatpush.bf16.msra.mxu0 %v5030_v40 }
 0x23b   : > { %v6182_v1 = vadd.f32 %v2565_v22, %v2410_v56  ;;  %v2651_v22 = vshrl.u32 %v6009_v42, 16 }
 0x23c   : > { %v2007_v27 = vpop.f32.mrf.mxu2  ;;  %v2217_v23 = vpop.f32.mrf.mxu3 }
 0x23d   : > { %v2047_v18 = vadd.f32 %v2007_v27, %v6002_v50  ;;  %v6193_v50 = vld [vmem:[#allocation3 + $0x28] sm:$0xff]  ;;  %v2653_v37 = vor.u32 %v2651_v22, %v2649_v58 }
 0x23e   : > { %v3198_v13 = vshll.u32 %v6193_v50, 16 }
 0x23f   : > { %v2257_v6 = vadd.f32 %v2217_v23, %v2047_v18 }
 0x240   : > { %v2374_v29 = vpop.f32.mrf.mxu0  ;;  %v2570_v25 = vpop.f32.mrf.mxu1  ;;  %v3200_v38 = vrot.slane %v3198_v13, 1 }
 0x241   : > { %v2411_v53 = vadd.f32 %v2371_v9, %v2257_v6  ;;  %4735 = vmatmul.msk.bf16.gmra.mxu2 %vm2507_vm6, %v2650_v48  ;;  %4752 = vmatmul.msk.bf16.gmra.mxu3 %vm2507_vm6, %v2832_v35  ;;  %v2656_v9 = vrot.slane %v2654_v15, 1  ;;  %v6216_v6 = vld [vmem:[#allocation3 + $0x30] sm:$0xff]  ;;  %v3202_v15 = vshrl.u32 %v6193_v50, 16 }
 0x242   : > { %v3201_v48 = vsel %vm842_vm3, %v3197_v5, %v3200_v38 }
 0x243   : > { %4809 = vmatmul.msk.bf16.gmra.mxu0 %vm2507_vm6, %v6151_v41  ;;  %4826 = vmatmul.msk.bf16.gmra.mxu1 %vm2507_vm6, %v3194_v62  ;;  %v6195_v2 = vadd.f32 %v2567_v45, %v2411_v53  ;;  %v2833_v45 = vrot.slane %v6027_v57, 1  ;;  %v2657_v63 = vsel %vm842_vm3, %v2653_v37, %v2656_v9  ;;  %v2658_v53 = vshrl.u32 %v6027_v57, 16 }
 0x244   : > { %v2010_v43 = vpop.f32.mrf.mxu2  ;;  %v2220_v32 = vpop.f32.mrf.mxu3  ;;  %v3204_v37 = vor.u32 %v3202_v15, %v3200_v38  ;;  %v5031_v38 = vld [vmem:[%s5480_s23 + $0x60] sm:$0xff] }
 0x245   : > { %v2048_v61 = vadd.f32 %v2010_v43, %v6005_v30  ;;  %v2834_v27 = vsel %vm1139_vm5, %v2831_v14, %v2833_v45  ;;  %v2661_v43 = vshll.u32 %v6043_v59, 16  ;;  %3984 = vmatpush.bf16.msra.mxu1 %v5031_v38 }
 0x247   : > { %v2258_v19 = vadd.f32 %v2220_v32, %v2048_v61  ;;  %v2663_v13 = vrot.slane %v2661_v43, 1  ;;  %v3209_v43 = vshrl.u32 %v6216_v6, 16 }
 0x248   : > { %v2376_v16 = vpop.f32.mrf.mxu0  ;;  %v2572_v4 = vpop.f32.mrf.mxu1 }
 0x249   : > { %v2412_v0 = vadd.f32 %v2374_v29, %v2258_v19  ;;  %v3205_v19 = vshll.u32 %v6216_v6, 16 }
 0x24b   : > { %v6203_v30 = vadd.f32 %v2570_v25, %v2412_v0  ;;  %v2835_v0 = vrot.slane %v6043_v59, 1 }
 0x24c   : > { %v2012_v42 = vpop.f32.mrf.mxu2  ;;  %v2222_v56 = vpop.f32.mrf.mxu3 }
 0x24d   : > { %v2049_v3 = vadd.f32 %v2012_v42, %v6019_v26  ;;  %v5029_v26 = vld [vmem:[%s5480_s23 + $0x48] sm:$0xff] }
 0x24e   : > { %3636 = vmatpush.bf16.msra.mxu3 %v5029_v26  ;;  %v2665_v26 = vshrl.u32 %v6043_v59, 16 }
 0x24f   : > { %v2259_v23 = vadd.f32 %v2222_v56, %v2049_v3 }
 0x250   : > { %v2379_v18 = vpop.f32.mrf.mxu0  ;;  %v2575_v58 = vpop.f32.mrf.mxu1  ;;  %v2667_v15 = vor.u32 %v2665_v26, %v2663_v13 }
 0x251   : > { %v2413_v35 = vadd.f32 %v2376_v16, %v2259_v23  ;;  %4736 = vmatmul.msk.bf16.gmra.mxu2 %vm2507_vm6, %v2657_v63  ;;  %4753 = vmatmul.msk.bf16.gmra.mxu3 %vm2507_vm6, %v2834_v27  ;;  %v2836_v63 = vsel %vm1139_vm5, %v2833_v45, %v2835_v0 }
 0x253   : > { %4810 = vmatmul.msk.bf16.gmra.mxu0 %vm2507_vm6, %v6172_v12  ;;  %4827 = vmatmul.msk.bf16.gmra.mxu1 %vm2507_vm6, %v3201_v48  ;;  %v6218_v14 = vadd.f32 %v2572_v4, %v2413_v35  ;;  %v2660_v4 = vor.u32 %v2658_v53, %v2656_v9 }
 0x254   : > { %v2015_v29 = vpop.f32.mrf.mxu2  ;;  %v2225_v25 = vpop.f32.mrf.mxu3 }
 0x255   : > { %v2050_v62 = vadd.f32 %v2015_v29, %v6023_v47  ;;  %v3207_v47 = vrot.slane %v3205_v19, 1  ;;  %v2664_v3 = vsel %vm842_vm3, %v2660_v4, %v2663_v13  ;;  %v2668_v29 = vshll.u32 %v6058_v55, 16 }
 0x257   : > { %v2260_v32 = vadd.f32 %v2225_v25, %v2050_v62  ;;  %v2670_v19 = vrot.slane %v2668_v29, 1 }
 0x258   : > { %v2381_v61 = vpop.f32.mrf.mxu0  ;;  %v2577_v22 = vpop.f32.mrf.mxu1 }
 0x259   : > { %v2414_v16 = vadd.f32 %v2379_v18, %v2260_v32  ;;  %v3208_v18 = vsel %vm842_vm3, %v3204_v37, %v3207_v47 }
 0x25b   : > { %v6227_v57 = vadd.f32 %v2575_v58, %v2414_v16  ;;  %v3211_v16 = vor.u32 %v3209_v43, %v3207_v47 }
 0x25c   : > { %v2017_v5 = vpop.f32.mrf.mxu2  ;;  %v2227_v42 = vpop.f32.mrf.mxu3 }
 0x25d   : > { %v2051_v56 = vadd.f32 %v2017_v5, %v6036_v8  ;;  %v6239_v8 = vld [vmem:[#allocation3 + $0x38] sm:$0xff]  ;;  %v2671_v5 = vsel %vm842_vm3, %v2667_v15, %v2670_v19 }
 0x25e   : > { %v3212_v32 = vshll.u32 %v6239_v8, 16 }
 0x25f   : > { %v2261_v27 = vadd.f32 %v2227_v42, %v2051_v56 }
 0x260   : > { %v2384_v23 = vpop.f32.mrf.mxu0  ;;  %v2580_v9 = vpop.f32.mrf.mxu1  ;;  %v3214_v40 = vrot.slane %v3212_v32, 1 }
 0x261   : > { %v2415_v48 = vadd.f32 %v2381_v61, %v2261_v27  ;;  %4737 = vmatmul.msk.bf16.gmra.mxu2 %vm2507_vm6, %v2664_v3  ;;  %4754 = vmatmul.msk.bf16.gmra.mxu3 %vm2507_vm6, %v2836_v63 }
 0x262   : > { %v3215_v13 = vsel %vm842_vm3, %v3211_v16, %v3214_v40 }
 0x263   : > { %4811 = vmatmul.msk.bf16.gmra.mxu0 %vm2507_vm6, %v6193_v50  ;;  %4828 = vmatmul.msk.bf16.gmra.mxu1 %vm2507_vm6, %v3208_v18  ;;  %v6241_v45 = vadd.f32 %v2577_v22, %v2415_v48  ;;  %v2837_v22 = vrot.slane %v6058_v55, 1  ;;  %v2672_v18 = vshrl.u32 %v6058_v55, 16  ;;  %v2675_v48 = vshll.u32 %v6073_v49, 16 }
 0x264   : > { %v2020_v58 = vpop.f32.mrf.mxu2  ;;  %v2230_v35 = vpop.f32.mrf.mxu3 }
 0x265   : > { %v2052_v39 = vadd.f32 %v2020_v58, %v6039_v24  ;;  %v2838_v42 = vsel %vm1139_vm5, %v2835_v0, %v2837_v22 }
 0x267   : > { %v2262_v25 = vadd.f32 %v2230_v35, %v2052_v39  ;;  %v3216_v39 = vshrl.u32 %v6239_v8, 16 }
 0x268   : > { %v2386_v62 = vpop.f32.mrf.mxu0  ;;  %v2582_v53 = vpop.f32.mrf.mxu1 }
 0x269   : > { %v2416_v61 = vadd.f32 %v2384_v23, %v2262_v25  ;;  %v2674_v25 = vor.u32 %v2672_v18, %v2670_v19  ;;  %v3218_v43 = vor.u32 %v3216_v39, %v3214_v40 }
 0x26b   : > { %v6249_v4 = vadd.f32 %v2580_v9, %v2416_v61 }
 0x26c   : > { %v2022_v24 = vpop.f32.mrf.mxu2  ;;  %v2232_v59 = vpop.f32.mrf.mxu3 }
 0x26d   : > { %v2053_v37 = vadd.f32 %v2022_v24, %v6051_v36  ;;  %v6260_v36 = vld [vmem:[#allocation3 + $0x40] sm:$0xff] }
 0x26e   : > { %v3219_v26 = vshll.u32 %v6260_v36, 16 }
 0x26f   : > { %v2263_v56 = vadd.f32 %v2232_v59, %v2053_v37 }
 0x270   : > { %v2389_v3 = vpop.f32.mrf.mxu0  ;;  %v2585_v63 = vpop.f32.mrf.mxu1  ;;  %v3221_v32 = vrot.slane %v3219_v26, 1 }
 0x271   : > { %v2417_v27 = vadd.f32 %v2386_v62, %v2263_v56  ;;  %4738 = vmatmul.msk.bf16.gmra.mxu2 %vm2507_vm6, %v2671_v5  ;;  %4755 = vmatmul.msk.bf16.gmra.mxu3 %vm2507_vm6, %v2838_v42  ;;  %v2677_v62 = vrot.slane %v2675_v48, 1 }
 0x272   : > { %v3222_v19 = vsel %vm842_vm3, %v3218_v43, %v3221_v32 }
 0x273   : > { %4812 = vmatmul.msk.bf16.gmra.mxu0 %vm2507_vm6, %v6216_v6  ;;  %4829 = vmatmul.msk.bf16.gmra.mxu1 %vm2507_vm6, %v3215_v13  ;;  %v6262_v47 = vadd.f32 %v2582_v53, %v2417_v27  ;;  %v2839_v53 = vrot.slane %v6073_v49, 1  ;;  %v2678_v16 = vsel %vm842_vm3, %v2674_v25, %v2677_v62  ;;  %v2682_v13 = vshll.u32 %v6092_v28, 16 }
 0x274   : > { %v2025_v0 = vpop.f32.mrf.mxu2  ;;  %v2235_v23 = vpop.f32.mrf.mxu3 }
 0x275   : > { %v2054_v9 = vadd.f32 %v2025_v0, %v6054_v54  ;;  %v2840_v24 = vsel %vm1139_vm5, %v2837_v22, %v2839_v53 }
 0x277   : > { %v2264_v38 = vadd.f32 %v2235_v23, %v2054_v9  ;;  %v3223_v9 = vshrl.u32 %v6260_v36, 16 }
 0x278   : > { %v2391_v58 = vpop.f32.mrf.mxu0  ;;  %v2587_v35 = vpop.f32.mrf.mxu1 }
 0x279   : > { %v2418_v29 = vadd.f32 %v2389_v3, %v2264_v38  ;;  %v3225_v39 = vor.u32 %v3223_v9, %v3221_v32 }
 0x27b   : > { %v6270_v61 = vadd.f32 %v2585_v63, %v2418_v29  ;;  %v2679_v63 = vshrl.u32 %v6073_v49, 16 }
 0x27c   : > { %v2027_v54 = vpop.f32.mrf.mxu2  ;;  %v2237_v55 = vpop.f32.mrf.mxu3 }
 0x27d   : > { %v2055_v15 = vadd.f32 %v2027_v54, %v6066_v10  ;;  %v6281_v10 = vld [vmem:[#allocation3 + $0x48] sm:$0xff]  ;;  %v2681_v38 = vor.u32 %v2679_v63, %v2677_v62 }
 0x27e   : > { %v3226_v18 = vshll.u32 %v6281_v10, 16 }
 0x27f   : > { %v2265_v59 = vadd.f32 %v2237_v55, %v2055_v15 }
 0x280   : > { %v2394_v37 = vpop.f32.mrf.mxu0  ;;  %v2590_v5 = vpop.f32.mrf.mxu1  ;;  %v3228_v26 = vrot.slane %v3226_v18, 1 }
 0x281   : > { %v2419_v42 = vadd.f32 %v2391_v58, %v2265_v59  ;;  %4739 = vmatmul.msk.bf16.gmra.mxu2 %vm2507_vm6, %v2678_v16  ;;  %4756 = vmatmul.msk.bf16.gmra.mxu3 %vm2507_vm6, %v2840_v24  ;;  %v2684_v58 = vrot.slane %v2682_v13, 1 }
 0x282   : > { %v3229_v62 = vsel %vm842_vm3, %v3225_v39, %v3228_v26  ;;  %v2988_v39 = vld [vmem:[#allocation3 + $0x58] sm:$0xf] }
 0x283   : > { %4813 = vmatmul.msk.bf16.gmra.mxu0 %vm2507_vm6, %v6239_v8  ;;  %4830 = vmatmul.msk.bf16.gmra.mxu1 %vm2507_vm6, %v3222_v19  ;;  %v6283_v40 = vadd.f32 %v2587_v35, %v2419_v42  ;;  %v2841_v35 = vrot.slane %v6092_v28, 1  ;;  %v2685_v43 = vsel %vm842_vm3, %v2681_v38, %v2684_v58  ;;  %v2689_v19 = vshll.u32 %v6113_v31, 16 }
 0x284   : > { %v2030_v22 = vpop.f32.mrf.mxu2  ;;  %v2240_v56 = vpop.f32.mrf.mxu3 }
 0x285   : > { %v2056_v3 = vadd.f32 %v2030_v22, %v6069_v33  ;;  %v2842_v54 = vsel %vm1139_vm5, %v2839_v53, %v2841_v35 }
 0x287   : > { %v2266_v27 = vadd.f32 %v2240_v56, %v2056_v3  ;;  %v3230_v3 = vshrl.u32 %v6281_v10, 16 }
 0x288   : > { %v2396_v0 = vpop.f32.mrf.mxu0  ;;  %v2592_v23 = vpop.f32.mrf.mxu1 }
 0x289   : > { %v2420_v48 = vadd.f32 %v2394_v37, %v2266_v27  ;;  %v3232_v9 = vor.u32 %v3230_v3, %v3228_v26  ;;  %v3169_v26 = vunpack.c.l.b16 %v2988_v39 }
 0x28b   : > { %v6291_v29 = vadd.f32 %v2590_v5, %v2420_v48  ;;  %v2686_v5 = vshrl.u32 %v6092_v28, 16  ;;  %v2444_v48 = vld [vmem:[#allocation3 + $0x50] sm:$0xf] }
 0x28c   : > { %v2032_v33 = vpop.f32.mrf.mxu2  ;;  %v2242_v49 = vpop.f32.mrf.mxu3 }
 0x28d   : > { %v2057_v25 = vadd.f32 %v2032_v33, %v6083_v52  ;;  %v6302_v52 = vld [vmem:[#allocation3 + $0x50] sm:$0xff]  ;;  %v2688_v27 = vor.u32 %v2686_v5, %v2684_v58 }
 0x28e   : > { %v3233_v63 = vshll.u32 %v6302_v52, 16  ;;  %v3237_v3 = vshrl.u32 %v6302_v52, 16 }
 0x28f   : > { %v2267_v55 = vadd.f32 %v2242_v49, %v2057_v25 }
 0x290   : > { %v2399_v15 = vpop.f32.mrf.mxu0  ;;  %v2595_v16 = vpop.f32.mrf.mxu1  ;;  %v3235_v18 = vrot.slane %v3233_v63, 1 }
 0x291   : > { %v2421_v24 = vadd.f32 %v2396_v0, %v2267_v55  ;;  %4740 = vmatmul.msk.bf16.gmra.mxu2 %vm2507_vm6, %v2685_v43  ;;  %4757 = vmatmul.msk.bf16.gmra.mxu3 %vm2507_vm6, %v2842_v54  ;;  %v2691_v0 = vrot.slane %v2689_v19, 1  ;;  %v2625_v43 = vunpack.c.l.b16 %v2444_v48 }
 0x293   : > { %4814 = vmatmul.msk.bf16.gmra.mxu0 %vm2507_vm6, %v6260_v36  ;;  %4831 = vmatmul.msk.bf16.gmra.mxu1 %vm2507_vm6, %v3229_v62  ;;  %v6304_v32 = vadd.f32 %v2592_v23, %v2421_v24  ;;  %v2843_v23 = vrot.slane %v6113_v31, 1  ;;  %v2692_v49 = vsel %vm842_vm3, %v2688_v27, %v2691_v0 }
 0x294   : > { %v2035_v53 = vpop.f32.mrf.mxu2  ;;  %v2245_v59 = vpop.f32.mrf.mxu3 }
 0x295   : > { %v2058_v37 = vadd.f32 %v2035_v53, %v6088_v11  ;;  %v2844_v25 = vsel %vm1139_vm5, %v2841_v35, %v2843_v23 }
 0x297   : > { %v2268_v42 = vadd.f32 %v2245_v59, %v2058_v37  ;;  %v2693_v37 = vshrl.u32 %v6113_v31, 16 }
 0x298   : > { %v2401_v22 = vpop.f32.mrf.mxu0  ;;  %v2597_v56 = vpop.f32.mrf.mxu1 }
 0x299   : > { %v2422_v13 = vadd.f32 %v2399_v15, %v2268_v42  ;;  %v3236_v15 = vsel %vm842_vm3, %v3232_v9, %v3235_v18  ;;  %v2695_v27 = vor.u32 %v2693_v37, %v2691_v0 }
 0x29b   : > { %v6312_v11 = vadd.f32 %v2595_v16, %v2422_v13  ;;  %v6323_v16 = vpack.c.b16 %v3169_v26, %v3169_v26 }
 0x29c   : > { %v2037_v28 = vpop.f32.mrf.mxu2  ;;  %v2247_v38 = vpop.f32.mrf.mxu3 }
 0x29d   : > { %v2059_v33 = vadd.f32 %v2037_v28, %v6102_v20  ;;  %v2626_v20 = vpack.c.b16 %v2625_v43, %v2625_v43  ;;  %v3241_v63 = vshll.u32 %v6323_v16, 16 }
 0x29f   : > { %v2269_v54 = vadd.f32 %v2247_v38, %v2059_v33  ;;  %v2697_v5 = vshll.u32 %v2626_v20, 16  ;;  %v2845_v48 = vrot.slane %v2626_v20, 1  ;;  %v3243_v28 = vrot.slane %v3241_v63, 1 }
 0x2a0   : > { %v3094_v58 = vpop.f32.mrf.mxu0  ;;  %v3296_v55 = vpop.f32.mrf.mxu1 }
 0x2a1   : > { %v2423_v62 = vadd.f32 %v2401_v22, %v2269_v54  ;;  %4741 = vmatmul.msk.bf16.gmra.mxu2 %vm2507_vm6, %v2692_v49  ;;  %4758 = vmatmul.msk.bf16.gmra.mxu3 %vm2507_vm6, %v2844_v25  ;;  %v2699_v9 = vrot.slane %v2697_v5, 1  ;;  %v2846_v49 = vsel %vm1139_vm5, %v2843_v23, %v2845_v48  ;;  %v5019_v25 = vld [vmem:[#allocation3 + $0x10] sm:$0xff] }
 0x2a2   : > { %v3715_v20 = vshrl.u32 %v5019_v25, 16 }
 0x2a3   : > { %4815 = vmatmul.msk.bf16.gmra.mxu0 %vm2507_vm6, %v6281_v10  ;;  %4832 = vmatmul.msk.bf16.gmra.mxu1 %vm2507_vm6, %v3236_v15  ;;  %v6325_v35 = vadd.f32 %v2597_v56, %v2423_v62  ;;  %v3239_v56 = vor.u32 %v3237_v3, %v3235_v18  ;;  %v2700_v33 = vsel %vm842_vm3, %v2695_v27, %v2699_v9  ;;  %v5020_v18 = vld [vmem:[#allocation3 + $0x18] sm:$0xff]  ;;  %v3371_v3 = vrot.slane %v6127_v51, 1 }
 0x2a4   : > { %v2752_v24 = vpop.f32.mrf.mxu2  ;;  %v2898_v53 = vpop.f32.mrf.mxu3  ;;  %v3721_v5 = vshll.u32 %v5020_v18, 16  ;;  %v3914_v27 = vrot.slane %v5019_v25, 1 }
 0x2a5   : > { %v2802_v59 = vadd.f32 %v2752_v24, %v6109_v44  ;;  %v3244_v0 = vsel %vm842_vm3, %v3239_v56, %v3243_v28 }
 0x2a7   : > { %v2948_v19 = vadd.f32 %v2898_v53, %v2802_v59 }
 0x2a8   : > { %v3096_v42 = vpop.f32.mrf.mxu0  ;;  %v3298_v22 = vpop.f32.mrf.mxu1 }
 0x2a9   : > { %v3144_v13 = vadd.f32 %v3094_v58, %v2948_v19 }
 0x2ab   : > { %v6331_v38 = vadd.f32 %v3296_v55, %v3144_v13  ;;  %v3723_v13 = vrot.slane %v3721_v5, 1 }
 0x2ac   : > { %v2754_v39 = vpop.f32.mrf.mxu2  ;;  %v2900_v44 = vpop.f32.mrf.mxu3 }
 0x2ad   : > { %v2803_v31 = vadd.f32 %v2754_v39, %v6130_v17  ;;  %v3717_v17 = vshll.u32 %v5019_v25, 16 }
 0x2af   : > { %v2949_v43 = vadd.f32 %v2900_v44, %v2803_v31  ;;  %v3719_v24 = vrot.slane %v3717_v17, 1 }
 0x2b0   : > { %v3099_v54 = vpop.f32.mrf.mxu0  ;;  %v3301_v15 = vpop.f32.mrf.mxu1 }
 0x2b1   : > { %v3145_v58 = vadd.f32 %v3096_v42, %v2949_v43  ;;  %4742 = vmatmul.msk.bf16.gmra.mxu2 %vm2507_vm6, %v2700_v33  ;;  %4759 = vmatmul.msk.bf16.gmra.mxu3 %vm2507_vm6, %v2846_v49  ;;  %v3370_v42 = vrot.slane %v6117_v60, 1  ;;  %v3720_v63 = vor.u32 %v3719_v24, %v3715_v20  ;;  %v5021_v49 = vld [vmem:[#allocation3 + $0x20] sm:$0xff]  ;;  %v3373_v20 = vrot.slane %v6151_v41, 1  ;;  %v5022_v41 = vld [vmem:[#allocation3 + $0x28] sm:$0xff] }
 0x2b3   : > { %4816 = vmatmul.msk.bf16.gmra.mxu0 %vm2507_vm6, %v6302_v52  ;;  %4833 = vmatmul.msk.bf16.gmra.mxu1 %vm2507_vm6, %v3244_v0  ;;  %v6342_v55 = vadd.f32 %v3298_v22, %v3145_v58  ;;  %v3915_v22 = vrot.slane %v5020_v18, 1  ;;  %v3372_v28 = vsel %vm1139_vm5, %v3370_v42, %v3371_v3  ;;  %v3724_v33 = vsel %vm842_vm3, %v3720_v63, %v3723_v13 }
 0x2b4   : > { %v2757_v23 = vpop.f32.mrf.mxu2  ;;  %v2903_v26 = vpop.f32.mrf.mxu3  ;;  %v3374_v42 = vsel %vm1139_vm5, %v3371_v3, %v3373_v20 }
 0x2b5   : > { %v2804_v62 = vadd.f32 %v2757_v23, %v6140_v21  ;;  %v3916_v60 = vsel %vm1139_vm5, %v3914_v27, %v3915_v22  ;;  %v3725_v23 = vshrl.u32 %v5020_v18, 16 }
 0x2b7   : > { %v2950_v53 = vadd.f32 %v2903_v26, %v2804_v62  ;;  %v3728_v26 = vshll.u32 %v5021_v49, 16 }
 0x2b8   : > { %v3101_v59 = vpop.f32.mrf.mxu0  ;;  %v3303_v37 = vpop.f32.mrf.mxu1 }
 0x2b9   : > { %v3146_v19 = vadd.f32 %v3099_v54, %v2950_v53  ;;  %v3730_v24 = vrot.slane %v3728_v26, 1  ;;  %v3917_v53 = vrot.slane %v5021_v49, 1 }
 0x2bb   : > { %v6347_v9 = vadd.f32 %v3301_v15, %v3146_v19 }
 0x2bc   : > { %v2759_v48 = vpop.f32.mrf.mxu2  ;;  %v2905_v56 = vpop.f32.mrf.mxu3 }
 0x2bd   : > { %v2805_v21 = vadd.f32 %v2759_v48, %v6153_v7 }
 0x2bf   : > { %v2951_v39 = vadd.f32 %v2905_v56, %v2805_v21  ;;  %v3918_v56 = vsel %vm1139_vm5, %v3915_v22, %v3917_v53  ;;  %v3732_v22 = vshrl.u32 %v5021_v49, 16 }
 0x2c0   : > { %v3104_v44 = vpop.f32.mrf.mxu0  ;;  %v3306_v31 = vpop.f32.mrf.mxu1 }
 0x2c1   : > { %v3147_v51 = vadd.f32 %v3101_v59, %v2951_v39  ;;  %4841 = vmatmul.msk.bf16.vlgmr.msra.gmra.mxu2 %vm2507_vm6, %v3372_v28  ;;  %4898 = vmatmul.msk.bf16.vlgmr.msra.gmra.mxu3 %vm2507_vm6, %v5019_v25  ;;  %v3727_v25 = vor.u32 %v3725_v23, %v3723_v13 }
 0x2c3   : > { %4915 = vmatmul.msk.bf16.vlgmr.msra.gmra.mxu0 %vm2507_vm6, %v3724_v33  ;;  %4932 = vmatmul.msk.bf16.vlgmr.msra.gmra.mxu1 %vm2507_vm6, %v3916_v60  ;;  %v6357_v7 = vadd.f32 %v3303_v37, %v3147_v51  ;;  %v3731_v48 = vsel %vm842_vm3, %v3727_v25, %v3730_v24  ;;  %v3735_v33 = vshll.u32 %v5022_v41, 16  ;;  %v3375_v51 = vrot.slane %v6172_v12, 1  ;;  %v5023_v12 = vld [vmem:[#allocation3 + $0x30] sm:$0xff] }
 0x2c4   : > { %v2762_v43 = vpop.f32.mrf.mxu2  ;;  %v2908_v54 = vpop.f32.mrf.mxu3 }
 0x2c5   : > { %v2806_v15 = vadd.f32 %v2762_v43, %v6161_v34  ;;  %v3737_v43 = vrot.slane %v3735_v33, 1  ;;  %v3376_v23 = vsel %vm1139_vm5, %v3373_v20, %v3375_v51 }
 0x2c7   : > { %v2952_v0 = vadd.f32 %v2908_v54, %v2806_v15  ;;  %v3919_v54 = vrot.slane %v5022_v41, 1 }
 0x2c8   : > { %v3106_v58 = vpop.f32.mrf.mxu0  ;;  %v3308_v17 = vpop.f32.mrf.mxu1 }
 0x2c9   : > { %v3148_v62 = vadd.f32 %v3104_v44, %v2952_v0 }
 0x2cb   : > { %v6361_v59 = vadd.f32 %v3306_v31, %v3148_v62 }
 0x2cc   : > { %v2764_v5 = vpop.f32.mrf.mxu2  ;;  %v2910_v37 = vpop.f32.mrf.mxu3 }
 0x2cd   : > { %v2807_v19 = vadd.f32 %v2764_v5, %v6174_v46  ;;  %v3920_v5 = vsel %vm1139_vm5, %v3917_v53, %v3919_v54  ;;  %v3739_v53 = vshrl.u32 %v5022_v41, 16 }
 0x2cf   : > { %v2953_v34 = vadd.f32 %v2910_v37, %v2807_v19 }
 0x2d0   : > { %v3109_v63 = vpop.f32.mrf.mxu0  ;;  %v3311_v27 = vpop.f32.mrf.mxu1 }
 0x2d1   : > { %v3149_v21 = vadd.f32 %v3106_v58, %v2953_v34  ;;  %4842 = vmatmul.msk.bf16.gmra.mxu2 %vm2507_vm6, %v3374_v42  ;;  %4899 = vmatmul.msk.bf16.gmra.mxu3 %vm2507_vm6, %v5020_v18  ;;  %v3734_v18 = vor.u32 %v3732_v22, %v3730_v24 }
 0x2d3   : > { %4916 = vmatmul.msk.bf16.gmra.mxu0 %vm2507_vm6, %v3731_v48  ;;  %4933 = vmatmul.msk.bf16.gmra.mxu1 %vm2507_vm6, %v3918_v56  ;;  %v6371_v46 = vadd.f32 %v3308_v17, %v3149_v21  ;;  %v3738_v25 = vsel %vm842_vm3, %v3734_v18, %v3737_v43  ;;  %v3377_v56 = vrot.slane %v6193_v50, 1  ;;  %v5024_v50 = vld [vmem:[#allocation3 + $0x38] sm:$0xff] }
 0x2d4   : > { %v2767_v3 = vpop.f32.mrf.mxu2  ;;  %v2913_v13 = vpop.f32.mrf.mxu3 }
 0x2d5   : > { %v2808_v28 = vadd.f32 %v2767_v3, %v6182_v1  ;;  %v3921_v3 = vrot.slane %v5023_v12, 1 }
 0x2d7   : > { %v2954_v39 = vadd.f32 %v2913_v13, %v2808_v28  ;;  %v3922_v18 = vsel %vm1139_vm5, %v3919_v54, %v3921_v3  ;;  %v3746_v54 = vshrl.u32 %v5023_v12, 16 }
 0x2d8   : > { %v3111_v44 = vpop.f32.mrf.mxu0  ;;  %v3313_v31 = vpop.f32.mrf.mxu1 }
 0x2d9   : > { %v3150_v60 = vadd.f32 %v3109_v63, %v2954_v39 }
 0x2db   : > { %v6375_v15 = vadd.f32 %v3311_v27, %v3150_v60  ;;  %v3742_v27 = vshll.u32 %v5023_v12, 16 }
 0x2dc   : > { %v2769_v0 = vpop.f32.mrf.mxu2  ;;  %v2915_v58 = vpop.f32.mrf.mxu3 }
 0x2dd   : > { %v2809_v17 = vadd.f32 %v2769_v0, %v6195_v2  ;;  %v3744_v21 = vrot.slane %v3742_v27, 1 }
 0x2df   : > { %v2955_v1 = vadd.f32 %v2915_v58, %v2809_v17 }
 0x2e0   : > { %v3114_v26 = vpop.f32.mrf.mxu0  ;;  %v3316_v62 = vpop.f32.mrf.mxu1 }
 0x2e1   : > { %v3151_v37 = vadd.f32 %v3111_v44, %v2955_v1  ;;  %4843 = vmatmul.msk.bf16.gmra.mxu2 %vm2507_vm6, %v3376_v23  ;;  %4900 = vmatmul.msk.bf16.gmra.mxu3 %vm2507_vm6, %v5021_v49  ;;  %v3741_v49 = vor.u32 %v3739_v53, %v3737_v43 }
 0x2e3   : > { %4917 = vmatmul.msk.bf16.gmra.mxu0 %vm2507_vm6, %v3738_v25  ;;  %4934 = vmatmul.msk.bf16.gmra.mxu1 %vm2507_vm6, %v3920_v5  ;;  %v6385_v2 = vadd.f32 %v3313_v31, %v3151_v37  ;;  %v3378_v31 = vsel %vm1139_vm5, %v3375_v51, %v3377_v56  ;;  %v3745_v60 = vsel %vm842_vm3, %v3741_v49, %v3744_v21  ;;  %v3379_v25 = vrot.slane %v6216_v6, 1  ;;  %v5025_v6 = vld [vmem:[#allocation3 + $0x40] sm:$0xff] }
 0x2e4   : > { %v2772_v20 = vpop.f32.mrf.mxu2  ;;  %v2918_v24 = vpop.f32.mrf.mxu3  ;;  %v3923_v37 = vrot.slane %v5024_v50, 1 }
 0x2e5   : > { %v2810_v19 = vadd.f32 %v2772_v20, %v6203_v30 }
 0x2e7   : > { %v2956_v42 = vadd.f32 %v2918_v24, %v2810_v19 }
 0x2e8   : > { %v3116_v34 = vpop.f32.mrf.mxu0  ;;  %v3318_v63 = vpop.f32.mrf.mxu1 }
 0x2e9   : > { %v3152_v48 = vadd.f32 %v3114_v26, %v2956_v42  ;;  %v3749_v26 = vshll.u32 %v5024_v50, 16 }
 0x2eb   : > { %v6389_v13 = vadd.f32 %v3316_v62, %v3152_v48  ;;  %v3751_v5 = vrot.slane %v3749_v26, 1  ;;  %v3924_v48 = vsel %vm1139_vm5, %v3921_v3, %v3923_v37  ;;  %v3753_v3 = vshrl.u32 %v5024_v50, 16 }
 0x2ec   : > { %v2774_v28 = vpop.f32.mrf.mxu2  ;;  %v2920_v39 = vpop.f32.mrf.mxu3 }
 0x2ed   : > { %v2811_v44 = vadd.f32 %v2774_v28, %v6218_v14 }
 0x2ef   : > { %v2957_v30 = vadd.f32 %v2920_v39, %v2811_v44 }
 0x2f0   : > { %v3119_v22 = vpop.f32.mrf.mxu0  ;;  %v3321_v33 = vpop.f32.mrf.mxu1 }
 0x2f1   : > { %v3153_v0 = vadd.f32 %v3116_v34, %v2957_v30  ;;  %4844 = vmatmul.msk.bf16.gmra.mxu2 %vm2507_vm6, %v3378_v31  ;;  %4901 = vmatmul.msk.bf16.gmra.mxu3 %vm2507_vm6, %v5022_v41  ;;  %v3748_v41 = vor.u32 %v3746_v54, %v3744_v21  ;;  %v3380_v34 = vsel %vm1139_vm5, %v3377_v56, %v3379_v25  ;;  %v3756_v30 = vshll.u32 %v5025_v6, 16 }
 0x2f3   : > { %4918 = vmatmul.msk.bf16.gmra.mxu0 %vm2507_vm6, %v3745_v60  ;;  %4935 = vmatmul.msk.bf16.gmra.mxu1 %vm2507_vm6, %v3922_v18  ;;  %v6399_v14 = vadd.f32 %v3318_v63, %v3153_v0  ;;  %v3752_v27 = vsel %vm842_vm3, %v3748_v41, %v3751_v5  ;;  %v3758_v60 = vrot.slane %v3756_v30, 1  ;;  %v3925_v18 = vrot.slane %v5025_v6, 1 }
 0x2f4   : > { %v2777_v51 = vpop.f32.mrf.mxu2  ;;  %v2923_v43 = vpop.f32.mrf.mxu3 }
 0x2f5   : > { %v2812_v58 = vadd.f32 %v2777_v51, %v6227_v57  ;;  %v3926_v26 = vsel %vm1139_vm5, %v3923_v37, %v3925_v18  ;;  %v3760_v37 = vshrl.u32 %v5025_v6, 16 }
 0x2f7   : > { %v2958_v17 = vadd.f32 %v2923_v43, %v2812_v58 }
 0x2f8   : > { %v3121_v23 = vpop.f32.mrf.mxu0  ;;  %v3323_v1 = vpop.f32.mrf.mxu1 }
 0x2f9   : > { %v3154_v62 = vadd.f32 %v3119_v22, %v2958_v17 }
 0x2fb   : > { %v6403_v20 = vadd.f32 %v3321_v33, %v3154_v62  ;;  %v3381_v33 = vrot.slane %v6239_v8, 1  ;;  %v5026_v8 = vld [vmem:[#allocation3 + $0x48] sm:$0xff] }
 0x2fc   : > { %v2779_v24 = vpop.f32.mrf.mxu2  ;;  %v2925_v19 = vpop.f32.mrf.mxu3 }
 0x2fd   : > { %v2813_v42 = vadd.f32 %v2779_v24, %v6241_v45  ;;  %v3382_v17 = vsel %vm1139_vm5, %v3379_v25, %v3381_v33 }
 0x2ff   : > { %v2959_v57 = vadd.f32 %v2925_v19, %v2813_v42 }
 0x300   : > { %v3124_v63 = vpop.f32.mrf.mxu0  ;;  %v3326_v53 = vpop.f32.mrf.mxu1 }
 0x301   : > { %v3155_v49 = vadd.f32 %v3121_v23, %v2959_v57  ;;  %4845 = vmatmul.msk.bf16.gmra.mxu2 %vm2507_vm6, %v3380_v34  ;;  %4902 = vmatmul.msk.bf16.gmra.mxu3 %vm2507_vm6, %v5023_v12  ;;  %v3755_v12 = vor.u32 %v3753_v3, %v3751_v5  ;;  %v3763_v34 = vshll.u32 %v5026_v8, 16 }
 0x303   : > { %4919 = vmatmul.msk.bf16.gmra.mxu0 %vm2507_vm6, %v3752_v27  ;;  %4936 = vmatmul.msk.bf16.gmra.mxu1 %vm2507_vm6, %v3924_v48  ;;  %v6413_v45 = vadd.f32 %v3323_v1, %v3155_v49  ;;  %v3759_v54 = vsel %vm842_vm3, %v3755_v12, %v3758_v60  ;;  %v3927_v27 = vrot.slane %v5026_v8, 1 }
 0x304   : > { %v2782_v56 = vpop.f32.mrf.mxu2  ;;  %v2928_v21 = vpop.f32.mrf.mxu3 }
 0x305   : > { %v2814_v28 = vadd.f32 %v2782_v56, %v6249_v4  ;;  %v3928_v3 = vsel %vm1139_vm5, %v3925_v18, %v3927_v27  ;;  %v3767_v18 = vshrl.u32 %v5026_v8, 16 }
 0x307   : > { %v2960_v39 = vadd.f32 %v2928_v21, %v2814_v28 }
 0x308   : > { %v3126_v44 = vpop.f32.mrf.mxu0  ;;  %v3328_v31 = vpop.f32.mrf.mxu1 }
 0x309   : > { %v3156_v22 = vadd.f32 %v3124_v63, %v2960_v39  ;;  %v3383_v63 = vrot.slane %v6260_v36, 1  ;;  %v5027_v36 = vld [vmem:[#allocation3 + $0x50] sm:$0xff] }
 0x30b   : > { %v6417_v0 = vadd.f32 %v3326_v53, %v3156_v22  ;;  %v3765_v53 = vrot.slane %v3763_v34, 1  ;;  %v3384_v28 = vsel %vm1139_vm5, %v3381_v33, %v3383_v63 }
 0x30c   : > { %v2784_v51 = vpop.f32.mrf.mxu2  ;;  %v2930_v43 = vpop.f32.mrf.mxu3 }
 0x30d   : > { %v2815_v58 = vadd.f32 %v2784_v51, %v6262_v47 }
 0x30f   : > { %v2961_v4 = vadd.f32 %v2930_v43, %v2815_v58  ;;  %v3770_v58 = vshll.u32 %v5027_v36, 16 }
 0x310   : > { %v3129_v23 = vpop.f32.mrf.mxu0  ;;  %v3331_v1 = vpop.f32.mrf.mxu1 }
 0x311   : > { %v3157_v62 = vadd.f32 %v3126_v44, %v2961_v4  ;;  %4846 = vmatmul.msk.bf16.gmra.mxu2 %vm2507_vm6, %v3382_v17  ;;  %4903 = vmatmul.msk.bf16.gmra.mxu3 %vm2507_vm6, %v5024_v50  ;;  %v3762_v50 = vor.u32 %v3760_v37, %v3758_v60  ;;  %v3385_v4 = vrot.slane %v6281_v10, 1  ;;  %v5028_v10 = vld [vmem:[#allocation3 + $0x58] sm:$0xff] }
 0x313   : > { %4920 = vmatmul.msk.bf16.gmra.mxu0 %vm2507_vm6, %v3759_v54  ;;  %4937 = vmatmul.msk.bf16.gmra.mxu1 %vm2507_vm6, %v3926_v26  ;;  %v6427_v47 = vadd.f32 %v3328_v31, %v3157_v62  ;;  %v3766_v31 = vsel %vm842_vm3, %v3762_v50, %v3765_v53 }
 0x314   : > { %v2787_v25 = vpop.f32.mrf.mxu2  ;;  %v2933_v41 = vpop.f32.mrf.mxu3 }
 0x315   : > { %v2816_v5 = vadd.f32 %v2787_v25, %v6270_v61 }
 0x317   : > { %v2962_v24 = vadd.f32 %v2933_v41, %v2816_v5  ;;  %v3386_v41 = vsel %vm1139_vm5, %v3383_v63, %v3385_v4 }
 0x318   : > { %v3131_v19 = vpop.f32.mrf.mxu0  ;;  %v3333_v42 = vpop.f32.mrf.mxu1 }
 0x319   : > { %v3158_v57 = vadd.f32 %v3129_v23, %v2962_v24  ;;  %v3772_v23 = vrot.slane %v3770_v58, 1 }
 0x31b   : > { %v6431_v48 = vadd.f32 %v3331_v1, %v3158_v57  ;;  %v3929_v1 = vrot.slane %v5027_v36, 1 }
 0x31c   : > { %v2789_v49 = vpop.f32.mrf.mxu2  ;;  %v2935_v56 = vpop.f32.mrf.mxu3 }
 0x31d   : > { %v2817_v21 = vadd.f32 %v2789_v49, %v6283_v40 }
 0x31f   : > { %v2963_v61 = vadd.f32 %v2935_v56, %v2817_v21  ;;  %v3777_v56 = vshll.u32 %v5028_v10, 16 }
 0x320   : > { %v3134_v39 = vpop.f32.mrf.mxu0  ;;  %v3336_v44 = vpop.f32.mrf.mxu1 }
 0x321   : > { %v3159_v30 = vadd.f32 %v3131_v19, %v2963_v61  ;;  %4847 = vmatmul.msk.bf16.gmra.mxu2 %vm2507_vm6, %v3384_v28  ;;  %4904 = vmatmul.msk.bf16.gmra.mxu3 %vm2507_vm6, %v5025_v6  ;;  %v3769_v6 = vor.u32 %v3767_v18, %v3765_v53  ;;  %v3387_v28 = vrot.slane %v6302_v52, 1  ;;  %v3779_v61 = vrot.slane %v3777_v56, 1 }
 0x323   : > { %4921 = vmatmul.msk.bf16.gmra.mxu0 %vm2507_vm6, %v3766_v31  ;;  %4938 = vmatmul.msk.bf16.gmra.mxu1 %vm2507_vm6, %v3928_v3  ;;  %v6441_v40 = vadd.f32 %v3333_v42, %v3159_v30  ;;  %v3773_v19 = vsel %vm842_vm3, %v3769_v6, %v3772_v23  ;;  %v3930_v42 = vsel %vm1139_vm5, %v3927_v27, %v3929_v1  ;;  %v3774_v27 = vshrl.u32 %v5027_v36, 16  ;;  %v3532_v30 = vld [vmem:[#allocation3 + $0x60] sm:$0xf] }
 0x324   : > { %v2792_v22 = vpop.f32.mrf.mxu2  ;;  %v2938_v33 = vpop.f32.mrf.mxu3  ;;  %v3713_v52 = vunpack.c.l.b16 %v3532_v30 }
 0x325   : > { %v2818_v12 = vadd.f32 %v2792_v22, %v6291_v29 }
 0x327   : > { %v2964_v60 = vadd.f32 %v2938_v33, %v2818_v12 }
 0x328   : > { %v3136_v51 = vpop.f32.mrf.mxu0  ;;  %v3338_v43 = vpop.f32.mrf.mxu1 }
 0x329   : > { %v3160_v17 = vadd.f32 %v3134_v39, %v2964_v60  ;;  %v3931_v39 = vrot.slane %v5028_v10, 1 }
 0x32b   : > { %v6445_v54 = vadd.f32 %v3336_v44, %v3160_v17 }
 0x32c   : > { %v2794_v26 = vpop.f32.mrf.mxu2  ;;  %v2940_v62 = vpop.f32.mrf.mxu3 }
 0x32d   : > { %v2819_v25 = vadd.f32 %v2794_v26, %v6304_v32 }
 0x32f   : > { %v2965_v29 = vadd.f32 %v2940_v62, %v2819_v25  ;;  %v3781_v62 = vshrl.u32 %v5028_v10, 16 }
 0x330   : > { %v3139_v5 = vpop.f32.mrf.mxu0  ;;  %v3341_v24 = vpop.f32.mrf.mxu1 }
 0x331   : > { %v3161_v37 = vadd.f32 %v3136_v51, %v2965_v29  ;;  %4848 = vmatmul.msk.bf16.gmra.mxu2 %vm2507_vm6, %v3386_v41  ;;  %4905 = vmatmul.msk.bf16.gmra.mxu3 %vm2507_vm6, %v5026_v8  ;;  %v3776_v8 = vor.u32 %v3774_v27, %v3772_v23  ;;  %v3389_v41 = vrot.slane %v6323_v16, 1  ;;  %v3783_v29 = vor.u32 %v3781_v62, %v3779_v61 }
 0x333   : > { %4922 = vmatmul.msk.bf16.gmra.mxu0 %vm2507_vm6, %v3773_v19  ;;  %4939 = vmatmul.msk.bf16.gmra.mxu1 %vm2507_vm6, %v3930_v42  ;;  %v6455_v32 = vadd.f32 %v3338_v43, %v3161_v37  ;;  %v3780_v51 = vsel %vm842_vm3, %v3776_v8, %v3779_v61  ;;  %v3932_v43 = vsel %vm1139_vm5, %v3929_v1, %v3931_v39 }
 0x334   : > { %v2797_v34 = vpop.f32.mrf.mxu2  ;;  %v2943_v57 = vpop.f32.mrf.mxu3 }
 0x335   : > { %v2820_v63 = vadd.f32 %v2797_v34, %v6312_v11  ;;  %v3388_v11 = vsel %vm1139_vm5, %v3385_v4, %v3387_v28  ;;  %v3390_v34 = vsel %vm1139_vm5, %v3387_v28, %v3389_v41 }
 0x337   : > { %v2966_v50 = vadd.f32 %v2943_v57, %v2820_v63 }
 0x338   : > { %v3141_v53 = vpop.f32.mrf.mxu0  ;;  %v3343_v49 = vpop.f32.mrf.mxu1 }
 0x339   : > { %v3162_v21 = vadd.f32 %v3139_v5, %v2966_v50 }
 0x33b   : > { %v6459_v44 = vadd.f32 %v3341_v24, %v3162_v21 }
 0x33c   : > { %v2799_v31 = vpop.f32.mrf.mxu2  ;;  %v2945_v3 = vpop.f32.mrf.mxu3 }
 0x33d   : > { %v2821_v22 = vadd.f32 %v2799_v31, %v6325_v35  ;;  %v3714_v35 = vpack.c.b16 %v3713_v52, %v3713_v52 }
 0x33f   : > { %v2967_v33 = vadd.f32 %v2945_v3, %v2821_v22  ;;  %v3785_v25 = vshll.u32 %v3714_v35, 16  ;;  %v3933_v24 = vrot.slane %v3714_v35, 1 }
 0x340   : > { %v3840_v12 = vpop.f32.mrf.mxu0  ;;  %v3986_v60 = vpop.f32.mrf.mxu1 }
 0x341   : > { %v3163_v18 = vadd.f32 %v3141_v53, %v2967_v33  ;;  %4849 = vmatmul.msk.bf16.gmra.mxu2 %vm2507_vm6, %v3388_v11  ;;  %4906 = vmatmul.msk.bf16.gmra.mxu3 %vm2507_vm6, %v5027_v36  ;;  %v3787_v5 = vrot.slane %v3785_v25, 1 }
 0x343   : > { %4923 = vmatmul.msk.bf16.gmra.mxu0 %vm2507_vm6, %v3780_v51  ;;  %4940 = vmatmul.msk.bf16.gmra.mxu1 %vm2507_vm6, %v3932_v43  ;;  %v6469_v58 = vadd.f32 %v3343_v49, %v3163_v18  ;;  %v3788_v53 = vsel %vm842_vm3, %v3783_v29, %v3787_v5  ;;  %v3934_v49 = vsel %vm1139_vm5, %v3931_v39, %v3933_v24 }
 0x344   : > { %v3442_v17 = vpop.f32.mrf.mxu2  ;;  %v3638_v4 = vpop.f32.mrf.mxu3 }
 0x345   : > { %v3492_v6 = vadd.f32 %v3442_v17, %v6331_v38  ;;  %v6480_v38 = vld [vmem:[%s648_s22] ss:$0 sm:$0xff] }
 0x347   : > { %v3688_v23 = vadd.f32 %v3638_v4, %v3492_v6 }
 0x348   : > { %v3842_v1 = vpop.f32.mrf.mxu0  ;;  %v3988_v26 = vpop.f32.mrf.mxu1 }
 0x349   : > { %v3890_v36 = vadd.f32 %v3840_v12, %v3688_v23 }
 0x34b   : > { %v4036_v57 = vadd.f32 %v3986_v60, %v3890_v36 }
 0x34c   : > { %v3444_v19 = vpop.f32.mrf.mxu2  ;;  %v3640_v42 = vpop.f32.mrf.mxu3 }
 0x34d   : > { %v3493_v37 = vadd.f32 %v3444_v19, %v6342_v55  ;;  %v4060_v55 = vadd.f32 %v6480_v38, %v4036_v57 }
 0x34f   : > { %v3689_v63 = vadd.f32 %v3640_v42, %v3493_v37  ;;  %v4080_v39 = vmax.f32 %v4060_v55, 0.0 }
 0x350   : > { %v3845_v50 = vpop.f32.mrf.mxu0  ;;  %v3991_v16 = vpop.f32.mrf.mxu1 }
 0x351   : > { %v3891_v27 = vadd.f32 %v3842_v1, %v3689_v63  ;;  %4850 = vmatmul.msk.bf16.gmra.mxu2 %vm2507_vm6, %v3390_v34  ;;  %4907 = vmatmul.msk.bf16.gmra.mxu3 %vm2507_vm6, %v5028_v10 }
 0x353   : > { %4924 = vmatmul.msk.bf16.gmra.mxu0 %vm2507_vm6, %v3788_v53  ;;  %4941 = vmatmul.msk.bf16.gmra.mxu1 %vm2507_vm6, %v3934_v49  ;;  %v4037_v56 = vadd.f32 %v3988_v26, %v3891_v27 }
 0x354   : > { %v3447_v21 = vpop.f32.mrf.mxu2  ;;  %v3643_v28 = vpop.f32.mrf.mxu3 }
 0x355   : > { %v4061_v8 = vadd.f32 %v6480_v38, %v4037_v56  ;;  %v3494_v61 = vadd.f32 %v3447_v21, %v6347_v9 }
 0x357   : > { %v4081_v31 = vmax.f32 %v4061_v8, 0.0  ;;  %v3690_v3 = vadd.f32 %v3643_v28, %v3494_v61 }
 0x358   : > { %v3847_v30 = vpop.f32.mrf.mxu0  ;;  %v3993_v22 = vpop.f32.mrf.mxu1 }
 0x359   : > { %v5035_v11 = vpack.c.bf16 %v4081_v31, %v4080_v39  ;;  %v3892_v10 = vadd.f32 %v3845_v50, %v3690_v3 }
 0x35b   : > { %5036 = vst [vmem:[%s5482_s30] sm:$0xff] %v5035_v11   ;;  %v4038_v51 = vadd.f32 %v3991_v16, %v3892_v10 }
 0x35c   : > { %v3449_v33 = vpop.f32.mrf.mxu2  ;;  %v3645_v12 = vpop.f32.mrf.mxu3 }
 0x35d   : > { %v3495_v60 = vadd.f32 %v3449_v33, %v6357_v7  ;;  %v4062_v9 = vadd.f32 %v6480_v38, %v4038_v51 }
 0x35f   : > { %v3691_v43 = vadd.f32 %v3645_v12, %v3495_v60  ;;  %v4082_v26 = vmax.f32 %v4062_v9, 0.0 }
 0x360   : > { %v3850_v52 = vpop.f32.mrf.mxu0  ;;  %v3996_v18 = vpop.f32.mrf.mxu1 }
 0x361   : > { %v3893_v35 = vadd.f32 %v3847_v30, %v3691_v43 }
 0x363   : > { %v4039_v17 = vadd.f32 %v3993_v22, %v3893_v35 }
 0x364   : > { %v3452_v4 = vpop.f32.mrf.mxu2  ;;  %v3648_v6 = vpop.f32.mrf.mxu3 }
 0x365   : > { %v4063_v23 = vadd.f32 %v6480_v38, %v4039_v17  ;;  %v3496_v1 = vadd.f32 %v3452_v4, %v6361_v59 }
 0x367   : > { %v4083_v62 = vmax.f32 %v4063_v23, 0.0  ;;  %v3692_v25 = vadd.f32 %v3648_v6, %v3496_v1 }
 0x368   : > { %v3852_v41 = vpop.f32.mrf.mxu0  ;;  %v3998_v7 = vpop.f32.mrf.mxu1 }
 0x369   : > { %v5040_v36 = vpack.c.bf16 %v4083_v62, %v4082_v26  ;;  %v3894_v29 = vadd.f32 %v3850_v52, %v3692_v25 }
 0x36b   : > { %5082 = vst [vmem:[%s5482_s30 + $0x8] sm:$0xff] %v5040_v36   ;;  %v4040_v42 = vadd.f32 %v3996_v18, %v3894_v29 }
 0x36c   : > { %v3454_v5 = vpop.f32.mrf.mxu2  ;;  %v3650_v24 = vpop.f32.mrf.mxu3 }
 0x36d   : > { %v3497_v19 = vadd.f32 %v3454_v5, %v6371_v46  ;;  %v4064_v59 = vadd.f32 %v6480_v38, %v4040_v42 }
 0x36f   : > { %v3693_v37 = vadd.f32 %v3650_v24, %v3497_v19  ;;  %v4084_v55 = vmax.f32 %v4064_v59, 0.0 }
 0x370   : > { %v3855_v34 = vpop.f32.mrf.mxu0  ;;  %v4001_v57 = vpop.f32.mrf.mxu1 }
 0x371   : > { %v3895_v63 = vadd.f32 %v3852_v41, %v3693_v37 }
 0x373   : > { %v4041_v50 = vadd.f32 %v3998_v7, %v3895_v63 }
 0x374   : > { %v3457_v16 = vpop.f32.mrf.mxu2  ;;  %v3653_v53 = vpop.f32.mrf.mxu3 }
 0x375   : > { %v4065_v49 = vadd.f32 %v6480_v38, %v4041_v50  ;;  %v3498_v27 = vadd.f32 %v3457_v16, %v6375_v15 }
 0x377   : > { %v4085_v56 = vmax.f32 %v4065_v49, 0.0  ;;  %v3694_v21 = vadd.f32 %v3653_v53, %v3498_v27 }
 0x378   : > { %v3857_v28 = vpop.f32.mrf.mxu0  ;;  %v4003_v46 = vpop.f32.mrf.mxu1 }
 0x379   : > { %v5045_v8 = vpack.c.bf16 %v4085_v56, %v4084_v55  ;;  %v3896_v61 = vadd.f32 %v3855_v34, %v3694_v21 }
 0x37b   : > { %5083 = vst [vmem:[%s5482_s30 + $0x10] sm:$0xff] %v5045_v8   ;;  %v4042_v30 = vadd.f32 %v4001_v57, %v3896_v61 }
 0x37c   : > { %v3459_v39 = vpop.f32.mrf.mxu2  ;;  %v3655_v31 = vpop.f32.mrf.mxu3 }
 0x37d   : > { %v3499_v3 = vadd.f32 %v3459_v39, %v6385_v2  ;;  %v4066_v15 = vadd.f32 %v6480_v38, %v4042_v30 }
 0x37f   : > { %v3695_v22 = vadd.f32 %v3655_v31, %v3499_v3  ;;  %v4086_v18 = vmax.f32 %v4066_v15, 0.0 }
 0x380   : > { %v3860_v11 = vpop.f32.mrf.mxu0  ;;  %v4006_v10 = vpop.f32.mrf.mxu1 }
 0x381   : > { %v3897_v33 = vadd.f32 %v3857_v28, %v3695_v22 }
 0x383   : > { %v4043_v12 = vadd.f32 %v4003_v46, %v3897_v33 }
 0x384   : > { %v3462_v60 = vpop.f32.mrf.mxu2  ;;  %v3658_v51 = vpop.f32.mrf.mxu3 }
 0x385   : > { %v4067_v43 = vadd.f32 %v6480_v38, %v4043_v12  ;;  %v3500_v52 = vadd.f32 %v3462_v60, %v6389_v13 }
 0x387   : > { %v4087_v35 = vmax.f32 %v4067_v43, 0.0  ;;  %v3696_v9 = vadd.f32 %v3658_v51, %v3500_v52 }
 0x388   : > { %v3862_v17 = vpop.f32.mrf.mxu0  ;;  %v4008_v2 = vpop.f32.mrf.mxu1 }
 0x389   : > { %v5050_v4 = vpack.c.bf16 %v4087_v35, %v4086_v18  ;;  %v3898_v6 = vadd.f32 %v3860_v11, %v3696_v9 }
 0x38b   : > { %5084 = vst [vmem:[%s5482_s30 + $0x18] sm:$0xff] %v5050_v4   ;;  %v4044_v62 = vadd.f32 %v4006_v10, %v3898_v6 }
 0x38c   : > { %v3464_v23 = vpop.f32.mrf.mxu2  ;;  %v3660_v1 = vpop.f32.mrf.mxu3 }
 0x38d   : > { %v3501_v26 = vadd.f32 %v3464_v23, %v6399_v14  ;;  %v4068_v13 = vadd.f32 %v6480_v38, %v4044_v62 }
 0x38f   : > { %v3697_v25 = vadd.f32 %v3660_v1, %v3501_v26  ;;  %v4088_v37 = vmax.f32 %v4068_v13, 0.0 }
 0x390   : > { %v3865_v41 = vpop.f32.mrf.mxu0  ;;  %v4011_v7 = vpop.f32.mrf.mxu1 }
 0x391   : > { %v3899_v36 = vadd.f32 %v3862_v17, %v3697_v25 }
 0x393   : > { %v4045_v29 = vadd.f32 %v4008_v2, %v3899_v36 }
 0x394   : > { %v3467_v5 = vpop.f32.mrf.mxu2  ;;  %v3663_v24 = vpop.f32.mrf.mxu3 }
 0x395   : > { %v4069_v19 = vadd.f32 %v6480_v38, %v4045_v29  ;;  %v3502_v42 = vadd.f32 %v3467_v5, %v6403_v20 }
 0x397   : > { %v4089_v34 = vmax.f32 %v4069_v19, 0.0  ;;  %v3698_v57 = vadd.f32 %v3663_v24, %v3502_v42 }
 0x398   : > { %v3867_v63 = vpop.f32.mrf.mxu0  ;;  %v4013_v14 = vpop.f32.mrf.mxu1 }
 0x399   : > { %v5055_v59 = vpack.c.bf16 %v4089_v34, %v4088_v37  ;;  %v3900_v50 = vadd.f32 %v3865_v41, %v3698_v57 }
 0x39b   : > { %5085 = vst [vmem:[%s5482_s30 + $0x20] sm:$0xff] %v5055_v59   ;;  %v4046_v27 = vadd.f32 %v4011_v7, %v3900_v50 }
 0x39c   : > { %v3469_v16 = vpop.f32.mrf.mxu2  ;;  %v3665_v53 = vpop.f32.mrf.mxu3 }
 0x39d   : > { %v3503_v49 = vadd.f32 %v3469_v16, %v6413_v45  ;;  %v4070_v20 = vadd.f32 %v6480_v38, %v4046_v27 }
 0x39f   : > { %v3699_v55 = vadd.f32 %v3665_v53, %v3503_v49  ;;  %v4090_v3 = vmax.f32 %v4070_v20, 0.0 }
 0x3a0   : > { %v3870_v56 = vpop.f32.mrf.mxu0  ;;  %v4016_v21 = vpop.f32.mrf.mxu1 }
 0x3a1   : > { %v3901_v28 = vadd.f32 %v3867_v63, %v3699_v55 }
 0x3a3   : > { %v4047_v46 = vadd.f32 %v4013_v14, %v3901_v28 }
 0x3a4   : > { %v3472_v8 = vpop.f32.mrf.mxu2  ;;  %v3668_v61 = vpop.f32.mrf.mxu3 }
 0x3a5   : > { %v4071_v39 = vadd.f32 %v6480_v38, %v4047_v46  ;;  %v3504_v31 = vadd.f32 %v3472_v8, %v6417_v0 }
 0x3a7   : > { %v4091_v30 = vmax.f32 %v4071_v39, 0.0  ;;  %v3700_v22 = vadd.f32 %v3668_v61, %v3504_v31 }
 0x3a8   : > { %v3872_v11 = vpop.f32.mrf.mxu0  ;;  %v4018_v45 = vpop.f32.mrf.mxu1 }
 0x3a9   : > { %v5060_v10 = vpack.c.bf16 %v4091_v30, %v4090_v3  ;;  %v3902_v33 = vadd.f32 %v3870_v56, %v3700_v22 }
 0x3ab   : > { %5086 = vst [vmem:[%s5482_s30 + $0x28] sm:$0xff] %v5060_v10   ;;  %v4048_v51 = vadd.f32 %v4016_v21, %v3902_v33 }
 0x3ac   : > { %v3474_v15 = vpop.f32.mrf.mxu2  ;;  %v3670_v12 = vpop.f32.mrf.mxu3 }
 0x3ad   : > { %v3505_v60 = vadd.f32 %v3474_v15, %v6427_v47  ;;  %v4072_v0 = vadd.f32 %v6480_v38, %v4048_v51 }
 0x3af   : > { %v3701_v43 = vadd.f32 %v3670_v12, %v3505_v60  ;;  %v4092_v23 = vmax.f32 %v4072_v0, 0.0 }
 0x3b0   : > { %v3875_v52 = vpop.f32.mrf.mxu0  ;;  %v4021_v18 = vpop.f32.mrf.mxu1 }
 0x3b1   : > { %v3903_v35 = vadd.f32 %v3872_v11, %v3701_v43 }
 0x3b3   : > { %v4049_v9 = vadd.f32 %v4018_v45, %v3903_v35 }
 0x3b4   : > { %v3477_v17 = vpop.f32.mrf.mxu2  ;;  %v3673_v2 = vpop.f32.mrf.mxu3 }
 0x3b5   : > { %v4073_v4 = vadd.f32 %v6480_v38, %v4049_v9  ;;  %v3506_v6 = vadd.f32 %v3477_v17, %v6431_v48 }
 0x3b7   : > { %v4093_v1 = vmax.f32 %v4073_v4, 0.0  ;;  %v3702_v26 = vadd.f32 %v3673_v2, %v3506_v6 }
 0x3b8   : > { %v3877_v62 = vpop.f32.mrf.mxu0  ;;  %v4023_v25 = vpop.f32.mrf.mxu1 }
 0x3b9   : > { %v5065_v47 = vpack.c.bf16 %v4093_v1, %v4092_v23  ;;  %v3904_v41 = vadd.f32 %v3875_v52, %v3702_v26 }
 0x3bb   : > { %5087 = vst [vmem:[%s5482_s30 + $0x30] sm:$0xff] %v5065_v47   ;;  %v4050_v29 = vadd.f32 %v4021_v18, %v3904_v41 }
 0x3bc   : > { %v3479_v7 = vpop.f32.mrf.mxu2  ;;  %v3675_v36 = vpop.f32.mrf.mxu3 }
 0x3bd   : > { %v3507_v13 = vadd.f32 %v3479_v7, %v6441_v40  ;;  %v4074_v42 = vadd.f32 %v6480_v38, %v4050_v29 }
 0x3bf   : > { %v3703_v5 = vadd.f32 %v3675_v36, %v3507_v13  ;;  %v4094_v59 = vmax.f32 %v4074_v42, 0.0 }
 0x3c0   : > { %v3880_v19 = vpop.f32.mrf.mxu0  ;;  %v4026_v37 = vpop.f32.mrf.mxu1 }
 0x3c1   : > { %v3905_v24 = vadd.f32 %v3877_v62, %v3703_v5 }
 0x3c3   : > { %v4051_v48 = vadd.f32 %v4023_v25, %v3905_v24 }
 0x3c4   : > { %v3482_v34 = vpop.f32.mrf.mxu2  ;;  %v3678_v57 = vpop.f32.mrf.mxu3 }
 0x3c5   : > { %v4075_v63 = vadd.f32 %v6480_v38, %v4051_v48  ;;  %v3508_v14 = vadd.f32 %v3482_v34, %v6445_v54 }
 0x3c7   : > { %v4095_v50 = vmax.f32 %v4075_v63, 0.0  ;;  %v3704_v16 = vadd.f32 %v3678_v57, %v3508_v14 }
 0x3c8   : > { %v3882_v49 = vpop.f32.mrf.mxu0  ;;  %v4028_v21 = vpop.f32.mrf.mxu1 }
 0x3c9   : > { %v5070_v53 = vpack.c.bf16 %v4095_v50, %v4094_v59  ;;  %v3906_v40 = vadd.f32 %v3880_v19, %v3704_v16 }
 0x3cb   : > { %5088 = vst [vmem:[%s5482_s30 + $0x38] sm:$0xff] %v5070_v53   ;;  %v4052_v28 = vadd.f32 %v4026_v37, %v3906_v40 }
 0x3cc   : > { %v3484_v27 = vpop.f32.mrf.mxu2  ;;  %v3680_v55 = vpop.f32.mrf.mxu3 }
 0x3cd   : > { %v3509_v56 = vadd.f32 %v3484_v27, %v6455_v32  ;;  %v4076_v8 = vadd.f32 %v6480_v38, %v4052_v28 }
 0x3cf   : > { %v3705_v20 = vadd.f32 %v3680_v55, %v3509_v56  ;;  %v4096_v22 = vmax.f32 %v4076_v8, 0.0 }
 0x3d0   : > { %v3885_v30 = vpop.f32.mrf.mxu0  ;;  %v4031_v32 = vpop.f32.mrf.mxu1 }
 0x3d1   : > { %v3907_v46 = vadd.f32 %v3882_v49, %v3705_v20 }
 0x3d3   : > { %v4053_v61 = vadd.f32 %v4028_v21, %v3907_v46 }
 0x3d4   : > { %v3487_v54 = vpop.f32.mrf.mxu2  ;;  %v3683_v39 = vpop.f32.mrf.mxu3 }
 0x3d5   : > { %v4077_v31 = vadd.f32 %v6480_v38, %v4053_v61  ;;  %v3510_v3 = vadd.f32 %v3487_v54, %v6459_v44 }
 0x3d7   : > { %v4097_v11 = vmax.f32 %v4077_v31, 0.0  ;;  %v3706_v45 = vadd.f32 %v3683_v39, %v3510_v3 }
 0x3d8   : > { %v3887_v52 = vpop.f32.mrf.mxu0  ;;  %v4033_v18 = vpop.f32.mrf.mxu1 }
 0x3d9   : > { %v5075_v10 = vpack.c.bf16 %v4097_v11, %v4096_v22  ;;  %v3908_v33 = vadd.f32 %v3885_v30, %v3706_v45 }
 0x3db   : > { %5089 = vst [vmem:[%s5482_s30 + $0x40] sm:$0xff] %v5075_v10   ;;  %v4054_v51 = vadd.f32 %v4031_v32, %v3908_v33 }
 0x3dc   : > { %v3489_v15 = vpop.f32.mrf.mxu2  ;;  %v3685_v60 = vpop.f32.mrf.mxu3 }
 0x3dd   : > { %v3511_v12 = vadd.f32 %v3489_v15, %v6469_v58  ;;  %v4078_v35 = vadd.f32 %v6480_v38, %v4054_v51 }
 0x3df   : > { %v3707_v43 = vadd.f32 %v3685_v60, %v3511_v12  ;;  %v4098_v9 = vmax.f32 %v4078_v35, 0.0 }
 0x3e1   : > { %v3909_v44 = vadd.f32 %v3887_v52, %v3707_v43 }
 0x3e3   : > { %v4055_v0 = vadd.f32 %v4033_v18, %v3909_v44 }
 0x3e5   : > { %v4079_v58 = vadd.f32 %v6480_v38, %v4055_v0 }
 0x3e7   : > { %v4099_v17 = vmax.f32 %v4079_v58, 0.0 }
 0x3e9   : > { %v5080_v2 = vpack.c.bf16 %v4099_v17, %v4098_v9 }
 0x3eb   : > { %5090 = vst [vmem:[%s5482_s30 + $0x48] sm:$0xff] %v5080_v2  }
 0x3ec   : > { %5221 = shalt.err (!%p5218_p12)
}
 0x3ed   : > { %s5281_s26 = smov 64   ;;  %s5282_s30 = smov 192  }
 0x3ee   : > { %s5283_s12 = smov 4  }
 0x3ef   : > { %5104 = dma.vmem_to_hbm [thread:$0]  (%p5375_p9), %s4156_s28, 1280, %s4158_s11, %s4141_s27, %s5281_s26, %s5282_s30, %s5283_s12  }
 0x3f0 PF: > { %p5110_p13 = scmp.ge.s32.totalorder %s5276_s29, 2  ;;  %s4172_s23 = sand.u32 1, %s5256_s24  }
 0x3f1   : > { %s4173_s18 = scalar_lea.sflag [#allocation6], %s4172_s23 }
 0x3f2   : > { %p5107_p0 = pnand %p5110_p13, %p5382_p11 }
 0x3f4   : > { %p5108_p1 = pneg %p5107_p0 }
 0x3f6   : > { %5251 = dma.done.wait (%p5108_p1), %s4173_s18, 1280  }
 0x3f7   : > { %5253 = vsyncadd (%p5108_p1), %s4173_s18, 4294966016  ;;  %s23_s29 = sadd.s32 1, %s5276_s29   ;;  %s6596_s22 = sld [smem:[#allocation11_spill]] }
 0x3f8   : > { %p20_p2 = scmp.ge.s32.totalorder %s23_s29, 5   ;;  %s6597_s26 = sld [smem:[#allocation14_spill]] }
 0x3f9   : > { %s6598_s27 = sld [smem:[#allocation12_spill]]  ;;  %s6600_s24 = smov %s5260_s25 }
 0x3fa   : > { %s6599_s28 = sld [smem:[#allocation13_spill]]  ;;  %22 = sbr.rel (!%p20_p2) target bundleno = 6 (0x6), region = 177 }
 0x3fd   : > { %s6601_s25 = smov %s6596_s22 }
 0x3ff   :  { %4179 = vsyncpa [#allocation5], 1 }
 0x400   :  { %4181 = vsyncpa [#allocation5 + $0x1], 1 }
 0x401   :  { %4182 = vsyncpa [#allocation6], 1 }
 0x402   :  { %4184 = vsyncpa [#allocation6 + $0x1], 1 }

</bundles_post_ra>
